<compile_context>
chip_gen: v6e
topology: v6e:2x2x1
jax: 0.10.0
libtpu: 0.0.40
codegen_flags: <defaults>
</compile_context>

<pallas_src>
import functools

import jax
import jax.numpy as jnp
from jax import lax
from jax.experimental import pallas as pl
from jax.experimental.pallas import tpu as pltpu

EPS = 1e-5
COMPUTE_DTYPE = jnp.bfloat16  # MXU operand dtype; accumulation stays f32.


# ------------------------- kernel: BN batch statistics --------------------- #

def _bn_stats_kernel(x_ref, o_ref):
    """Accumulate per-channel [sum; sum-of-squares] over row tiles."""
    @pl.when(pl.program_id(0) == 0)
    def _():
        o_ref[...] = jnp.zeros_like(o_ref)
    x = x_ref[...].astype(jnp.float32)
    s = jnp.sum(x, axis=0, keepdims=True)
    ss = jnp.sum(x * x, axis=0, keepdims=True)
    o_ref[...] += jnp.concatenate([s, ss], axis=0)


def _pick_row_tile(rows, target=2048):
    """Largest divisor of `rows` that is a multiple of 8 and <= target."""
    best = rows
    t = 8
    while t <= min(rows, target):
        if rows % t == 0:
            best = t
        t += 8
    return best


def bn_batch_stats(x2d):
    rows, C = x2d.shape
    tile = _pick_row_tile(rows)
    sums = pl.pallas_call(
        _bn_stats_kernel,
        out_shape=jax.ShapeDtypeStruct((2, C), jnp.float32),
        grid=(rows // tile,),
        in_specs=[pl.BlockSpec((tile, C), lambda i: (i, 0))],
        out_specs=pl.BlockSpec((2, C), lambda i: (0, 0)),
        compiler_params=pltpu.CompilerParams(dimension_semantics=("arbitrary",)),
    )(x2d)
    mean = sums[0] / rows
    var = jnp.maximum(sums[1] / rows - mean * mean, 0.0)
    return mean, var


def _affine_from_stats(mean, var, gamma, beta):
    """Fold BN (batch stats) + gamma/beta into per-channel scale & bias."""
    scale = gamma * lax.rsqrt(var + EPS)
    bias = beta - mean * scale
    return (scale.reshape(1, -1).astype(jnp.float32),
            bias.reshape(1, -1).astype(jnp.float32))


# --------------------- shared 3x3 conv tap accumulation -------------------- #

def _accumulate_3x3(xpad_ref, w_ref, acc, H, W):
    """acc (H*W, Cout) f32 += 9 shifted whole-tile matmuls (bf16 operands)."""
    cd = w_ref.dtype
    for t in range(9):                      # 9 static taps (tiny unroll)
        kh, kw = divmod(t, 3)
        win = xpad_ref[kh:kh + H, kw:kw + W, :].reshape(H * W, -1).astype(cd)
        acc = acc + jnp.dot(win, w_ref[t], preferred_element_type=jnp.float32)
    return acc


# -------- stage 1: relu(bn1(x)) -> conv1 (+ fused 1x1 shortcut, bn2 stats) -- #

def _stage1_proj_kernel(x_ref, s1_ref, b1_ref, w1_ref, wsc_ref,
                        y_ref, sc_ref, st_ref, xpad_ref, *, H, W):
    cd = w1_ref.dtype
    x = x_ref[...].astype(jnp.float32)                       # (H*W, Cin)
    a1 = jnp.maximum(x * s1_ref[...] + b1_ref[...], 0.0)     # fused bn1+ReLU

    # fused 1x1 projection shortcut (a1 never leaves vregs for this)
    sc_ref[...] = jnp.dot(a1.astype(cd), wsc_ref[...],
                          preferred_element_type=jnp.float32).astype(sc_ref.dtype)

    # zero-padded halo built in VMEM scratch (no host jnp.pad / HBM copy)
    xpad_ref[...] = jnp.zeros_like(xpad_ref)
    xpad_ref[1:H + 1, 1:W + 1, :] = a1.reshape(H, W, -1)

    acc = jnp.zeros((H * W, w1_ref.shape[-1]), jnp.float32)  # no zeros tensor in HBM
    acc = _accumulate_3x3(xpad_ref, w1_ref, acc, H, W)
    y_ref[...] = acc.astype(y_ref.dtype)

    # per-sample partial sums for bn2 batch statistics (tiny side output)
    st_ref[0] = jnp.concatenate([jnp.sum(acc, axis=0, keepdims=True),
                                 jnp.sum(acc * acc, axis=0, keepdims=True)], axis=0)


def _stage1_id_kernel(x_ref, s1_ref, b1_ref, w1_ref,
                      y_ref, st_ref, xpad_ref, *, H, W):
    x = x_ref[...].astype(jnp.float32)
    a1 = jnp.maximum(x * s1_ref[...] + b1_ref[...], 0.0)

    xpad_ref[...] = jnp.zeros_like(xpad_ref)
    xpad_ref[1:H + 1, 1:W + 1, :] = a1.reshape(H, W, -1)

    acc = jnp.zeros((H * W, w1_ref.shape[-1]), jnp.float32)
    acc = _accumulate_3x3(xpad_ref, w1_ref, acc, H, W)
    y_ref[...] = acc.astype(y_ref.dtype)

    st_ref[0] = jnp.concatenate([jnp.sum(acc, axis=0, keepdims=True),
                                 jnp.sum(acc * acc, axis=0, keepdims=True)], axis=0)


def _stage1_projection(x2, s1, b1, w1, wsc, N, H, W, compute_dtype):
    Cin = x2.shape[-1]
    Cm = w1.shape[-1]
    rows = N * H * W
    return pl.pallas_call(
        functools.partial(_stage1_proj_kernel, H=H, W=W),
        out_shape=(jax.ShapeDtypeStruct((rows, Cm), jnp.float32),   # conv1 out
                   jax.ShapeDtypeStruct((rows, Cm), jnp.float32),   # shortcut
                   jax.ShapeDtypeStruct((N, 2, Cm), jnp.float32)),  # bn2 partials
        grid=(N,),
        in_specs=[pl.BlockSpec((H * W, Cin), lambda n: (n, 0)),
                  pl.BlockSpec((1, Cin), lambda n: (0, 0)),
                  pl.BlockSpec((1, Cin), lambda n: (0, 0)),
                  pl.BlockSpec((9, Cin, Cm), lambda n: (0, 0, 0)),
                  pl.BlockSpec((Cin, Cm), lambda n: (0, 0))],
        out_specs=(pl.BlockSpec((H * W, Cm), lambda n: (n, 0)),
                   pl.BlockSpec((H * W, Cm), lambda n: (n, 0)),
                   pl.BlockSpec((1, 2, Cm), lambda n: (n, 0, 0))),
        scratch_shapes=[pltpu.VMEM((H + 2, W + 2, Cin), jnp.float32)],
        compiler_params=pltpu.CompilerParams(dimension_semantics=("parallel",)),
    )(x2, s1, b1, w1.astype(compute_dtype), wsc.astype(compute_dtype))


def _stage1_identity(x2, s1, b1, w1, N, H, W, compute_dtype):
    Cin = x2.shape[-1]
    Cm = w1.shape[-1]
    rows = N * H * W
    return pl.pallas_call(
        functools.partial(_stage1_id_kernel, H=H, W=W),
        out_shape=(jax.ShapeDtypeStruct((rows, Cm), jnp.float32),
                   jax.ShapeDtypeStruct((N, 2, Cm), jnp.float32)),
        grid=(N,),
        in_specs=[pl.BlockSpec((H * W, Cin), lambda n: (n, 0)),
                  pl.BlockSpec((1, Cin), lambda n: (0, 0)),
                  pl.BlockSpec((1, Cin), lambda n: (0, 0)),
                  pl.BlockSpec((9, Cin, Cm), lambda n: (0, 0, 0))],
        out_specs=(pl.BlockSpec((H * W, Cm), lambda n: (n, 0)),
                   pl.BlockSpec((1, 2, Cm), lambda n: (n, 0, 0))),
        scratch_shapes=[pltpu.VMEM((H + 2, W + 2, Cin), jnp.float32)],
        compiler_params=pltpu.CompilerParams(dimension_semantics=("parallel",)),
    )(x2, s1, b1, w1.astype(compute_dtype))


# ------------ stage 2: relu(bn2(y)) -> conv2 + fused residual add ----------- #

def _stage2_kernel(y_ref, s2_ref, b2_ref, w2_ref, r_ref, o_ref, apad_ref, *, H, W):
    y = y_ref[...].astype(jnp.float32)                        # (H*W, Cm)
    a2 = jnp.maximum(y * s2_ref[...] + b2_ref[...], 0.0)      # fused bn2+ReLU

    apad_ref[...] = jnp.zeros_like(apad_ref)
    apad_ref[1:H + 1, 1:W + 1, :] = a2.reshape(H, W, -1)

    acc = r_ref[...].astype(jnp.float32)                      # residual fused in
    acc = _accumulate_3x3(apad_ref, w2_ref, acc, H, W)
    o_ref[...] = acc.astype(o_ref.dtype)


def _stage2(y, residual2d, s2, b2, w2, N, H, W, out_dtype, compute_dtype):
    Cm = w2.shape[1]
    Cout = w2.shape[-1]
    rows = N * H * W
    return pl.pallas_call(
        functools.partial(_stage2_kernel, H=H, W=W),
        out_shape=jax.ShapeDtypeStruct((rows, Cout), out_dtype),
        grid=(N,),
        in_specs=[pl.BlockSpec((H * W, Cm), lambda n: (n, 0)),
                  pl.BlockSpec((1, Cm), lambda n: (0, 0)),
                  pl.BlockSpec((1, Cm), lambda n: (0, 0)),
                  pl.BlockSpec((9, Cm, Cout), lambda n: (0, 0, 0)),
                  pl.BlockSpec((H * W, Cout), lambda n: (n, 0))],
        out_specs=pl.BlockSpec((H * W, Cout), lambda n: (n, 0)),
        scratch_shapes=[pltpu.VMEM((H + 2, W + 2, Cm), jnp.float32)],
        compiler_params=pltpu.CompilerParams(dimension_semantics=("parallel",)),
    )(y, s2, b2, w2.astype(compute_dtype), residual2d)


# ------------------------------- block forward ----------------------------- #

def preact_block_forward(x_nchw, params, compute_dtype=COMPUTE_DTYPE):
    """PreActBlock.forward, stride=1 (NCHW in, NCHW out). Training-mode BN."""
    N, Cin, H, W = x_nchw.shape
    # NCHW -> NHWC (channels on lanes), flattened to (rows, C).
    x2 = jnp.transpose(x_nchw, (0, 2, 3, 1)).reshape(N * H * W, Cin)

    # bn1: tiled Pallas batch-stats reduce; gamma/beta folded into scale/bias.
    mean1, var1 = bn_batch_stats(x2)
    s1, b1 = _affine_from_stats(mean1, var1, params["bn1_gamma"], params["bn1_beta"])

    w1 = params["conv1_w"].reshape(9, Cin, -1)   # dense (9, Cin, Cm) weight slab
    Cm = w1.shape[-1]

    if "shortcut_w" in params:
        y, sc2, st = _stage1_projection(x2, s1, b1, w1, params["shortcut_w"],
                                        N, H, W, compute_dtype)
    else:
        y, st = _stage1_identity(x2, s1, b1, w1, N, H, W, compute_dtype)
        sc2 = x2                                  # identity shortcut = input x

    # bn2 stats from conv1's fused side output (no extra HBM read of y).
    sums = jnp.sum(st, axis=0)                    # (2, Cm)
    cnt = float(N * H * W)
    mean2 = sums[0] / cnt
    var2 = jnp.maximum(sums[1] / cnt - mean2 * mean2, 0.0)
    s2, b2 = _affine_from_stats(mean2, var2, params["bn2_gamma"], params["bn2_beta"])

    w2 = params["conv2_w"].reshape(9, Cm, Cm)
    out2 = _stage2(y, sc2, s2, b2, w2, N, H, W, x_nchw.dtype, compute_dtype)
    return jnp.transpose(out2.reshape(N, H, W, Cm), (0, 3, 1, 2))  # NHWC -> NCHW


# --------------------------- pure-JAX reference ----------------------------- #
# Mirrors the module semantics; conv operands are cast to the same compute
# dtype (bf16) as the Pallas MXU path, with f32 accumulation.

def ref_forward(x_nchw, params, compute_dtype=COMPUTE_DTYPE):
    def bn_relu(x, g, b):
        mean = x.mean(axis=(0, 2, 3), keepdims=True)
        var = ((x - mean) ** 2).mean(axis=(0, 2, 3), keepdims=True)
        y = (x - mean) / jnp.sqrt(var + EPS) * g.reshape(1, -1, 1, 1) + b.reshape(1, -1, 1, 1)
        return jnp.maximum(y, 0.0)

    def conv(x, w_hwio, pad):
        return lax.conv_general_dilated(
            x.astype(compute_dtype), w_hwio.astype(compute_dtype), (1, 1),
            [(pad, pad), (pad, pad)],
            dimension_numbers=("NCHW", "HWIO", "NCHW"),
            preferred_element_type=jnp.float32)

    a1 = bn_relu(x_nchw, params["bn1_gamma"], params["bn1_beta"])
    if "shortcut_w" in params:
        sc = conv(a1, params["shortcut_w"][None, None], pad=0)
    else:
        sc = x_nchw
    y1 = conv(a1, params["conv1_w"], pad=1)
    a2 = bn_relu(y1, params["bn2_gamma"], params["bn2_beta"])
    out = conv(a2, params["conv2_w"], pad=1) + sc
    return out.astype(x_nchw.dtype)


# --------------------------------- params ----------------------------------- #

def init_params(key, in_planes, planes):
    ks = jax.random.split(key, 7)
    p = {
        "bn1_gamma": 1.0 + 0.1 * jax.random.normal(ks[0], (in_planes,), jnp.float32),
        "bn1_beta": 0.1 * jax.random.normal(ks[1], (in_planes,), jnp.float32),
        "conv1_w": 0.2 * jax.random.normal(ks[2], (3, 3, in_planes, planes), jnp.float32),
        "bn2_gamma": 1.0 + 0.1 * jax.random.normal(ks[3], (planes,), jnp.float32),
        "bn2_beta": 0.1 * jax.random.normal(ks[4], (planes,), jnp.float32),
        "conv2_w": 0.2 * jax.random.normal(ks[5], (3, 3, planes, planes), jnp.float32),
    }
    if in_planes != planes:   # stride fixed to 1 here
        p["shortcut_w"] = 0.2 * jax.random.normal(ks[6], (in_planes, planes), jnp.float32)
    return p


if __name__ == "__main__":
    key = jax.random.PRNGKey(0)
    kx, kp = jax.random.split(key)
    in_planes, planes = 4, 8               # exercises the projection-shortcut path
    x = jax.random.normal(kx, (2, in_planes, 16, 16), jnp.float32)
    params = init_params(kp, in_planes, planes)

    fwd = jax.jit(preact_block_forward)
    out = jax.block_until_ready(fwd(x, params))

    ref = jax.block_until_ready(ref_forward(x, params))
    assert out.shape == ref.shape == (2, planes, 16, 16), (out.shape, ref.shape)
    err = float(jnp.max(jnp.abs(out - ref)))
    # bf16 MXU operands (f32 accumulation) in both paths; tolerance sized for bf16.
    assert jnp.allclose(out, ref, atol=2e-2, rtol=2e-2), f"max abs err {err}"
    print("KERNEL_OK")
</pallas_src>

<mosaic_0001>
module attributes {stable_mosaic.version = 11 : i64} {
  func.func @_bn_stats_kernel(%arg0: i32, %arg1: memref<512x4xf32, #tpu.memory_space<vmem>>, %arg2: memref<2x4xf32, #tpu.memory_space<vmem>>) attributes {dimension_semantics = [#tpu.dimension_semantics<arbitrary>], iteration_bounds = array<i64: 1>, scalar_prefetch = 0 : i64, scratch_operands = 0 : i64, tpu.core_type = #tpu.core_type<tc>, window_params = [{transform_indices = @transform_0, window_bounds = array<i64: 512, 4>}, {pipeline_mode = #tpu.pipeline_mode<synchronous>, transform_indices = @transform_1, window_bounds = array<i64: 2, 4>}]} {
    %c0_i32 = arith.constant 0 : i32
    %0 = arith.cmpi eq, %arg0, %c0_i32 : i32
    %1 = arith.extui %0 : i1 to i32
    %c0_i32_0 = arith.constant 0 : i32
    %2 = arith.cmpi ne, %1, %c0_i32_0 : i32
    scf.if %2 {
      %cst_7 = arith.constant 0.000000e+00 : f32
      %13 = vector.broadcast %cst_7 : f32 to vector<2x4xf32>
      %c0_8 = arith.constant 0 : index
      %c0_9 = arith.constant 0 : index
      %14 = vector.load %arg2[%c0_8, %c0_9] : memref<2x4xf32, #tpu.memory_space<vmem>>, vector<2x4xf32>
      tpu.vector_store %arg2[%c0_8, %c0_9], %13 {strides = array<i32>} : memref<2x4xf32, #tpu.memory_space<vmem>>, vector<2x4xf32>,
    } else {
    }
    %c0 = arith.constant 0 : index
    %c0_1 = arith.constant 0 : index
    %3 = vector.load %arg1[%c0, %c0_1] : memref<512x4xf32, #tpu.memory_space<vmem>>, vector<512x4xf32>
    %cst = arith.constant dense<0.000000e+00> : vector<4xf32>
    %4 = vector.multi_reduction <add>, %3, %cst [0] : vector<512x4xf32> to vector<4xf32>
    %5 = vector.shape_cast %4 : vector<4xf32> to vector<1x4xf32>
    %6 = arith.mulf %3, %3 : vector<512x4xf32>
    %cst_2 = arith.constant dense<0.000000e+00> : vector<4xf32>
    %7 = vector.multi_reduction <add>, %6, %cst_2 [0] : vector<512x4xf32> to vector<4xf32>
    %8 = vector.shape_cast %7 : vector<4xf32> to vector<1x4xf32>
    %c0_3 = arith.constant 0 : index
    %c0_4 = arith.constant 0 : index
    %9 = vector.load %arg2[%c0_3, %c0_4] : memref<2x4xf32, #tpu.memory_space<vmem>>, vector<2x4xf32>
    %10 = tpu.concatenate %5, %8 in 0 : vector<1x4xf32>, vector<1x4xf32> -> vector<2x4xf32>
    %11 = arith.addf %9, %10 : vector<2x4xf32>
    %c0_5 = arith.constant 0 : index
    %c0_6 = arith.constant 0 : index
    %12 = vector.load %arg2[%c0_5, %c0_6] : memref<2x4xf32, #tpu.memory_space<vmem>>, vector<2x4xf32>
    tpu.vector_store %arg2[%c0_5, %c0_6], %11 {strides = array<i32>} : memref<2x4xf32, #tpu.memory_space<vmem>>, vector<2x4xf32>,
    return
  }
  func.func @transform_0(%arg0: i32) -> (i32, i32) {
    %c0_i32 = arith.constant 0 : i32
    %c0_i32_0 = arith.constant 0 : i32
    return %arg0, %c0_i32 : i32, i32
  }
  func.func @transform_1(%arg0: i32) -> (i32, i32) {
    %c0_i32 = arith.constant 0 : i32
    %c0_i32_0 = arith.constant 0 : i32
    %c0_i32_1 = arith.constant 0 : i32
    return %c0_i32, %c0_i32_0 : i32, i32
  }
}

module attributes {stable_mosaic.version = 11 : i64} {
  func.func @_stage1_proj_kernel(%arg0: i32, %arg1: memref<256x4xf32, #tpu.memory_space<vmem>>, %arg2: memref<1x4xf32, #tpu.memory_space<vmem>>, %arg3: memref<1x4xf32, #tpu.memory_space<vmem>>, %arg4: memref<9x4x8xbf16, #tpu.memory_space<vmem>>, %arg5: memref<4x8xbf16, #tpu.memory_space<vmem>>, %arg6: memref<256x8xf32, #tpu.memory_space<vmem>>, %arg7: memref<256x8xf32, #tpu.memory_space<vmem>>, %arg8: memref<1x2x8xf32, #tpu.memory_space<vmem>>, %arg9: memref<18x18x4xf32, #tpu.memory_space<vmem>>) attributes {dimension_semantics = [#tpu.dimension_semantics<parallel>], iteration_bounds = array<i64: 2>, scalar_prefetch = 0 : i64, scratch_operands = 1 : i64, tpu.core_type = #tpu.core_type<tc>, window_params = [{transform_indices = @transform_0, window_bounds = array<i64: 256, 4>}, {pipeline_mode = #tpu.pipeline_mode<synchronous>, transform_indices = @transform_1, window_bounds = array<i64: 1, 4>}, {pipeline_mode = #tpu.pipeline_mode<synchronous>, transform_indices = @transform_2, window_bounds = array<i64: 1, 4>}, {pipeline_mode = #tpu.pipeline_mode<synchronous>, transform_indices = @transform_3, window_bounds = array<i64: 9, 4, 8>}, {pipeline_mode = #tpu.pipeline_mode<synchronous>, transform_indices = @transform_4, window_bounds = array<i64: 4, 8>}, {transform_indices = @transform_5, window_bounds = array<i64: 256, 8>}, {transform_indices = @transform_6, window_bounds = array<i64: 256, 8>}, {transform_indices = @transform_7, window_bounds = array<i64: 1, 2, 8>}]} {
    %c0 = arith.constant 0 : index
    %c0_0 = arith.constant 0 : index
    %0 = vector.load %arg1[%c0, %c0_0] : memref<256x4xf32, #tpu.memory_space<vmem>>, vector<256x4xf32>
    %c0_1 = arith.constant 0 : index
    %c0_2 = arith.constant 0 : index
    %1 = vector.load %arg2[%c0_1, %c0_2] : memref<1x4xf32, #tpu.memory_space<vmem>>, vector<1x4xf32>
    %2 = vector.broadcast %1 : vector<1x4xf32> to vector<256x4xf32>
    %3 = arith.mulf %0, %2 : vector<256x4xf32>
    %c0_3 = arith.constant 0 : index
    %c0_4 = arith.constant 0 : index
    %4 = vector.load %arg3[%c0_3, %c0_4] : memref<1x4xf32, #tpu.memory_space<vmem>>, vector<1x4xf32>
    %5 = vector.broadcast %4 : vector<1x4xf32> to vector<256x4xf32>
    %6 = arith.addf %3, %5 : vector<256x4xf32>
    %cst = arith.constant 0.000000e+00 : f32
    %7 = vector.broadcast %cst : f32 to vector<256x4xf32>
    %8 = arith.maximumf %6, %7 : vector<256x4xf32>
    %9 = arith.truncf %8 : vector<256x4xf32> to vector<256x4xbf16>
    %c0_5 = arith.constant 0 : index
    %c0_6 = arith.constant 0 : index
    %10 = vector.load %arg5[%c0_5, %c0_6] : memref<4x8xbf16, #tpu.memory_space<vmem>>, vector<4x8xbf16>
    %cst_7 = arith.constant dense<0.000000e+00> : vector<256x8xf32>
    %11 = tpu.matmul %9, %10, %cst_7 {dimension_numbers = #tpu.dot_dimension_numbers<[1], [0], [0], [1], [0, 0, 1, 1], [], []>} : vector<256x4xbf16>, vector<4x8xbf16>, vector<256x8xf32> -> vector<256x8xf32>
    %c0_8 = arith.constant 0 : index
    %c0_9 = arith.constant 0 : index
    %12 = vector.load %arg7[%c0_8, %c0_9] : memref<256x8xf32, #tpu.memory_space<vmem>>, vector<256x8xf32>
    tpu.vector_store %arg7[%c0_8, %c0_9], %11 {strides = array<i32>} : memref<256x8xf32, #tpu.memory_space<vmem>>, vector<256x8xf32>,
    %cst_10 = arith.constant 0.000000e+00 : f32
    %13 = vector.broadcast %cst_10 : f32 to vector<18x18x4xf32>
    %c0_11 = arith.constant 0 : index
    %c0_12 = arith.constant 0 : index
    %c0_13 = arith.constant 0 : index
    %14 = vector.load %arg9[%c0_11, %c0_12, %c0_13] : memref<18x18x4xf32, #tpu.memory_space<vmem>>, vector<18x18x4xf32>
    tpu.vector_store %arg9[%c0_11, %c0_12, %c0_13], %13 {strides = array<i32>} : memref<18x18x4xf32, #tpu.memory_space<vmem>>, vector<18x18x4xf32>,
    %15 = vector.shape_cast %8 : vector<256x4xf32> to vector<16x16x4xf32>
    %c1 = arith.constant 1 : index
    %c1_14 = arith.constant 1 : index
    %c0_15 = arith.constant 0 : index
    %16 = vector.load %arg9[%c1, %c1_14, %c0_15] : memref<18x18x4xf32, #tpu.memory_space<vmem>>, vector<16x16x4xf32>
    tpu.vector_store %arg9[%c1, %c1_14, %c0_15], %15 {strides = array<i32>} : memref<18x18x4xf32, #tpu.memory_space<vmem>>, vector<16x16x4xf32>,
    %cst_16 = arith.constant 0.000000e+00 : f32
    %17 = vector.broadcast %cst_16 : f32 to vector<256x8xf32>
    %c0_17 = arith.constant 0 : index
    %c0_18 = arith.constant 0 : index
    %c0_19 = arith.constant 0 : index
    %18 = vector.load %arg9[%c0_17, %c0_18, %c0_19] : memref<18x18x4xf32, #tpu.memory_space<vmem>>, vector<16x16x4xf32>
    %19 = vector.shape_cast %18 : vector<16x16x4xf32> to vector<256x4xf32>
    %20 = arith.truncf %19 : vector<256x4xf32> to vector<256x4xbf16>
    %c0_20 = arith.constant 0 : index
    %c0_21 = arith.constant 0 : index
    %c0_22 = arith.constant 0 : index
    %21 = vector.load %arg4[%c0_20, %c0_21, %c0_22] : memref<9x4x8xbf16, #tpu.memory_space<vmem>>, vector<1x4x8xbf16>
    %22 = vector.shape_cast %21 : vector<1x4x8xbf16> to vector<4x8xbf16>
    %cst_23 = arith.constant dense<0.000000e+00> : vector<256x8xf32>
    %23 = tpu.matmul %20, %22, %cst_23 {dimension_numbers = #tpu.dot_dimension_numbers<[1], [0], [0], [1], [0, 0, 1, 1], [], []>} : vector<256x4xbf16>, vector<4x8xbf16>, vector<256x8xf32> -> vector<256x8xf32>
    %24 = arith.addf %17, %23 : vector<256x8xf32>
    %c0_24 = arith.constant 0 : index
    %c1_25 = arith.constant 1 : index
    %c0_26 = arith.constant 0 : index
    %25 = vector.load %arg9[%c0_24, %c1_25, %c0_26] : memref<18x18x4xf32, #tpu.memory_space<vmem>>, vector<16x16x4xf32>
    %26 = vector.shape_cast %25 : vector<16x16x4xf32> to vector<256x4xf32>
    %27 = arith.truncf %26 : vector<256x4xf32> to vector<256x4xbf16>
    %c1_27 = arith.constant 1 : index
    %c0_28 = arith.constant 0 : index
    %c0_29 = arith.constant 0 : index
    %28 = vector.load %arg4[%c1_27, %c0_28, %c0_29] : memref<9x4x8xbf16, #tpu.memory_space<vmem>>, vector<1x4x8xbf16>
    %29 = vector.shape_cast %28 : vector<1x4x8xbf16> to vector<4x8xbf16>
    %cst_30 = arith.constant dense<0.000000e+00> : vector<256x8xf32>
    %30 = tpu.matmul %27, %29, %cst_30 {dimension_numbers = #tpu.dot_dimension_numbers<[1], [0], [0], [1], [0, 0, 1, 1], [], []>} : vector<256x4xbf16>, vector<4x8xbf16>, vector<256x8xf32> -> vector<256x8xf32>
    %31 = arith.addf %24, %30 : vector<256x8xf32>
    %c0_31 = arith.constant 0 : index
    %c2 = arith.constant 2 : index
    %c0_32 = arith.constant 0 : index
    %32 = vector.load %arg9[%c0_31, %c2, %c0_32] : memref<18x18x4xf32, #tpu.memory_space<vmem>>, vector<16x16x4xf32>
    %33 = vector.shape_cast %32 : vector<16x16x4xf32> to vector<256x4xf32>
    %34 = arith.truncf %33 : vector<256x4xf32> to vector<256x4xbf16>
    %c2_33 = arith.constant 2 : index
    %c0_34 = arith.constant 0 : index
    %c0_35 = arith.constant 0 : index
    %35 = vector.load %arg4[%c2_33, %c0_34, %c0_35] : memref<9x4x8xbf16, #tpu.memory_space<vmem>>, vector<1x4x8xbf16>
    %36 = vector.shape_cast %35 : vector<1x4x8xbf16> to vector<4x8xbf16>
    %cst_36 = arith.constant dense<0.000000e+00> : vector<256x8xf32>
    %37 = tpu.matmul %34, %36, %cst_36 {dimension_numbers = #tpu.dot_dimension_numbers<[1], [0], [0], [1], [0, 0, 1, 1], [], []>} : vector<256x4xbf16>, vector<4x8xbf16>, vector<256x8xf32> -> vector<256x8xf32>
    %38 = arith.addf %31, %37 : vector<256x8xf32>
    %c1_37 = arith.constant 1 : index
    %c0_38 = arith.constant 0 : index
    %c0_39 = arith.constant 0 : index
    %39 = vector.load %arg9[%c1_37, %c0_38, %c0_39] : memref<18x18x4xf32, #tpu.memory_space<vmem>>, vector<16x16x4xf32>
    %40 = vector.shape_cast %39 : vector<16x16x4xf32> to vector<256x4xf32>
    %41 = arith.truncf %40 : vector<256x4xf32> to vector<256x4xbf16>
    %c3 = arith.constant 3 : index
    %c0_40 = arith.constant 0 : index
    %c0_41 = arith.constant 0 : index
    %42 = vector.load %arg4[%c3, %c0_40, %c0_41] : memref<9x4x8xbf16, #tpu.memory_space<vmem>>, vector<1x4x8xbf16>
    %43 = vector.shape_cast %42 : vector<1x4x8xbf16> to vector<4x8xbf16>
    %cst_42 = arith.constant dense<0.000000e+00> : vector<256x8xf32>
    %44 = tpu.matmul %41, %43, %cst_42 {dimension_numbers = #tpu.dot_dimension_numbers<[1], [0], [0], [1], [0, 0, 1, 1], [], []>} : vector<256x4xbf16>, vector<4x8xbf16>, vector<256x8xf32> -> vector<256x8xf32>
    %45 = arith.addf %38, %44 : vector<256x8xf32>
    %c1_43 = arith.constant 1 : index
    %c1_44 = arith.constant 1 : index
    %c0_45 = arith.constant 0 : index
    %46 = vector.load %arg9[%c1_43, %c1_44, %c0_45] : memref<18x18x4xf32, #tpu.memory_space<vmem>>, vector<16x16x4xf32>
    %47 = vector.shape_cast %46 : vector<16x16x4xf32> to vector<256x4xf32>
    %48 = arith.truncf %47 : vector<256x4xf32> to vector<256x4xbf16>
    %c4 = arith.constant 4 : index
    %c0_46 = arith.constant 0 : index
    %c0_47 = arith.constant 0 : index
    %49 = vector.load %arg4[%c4, %c0_46, %c0_47] : memref<9x4x8xbf16, #tpu.memory_space<vmem>>, vector<1x4x8xbf16>
    %50 = vector.shape_cast %49 : vector<1x4x8xbf16> to vector<4x8xbf16>
    %cst_48 = arith.constant dense<0.000000e+00> : vector<256x8xf32>
    %51 = tpu.matmul %48, %50, %cst_48 {dimension_numbers = #tpu.dot_dimension_numbers<[1], [0], [0], [1], [0, 0, 1, 1], [], []>} : vector<256x4xbf16>, vector<4x8xbf16>, vector<256x8xf32> -> vector<256x8xf32>
    %52 = arith.addf %45, %51 : vector<256x8xf32>
    %c1_49 = arith.constant 1 : index
    %c2_50 = arith.constant 2 : index
    %c0_51 = arith.constant 0 : index
    %53 = vector.load %arg9[%c1_49, %c2_50, %c0_51] : memref<18x18x4xf32, #tpu.memory_space<vmem>>, vector<16x16x4xf32>
    %54 = vector.shape_cast %53 : vector<16x16x4xf32> to vector<256x4xf32>
    %55 = arith.truncf %54 : vector<256x4xf32> to vector<256x4xbf16>
    %c5 = arith.constant 5 : index
    %c0_52 = arith.constant 0 : index
    %c0_53 = arith.constant 0 : index
    %56 = vector.load %arg4[%c5, %c0_52, %c0_53] : memref<9x4x8xbf16, #tpu.memory_space<vmem>>, vector<1x4x8xbf16>
    %57 = vector.shape_cast %56 : vector<1x4x8xbf16> to vector<4x8xbf16>
    %cst_54 = arith.constant dense<0.000000e+00> : vector<256x8xf32>
    %58 = tpu.matmul %55, %57, %cst_54 {dimension_numbers = #tpu.dot_dimension_numbers<[1], [0], [0], [1], [0, 0, 1, 1], [], []>} : vector<256x4xbf16>, vector<4x8xbf16>, vector<256x8xf32> -> vector<256x8xf32>
    %59 = arith.addf %52, %58 : vector<256x8xf32>
    %c2_55 = arith.constant 2 : index
    %c0_56 = arith.constant 0 : index
    %c0_57 = arith.constant 0 : index
    %60 = vector.load %arg9[%c2_55, %c0_56, %c0_57] : memref<18x18x4xf32, #tpu.memory_space<vmem>>, vector<16x16x4xf32>
    %61 = vector.shape_cast %60 : vector<16x16x4xf32> to vector<256x4xf32>
    %62 = arith.truncf %61 : vector<256x4xf32> to vector<256x4xbf16>
    %c6 = arith.constant 6 : index
    %c0_58 = arith.constant 0 : index
    %c0_59 = arith.constant 0 : index
    %63 = vector.load %arg4[%c6, %c0_58, %c0_59] : memref<9x4x8xbf16, #tpu.memory_space<vmem>>, vector<1x4x8xbf16>
    %64 = vector.shape_cast %63 : vector<1x4x8xbf16> to vector<4x8xbf16>
    %cst_60 = arith.constant dense<0.000000e+00> : vector<256x8xf32>
    %65 = tpu.matmul %62, %64, %cst_60 {dimension_numbers = #tpu.dot_dimension_numbers<[1], [0], [0], [1], [0, 0, 1, 1], [], []>} : vector<256x4xbf16>, vector<4x8xbf16>, vector<256x8xf32> -> vector<256x8xf32>
    %66 = arith.addf %59, %65 : vector<256x8xf32>
    %c2_61 = arith.constant 2 : index
    %c1_62 = arith.constant 1 : index
    %c0_63 = arith.constant 0 : index
    %67 = vector.load %arg9[%c2_61, %c1_62, %c0_63] : memref<18x18x4xf32, #tpu.memory_space<vmem>>, vector<16x16x4xf32>
    %68 = vector.shape_cast %67 : vector<16x16x4xf32> to vector<256x4xf32>
    %69 = arith.truncf %68 : vector<256x4xf32> to vector<256x4xbf16>
    %c7 = arith.constant 7 : index
    %c0_64 = arith.constant 0 : index
    %c0_65 = arith.constant 0 : index
    %70 = vector.load %arg4[%c7, %c0_64, %c0_65] : memref<9x4x8xbf16, #tpu.memory_space<vmem>>, vector<1x4x8xbf16>
    %71 = vector.shape_cast %70 : vector<1x4x8xbf16> to vector<4x8xbf16>
    %cst_66 = arith.constant dense<0.000000e+00> : vector<256x8xf32>
    %72 = tpu.matmul %69, %71, %cst_66 {dimension_numbers = #tpu.dot_dimension_numbers<[1], [0], [0], [1], [0, 0, 1, 1], [], []>} : vector<256x4xbf16>, vector<4x8xbf16>, vector<256x8xf32> -> vector<256x8xf32>
    %73 = arith.addf %66, %72 : vector<256x8xf32>
    %c2_67 = arith.constant 2 : index
    %c2_68 = arith.constant 2 : index
    %c0_69 = arith.constant 0 : index
    %74 = vector.load %arg9[%c2_67, %c2_68, %c0_69] : memref<18x18x4xf32, #tpu.memory_space<vmem>>, vector<16x16x4xf32>
    %75 = vector.shape_cast %74 : vector<16x16x4xf32> to vector<256x4xf32>
    %76 = arith.truncf %75 : vector<256x4xf32> to vector<256x4xbf16>
    %c8 = arith.constant 8 : index
    %c0_70 = arith.constant 0 : index
    %c0_71 = arith.constant 0 : index
    %77 = vector.load %arg4[%c8, %c0_70, %c0_71] : memref<9x4x8xbf16, #tpu.memory_space<vmem>>, vector<1x4x8xbf16>
    %78 = vector.shape_cast %77 : vector<1x4x8xbf16> to vector<4x8xbf16>
    %cst_72 = arith.constant dense<0.000000e+00> : vector<256x8xf32>
    %79 = tpu.matmul %76, %78, %cst_72 {dimension_numbers = #tpu.dot_dimension_numbers<[1], [0], [0], [1], [0, 0, 1, 1], [], []>} : vector<256x4xbf16>, vector<4x8xbf16>, vector<256x8xf32> -> vector<256x8xf32>
    %80 = arith.addf %73, %79 : vector<256x8xf32>
    %c0_73 = arith.constant 0 : index
    %c0_74 = arith.constant 0 : index
    %81 = vector.load %arg6[%c0_73, %c0_74] : memref<256x8xf32, #tpu.memory_space<vmem>>, vector<256x8xf32>
    tpu.vector_store %arg6[%c0_73, %c0_74], %80 {strides = array<i32>} : memref<256x8xf32, #tpu.memory_space<vmem>>, vector<256x8xf32>,
    %cst_75 = arith.constant dense<0.000000e+00> : vector<8xf32>
    %82 = vector.multi_reduction <add>, %80, %cst_75 [0] : vector<256x8xf32> to vector<8xf32>
    %83 = vector.shape_cast %82 : vector<8xf32> to vector<1x8xf32>
    %84 = arith.mulf %80, %80 : vector<256x8xf32>
    %cst_76 = arith.constant dense<0.000000e+00> : vector<8xf32>
    %85 = vector.multi_reduction <add>, %84, %cst_76 [0] : vector<256x8xf32> to vector<8xf32>
    %86 = vector.shape_cast %85 : vector<8xf32> to vector<1x8xf32>
    %87 = tpu.concatenate %83, %86 in 0 : vector<1x8xf32>, vector<1x8xf32> -> vector<2x8xf32>
    %c0_77 = arith.constant 0 : index
    %c0_78 = arith.constant 0 : index
    %c0_79 = arith.constant 0 : index
    %88 = vector.load %arg8[%c0_77, %c0_78, %c0_79] : memref<1x2x8xf32, #tpu.memory_space<vmem>>, vector<1x2x8xf32>
    %89 = vector.shape_cast %88 : vector<1x2x8xf32> to vector<2x8xf32>
    %90 = vector.shape_cast %87 : vector<2x8xf32> to vector<1x2x8xf32>
    tpu.vector_store %arg8[%c0_77, %c0_78, %c0_79], %90 {strides = array<i32>} : memref<1x2x8xf32, #tpu.memory_space<vmem>>, vector<1x2x8xf32>,
    return
  }
  func.func @transform_0(%arg0: i32) -> (i32, i32) {
    %c0_i32 = arith.constant 0 : i32
    %c0_i32_0 = arith.constant 0 : i32
    return %arg0, %c0_i32 : i32, i32
  }
  func.func @transform_1(%arg0: i32) -> (i32, i32) {
    %c0_i32 = arith.constant 0 : i32
    %c0_i32_0 = arith.constant 0 : i32
    %c0_i32_1 = arith.constant 0 : i32
    return %c0_i32, %c0_i32_0 : i32, i32
  }
  func.func @transform_2(%arg0: i32) -> (i32, i32) {
    %c0_i32 = arith.constant 0 : i32
    %c0_i32_0 = arith.constant 0 : i32
    %c0_i32_1 = arith.constant 0 : i32
    return %c0_i32, %c0_i32_0 : i32, i32
  }
  func.func @transform_3(%arg0: i32) -> (i32, i32, i32) {
    %c0_i32 = arith.constant 0 : i32
    %c0_i32_0 = arith.constant 0 : i32
    %c0_i32_1 = arith.constant 0 : i32
    %c0_i32_2 = arith.constant 0 : i32
    return %c0_i32, %c0_i32_0, %c0_i32_1 : i32, i32, i32
  }
  func.func @transform_4(%arg0: i32) -> (i32, i32) {
    %c0_i32 = arith.constant 0 : i32
    %c0_i32_0 = arith.constant 0 : i32
    %c0_i32_1 = arith.constant 0 : i32
    return %c0_i32, %c0_i32_0 : i32, i32
  }
  func.func @transform_5(%arg0: i32) -> (i32, i32) {
    %c0_i32 = arith.constant 0 : i32
    %c0_i32_0 = arith.constant 0 : i32
    return %arg0, %c0_i32 : i32, i32
  }
  func.func @transform_6(%arg0: i32) -> (i32, i32) {
    %c0_i32 = arith.constant 0 : i32
    %c0_i32_0 = arith.constant 0 : i32
    return %arg0, %c0_i32 : i32, i32
  }
  func.func @transform_7(%arg0: i32) -> (i32, i32, i32) {
    %c0_i32 = arith.constant 0 : i32
    %c0_i32_0 = arith.constant 0 : i32
    %c0_i32_1 = arith.constant 0 : i32
    return %arg0, %c0_i32, %c0_i32_0 : i32, i32, i32
  }
}

module attributes {stable_mosaic.version = 11 : i64} {
  func.func @_stage2_kernel(%arg0: i32, %arg1: memref<256x8xf32, #tpu.memory_space<vmem>>, %arg2: memref<1x8xf32, #tpu.memory_space<vmem>>, %arg3: memref<1x8xf32, #tpu.memory_space<vmem>>, %arg4: memref<9x8x8xbf16, #tpu.memory_space<vmem>>, %arg5: memref<256x8xf32, #tpu.memory_space<vmem>>, %arg6: memref<256x8xf32, #tpu.memory_space<vmem>>, %arg7: memref<18x18x8xf32, #tpu.memory_space<vmem>>) attributes {dimension_semantics = [#tpu.dimension_semantics<parallel>], iteration_bounds = array<i64: 2>, scalar_prefetch = 0 : i64, scratch_operands = 1 : i64, tpu.core_type = #tpu.core_type<tc>, window_params = [{transform_indices = @transform_0, window_bounds = array<i64: 256, 8>}, {pipeline_mode = #tpu.pipeline_mode<synchronous>, transform_indices = @transform_1, window_bounds = array<i64: 1, 8>}, {pipeline_mode = #tpu.pipeline_mode<synchronous>, transform_indices = @transform_2, window_bounds = array<i64: 1, 8>}, {pipeline_mode = #tpu.pipeline_mode<synchronous>, transform_indices = @transform_3, window_bounds = array<i64: 9, 8, 8>}, {transform_indices = @transform_4, window_bounds = array<i64: 256, 8>}, {transform_indices = @transform_5, window_bounds = array<i64: 256, 8>}]} {
    %c0 = arith.constant 0 : index
    %c0_0 = arith.constant 0 : index
    %0 = vector.load %arg1[%c0, %c0_0] : memref<256x8xf32, #tpu.memory_space<vmem>>, vector<256x8xf32>
    %c0_1 = arith.constant 0 : index
    %c0_2 = arith.constant 0 : index
    %1 = vector.load %arg2[%c0_1, %c0_2] : memref<1x8xf32, #tpu.memory_space<vmem>>, vector<1x8xf32>
    %2 = vector.broadcast %1 : vector<1x8xf32> to vector<256x8xf32>
    %3 = arith.mulf %0, %2 : vector<256x8xf32>
    %c0_3 = arith.constant 0 : index
    %c0_4 = arith.constant 0 : index
    %4 = vector.load %arg3[%c0_3, %c0_4] : memref<1x8xf32, #tpu.memory_space<vmem>>, vector<1x8xf32>
    %5 = vector.broadcast %4 : vector<1x8xf32> to vector<256x8xf32>
    %6 = arith.addf %3, %5 : vector<256x8xf32>
    %cst = arith.constant 0.000000e+00 : f32
    %7 = vector.broadcast %cst : f32 to vector<256x8xf32>
    %8 = arith.maximumf %6, %7 : vector<256x8xf32>
    %cst_5 = arith.constant 0.000000e+00 : f32
    %9 = vector.broadcast %cst_5 : f32 to vector<18x18x8xf32>
    %c0_6 = arith.constant 0 : index
    %c0_7 = arith.constant 0 : index
    %c0_8 = arith.constant 0 : index
    %10 = vector.load %arg7[%c0_6, %c0_7, %c0_8] : memref<18x18x8xf32, #tpu.memory_space<vmem>>, vector<18x18x8xf32>
    tpu.vector_store %arg7[%c0_6, %c0_7, %c0_8], %9 {strides = array<i32>} : memref<18x18x8xf32, #tpu.memory_space<vmem>>, vector<18x18x8xf32>,
    %11 = vector.shape_cast %8 : vector<256x8xf32> to vector<16x16x8xf32>
    %c1 = arith.constant 1 : index
    %c1_9 = arith.constant 1 : index
    %c0_10 = arith.constant 0 : index
    %12 = vector.load %arg7[%c1, %c1_9, %c0_10] : memref<18x18x8xf32, #tpu.memory_space<vmem>>, vector<16x16x8xf32>
    tpu.vector_store %arg7[%c1, %c1_9, %c0_10], %11 {strides = array<i32>} : memref<18x18x8xf32, #tpu.memory_space<vmem>>, vector<16x16x8xf32>,
    %c0_11 = arith.constant 0 : index
    %c0_12 = arith.constant 0 : index
    %13 = vector.load %arg5[%c0_11, %c0_12] : memref<256x8xf32, #tpu.memory_space<vmem>>, vector<256x8xf32>
    %c0_13 = arith.constant 0 : index
    %c0_14 = arith.constant 0 : index
    %c0_15 = arith.constant 0 : index
    %14 = vector.load %arg7[%c0_13, %c0_14, %c0_15] : memref<18x18x8xf32, #tpu.memory_space<vmem>>, vector<16x16x8xf32>
    %15 = vector.shape_cast %14 : vector<16x16x8xf32> to vector<256x8xf32>
    %16 = arith.truncf %15 : vector<256x8xf32> to vector<256x8xbf16>
    %c0_16 = arith.constant 0 : index
    %c0_17 = arith.constant 0 : index
    %c0_18 = arith.constant 0 : index
    %17 = vector.load %arg4[%c0_16, %c0_17, %c0_18] : memref<9x8x8xbf16, #tpu.memory_space<vmem>>, vector<1x8x8xbf16>
    %18 = vector.shape_cast %17 : vector<1x8x8xbf16> to vector<8x8xbf16>
    %cst_19 = arith.constant dense<0.000000e+00> : vector<256x8xf32>
    %19 = tpu.matmul %16, %18, %cst_19 {dimension_numbers = #tpu.dot_dimension_numbers<[1], [0], [0], [1], [0, 0, 1, 1], [], []>} : vector<256x8xbf16>, vector<8x8xbf16>, vector<256x8xf32> -> vector<256x8xf32>
    %20 = arith.addf %13, %19 : vector<256x8xf32>
    %c0_20 = arith.constant 0 : index
    %c1_21 = arith.constant 1 : index
    %c0_22 = arith.constant 0 : index
    %21 = vector.load %arg7[%c0_20, %c1_21, %c0_22] : memref<18x18x8xf32, #tpu.memory_space<vmem>>, vector<16x16x8xf32>
    %22 = vector.shape_cast %21 : vector<16x16x8xf32> to vector<256x8xf32>
    %23 = arith.truncf %22 : vector<256x8xf32> to vector<256x8xbf16>
    %c1_23 = arith.constant 1 : index
    %c0_24 = arith.constant 0 : index
    %c0_25 = arith.constant 0 : index
    %24 = vector.load %arg4[%c1_23, %c0_24, %c0_25] : memref<9x8x8xbf16, #tpu.memory_space<vmem>>, vector<1x8x8xbf16>
    %25 = vector.shape_cast %24 : vector<1x8x8xbf16> to vector<8x8xbf16>
    %cst_26 = arith.constant dense<0.000000e+00> : vector<256x8xf32>
    %26 = tpu.matmul %23, %25, %cst_26 {dimension_numbers = #tpu.dot_dimension_numbers<[1], [0], [0], [1], [0, 0, 1, 1], [], []>} : vector<256x8xbf16>, vector<8x8xbf16>, vector<256x8xf32> -> vector<256x8xf32>
    %27 = arith.addf %20, %26 : vector<256x8xf32>
    %c0_27 = arith.constant 0 : index
    %c2 = arith.constant 2 : index
    %c0_28 = arith.constant 0 : index
    %28 = vector.load %arg7[%c0_27, %c2, %c0_28] : memref<18x18x8xf32, #tpu.memory_space<vmem>>, vector<16x16x8xf32>
    %29 = vector.shape_cast %28 : vector<16x16x8xf32> to vector<256x8xf32>
    %30 = arith.truncf %29 : vector<256x8xf32> to vector<256x8xbf16>
    %c2_29 = arith.constant 2 : index
    %c0_30 = arith.constant 0 : index
    %c0_31 = arith.constant 0 : index
    %31 = vector.load %arg4[%c2_29, %c0_30, %c0_31] : memref<9x8x8xbf16, #tpu.memory_space<vmem>>, vector<1x8x8xbf16>
    %32 = vector.shape_cast %31 : vector<1x8x8xbf16> to vector<8x8xbf16>
    %cst_32 = arith.constant dense<0.000000e+00> : vector<256x8xf32>
    %33 = tpu.matmul %30, %32, %cst_32 {dimension_numbers = #tpu.dot_dimension_numbers<[1], [0], [0], [1], [0, 0, 1, 1], [], []>} : vector<256x8xbf16>, vector<8x8xbf16>, vector<256x8xf32> -> vector<256x8xf32>
    %34 = arith.addf %27, %33 : vector<256x8xf32>
    %c1_33 = arith.constant 1 : index
    %c0_34 = arith.constant 0 : index
    %c0_35 = arith.constant 0 : index
    %35 = vector.load %arg7[%c1_33, %c0_34, %c0_35] : memref<18x18x8xf32, #tpu.memory_space<vmem>>, vector<16x16x8xf32>
    %36 = vector.shape_cast %35 : vector<16x16x8xf32> to vector<256x8xf32>
    %37 = arith.truncf %36 : vector<256x8xf32> to vector<256x8xbf16>
    %c3 = arith.constant 3 : index
    %c0_36 = arith.constant 0 : index
    %c0_37 = arith.constant 0 : index
    %38 = vector.load %arg4[%c3, %c0_36, %c0_37] : memref<9x8x8xbf16, #tpu.memory_space<vmem>>, vector<1x8x8xbf16>
    %39 = vector.shape_cast %38 : vector<1x8x8xbf16> to vector<8x8xbf16>
    %cst_38 = arith.constant dense<0.000000e+00> : vector<256x8xf32>
    %40 = tpu.matmul %37, %39, %cst_38 {dimension_numbers = #tpu.dot_dimension_numbers<[1], [0], [0], [1], [0, 0, 1, 1], [], []>} : vector<256x8xbf16>, vector<8x8xbf16>, vector<256x8xf32> -> vector<256x8xf32>
    %41 = arith.addf %34, %40 : vector<256x8xf32>
    %c1_39 = arith.constant 1 : index
    %c1_40 = arith.constant 1 : index
    %c0_41 = arith.constant 0 : index
    %42 = vector.load %arg7[%c1_39, %c1_40, %c0_41] : memref<18x18x8xf32, #tpu.memory_space<vmem>>, vector<16x16x8xf32>
    %43 = vector.shape_cast %42 : vector<16x16x8xf32> to vector<256x8xf32>
    %44 = arith.truncf %43 : vector<256x8xf32> to vector<256x8xbf16>
    %c4 = arith.constant 4 : index
    %c0_42 = arith.constant 0 : index
    %c0_43 = arith.constant 0 : index
    %45 = vector.load %arg4[%c4, %c0_42, %c0_43] : memref<9x8x8xbf16, #tpu.memory_space<vmem>>, vector<1x8x8xbf16>
    %46 = vector.shape_cast %45 : vector<1x8x8xbf16> to vector<8x8xbf16>
    %cst_44 = arith.constant dense<0.000000e+00> : vector<256x8xf32>
    %47 = tpu.matmul %44, %46, %cst_44 {dimension_numbers = #tpu.dot_dimension_numbers<[1], [0], [0], [1], [0, 0, 1, 1], [], []>} : vector<256x8xbf16>, vector<8x8xbf16>, vector<256x8xf32> -> vector<256x8xf32>
    %48 = arith.addf %41, %47 : vector<256x8xf32>
    %c1_45 = arith.constant 1 : index
    %c2_46 = arith.constant 2 : index
    %c0_47 = arith.constant 0 : index
    %49 = vector.load %arg7[%c1_45, %c2_46, %c0_47] : memref<18x18x8xf32, #tpu.memory_space<vmem>>, vector<16x16x8xf32>
    %50 = vector.shape_cast %49 : vector<16x16x8xf32> to vector<256x8xf32>
    %51 = arith.truncf %50 : vector<256x8xf32> to vector<256x8xbf16>
    %c5 = arith.constant 5 : index
    %c0_48 = arith.constant 0 : index
    %c0_49 = arith.constant 0 : index
    %52 = vector.load %arg4[%c5, %c0_48, %c0_49] : memref<9x8x8xbf16, #tpu.memory_space<vmem>>, vector<1x8x8xbf16>
    %53 = vector.shape_cast %52 : vector<1x8x8xbf16> to vector<8x8xbf16>
    %cst_50 = arith.constant dense<0.000000e+00> : vector<256x8xf32>
    %54 = tpu.matmul %51, %53, %cst_50 {dimension_numbers = #tpu.dot_dimension_numbers<[1], [0], [0], [1], [0, 0, 1, 1], [], []>} : vector<256x8xbf16>, vector<8x8xbf16>, vector<256x8xf32> -> vector<256x8xf32>
    %55 = arith.addf %48, %54 : vector<256x8xf32>
    %c2_51 = arith.constant 2 : index
    %c0_52 = arith.constant 0 : index
    %c0_53 = arith.constant 0 : index
    %56 = vector.load %arg7[%c2_51, %c0_52, %c0_53] : memref<18x18x8xf32, #tpu.memory_space<vmem>>, vector<16x16x8xf32>
    %57 = vector.shape_cast %56 : vector<16x16x8xf32> to vector<256x8xf32>
    %58 = arith.truncf %57 : vector<256x8xf32> to vector<256x8xbf16>
    %c6 = arith.constant 6 : index
    %c0_54 = arith.constant 0 : index
    %c0_55 = arith.constant 0 : index
    %59 = vector.load %arg4[%c6, %c0_54, %c0_55] : memref<9x8x8xbf16, #tpu.memory_space<vmem>>, vector<1x8x8xbf16>
    %60 = vector.shape_cast %59 : vector<1x8x8xbf16> to vector<8x8xbf16>
    %cst_56 = arith.constant dense<0.000000e+00> : vector<256x8xf32>
    %61 = tpu.matmul %58, %60, %cst_56 {dimension_numbers = #tpu.dot_dimension_numbers<[1], [0], [0], [1], [0, 0, 1, 1], [], []>} : vector<256x8xbf16>, vector<8x8xbf16>, vector<256x8xf32> -> vector<256x8xf32>
    %62 = arith.addf %55, %61 : vector<256x8xf32>
    %c2_57 = arith.constant 2 : index
    %c1_58 = arith.constant 1 : index
    %c0_59 = arith.constant 0 : index
    %63 = vector.load %arg7[%c2_57, %c1_58, %c0_59] : memref<18x18x8xf32, #tpu.memory_space<vmem>>, vector<16x16x8xf32>
    %64 = vector.shape_cast %63 : vector<16x16x8xf32> to vector<256x8xf32>
    %65 = arith.truncf %64 : vector<256x8xf32> to vector<256x8xbf16>
    %c7 = arith.constant 7 : index
    %c0_60 = arith.constant 0 : index
    %c0_61 = arith.constant 0 : index
    %66 = vector.load %arg4[%c7, %c0_60, %c0_61] : memref<9x8x8xbf16, #tpu.memory_space<vmem>>, vector<1x8x8xbf16>
    %67 = vector.shape_cast %66 : vector<1x8x8xbf16> to vector<8x8xbf16>
    %cst_62 = arith.constant dense<0.000000e+00> : vector<256x8xf32>
    %68 = tpu.matmul %65, %67, %cst_62 {dimension_numbers = #tpu.dot_dimension_numbers<[1], [0], [0], [1], [0, 0, 1, 1], [], []>} : vector<256x8xbf16>, vector<8x8xbf16>, vector<256x8xf32> -> vector<256x8xf32>
    %69 = arith.addf %62, %68 : vector<256x8xf32>
    %c2_63 = arith.constant 2 : index
    %c2_64 = arith.constant 2 : index
    %c0_65 = arith.constant 0 : index
    %70 = vector.load %arg7[%c2_63, %c2_64, %c0_65] : memref<18x18x8xf32, #tpu.memory_space<vmem>>, vector<16x16x8xf32>
    %71 = vector.shape_cast %70 : vector<16x16x8xf32> to vector<256x8xf32>
    %72 = arith.truncf %71 : vector<256x8xf32> to vector<256x8xbf16>
    %c8 = arith.constant 8 : index
    %c0_66 = arith.constant 0 : index
    %c0_67 = arith.constant 0 : index
    %73 = vector.load %arg4[%c8, %c0_66, %c0_67] : memref<9x8x8xbf16, #tpu.memory_space<vmem>>, vector<1x8x8xbf16>
    %74 = vector.shape_cast %73 : vector<1x8x8xbf16> to vector<8x8xbf16>
    %cst_68 = arith.constant dense<0.000000e+00> : vector<256x8xf32>
    %75 = tpu.matmul %72, %74, %cst_68 {dimension_numbers = #tpu.dot_dimension_numbers<[1], [0], [0], [1], [0, 0, 1, 1], [], []>} : vector<256x8xbf16>, vector<8x8xbf16>, vector<256x8xf32> -> vector<256x8xf32>
    %76 = arith.addf %69, %75 : vector<256x8xf32>
    %c0_69 = arith.constant 0 : index
    %c0_70 = arith.constant 0 : index
    %77 = vector.load %arg6[%c0_69, %c0_70] : memref<256x8xf32, #tpu.memory_space<vmem>>, vector<256x8xf32>
    tpu.vector_store %arg6[%c0_69, %c0_70], %76 {strides = array<i32>} : memref<256x8xf32, #tpu.memory_space<vmem>>, vector<256x8xf32>,
    return
  }
  func.func @transform_0(%arg0: i32) -> (i32, i32) {
    %c0_i32 = arith.constant 0 : i32
    %c0_i32_0 = arith.constant 0 : i32
    return %arg0, %c0_i32 : i32, i32
  }
  func.func @transform_1(%arg0: i32) -> (i32, i32) {
    %c0_i32 = arith.constant 0 : i32
    %c0_i32_0 = arith.constant 0 : i32
    %c0_i32_1 = arith.constant 0 : i32
    return %c0_i32, %c0_i32_0 : i32, i32
  }
  func.func @transform_2(%arg0: i32) -> (i32, i32) {
    %c0_i32 = arith.constant 0 : i32
    %c0_i32_0 = arith.constant 0 : i32
    %c0_i32_1 = arith.constant 0 : i32
    return %c0_i32, %c0_i32_0 : i32, i32
  }
  func.func @transform_3(%arg0: i32) -> (i32, i32, i32) {
    %c0_i32 = arith.constant 0 : i32
    %c0_i32_0 = arith.constant 0 : i32
    %c0_i32_1 = arith.constant 0 : i32
    %c0_i32_2 = arith.constant 0 : i32
    return %c0_i32, %c0_i32_0, %c0_i32_1 : i32, i32, i32
  }
  func.func @transform_4(%arg0: i32) -> (i32, i32) {
    %c0_i32 = arith.constant 0 : i32
    %c0_i32_0 = arith.constant 0 : i32
    return %arg0, %c0_i32 : i32, i32
  }
  func.func @transform_5(%arg0: i32) -> (i32, i32) {
    %c0_i32 = arith.constant 0 : i32
    %c0_i32_0 = arith.constant 0 : i32
    return %arg0, %c0_i32 : i32, i32
  }
}

</mosaic_0001>

<bundles_post_ra>
// kernel: preact_block_forward.3
= control target key start
LH: loop header
LB: loop body
LE: loop exit
PB: predicated region body
PF: predicated region fallthrough
CT: control target
= control target key end

     0   :  { %vm12_vm0 = vcmask 25600   ;;  %vm78_vm1 = vcmask 31744   ;;  %v420_v0 = vmov 0.0   ;;  %vm410_vm2 = vcmask 1040384   ;;  %s1294_s0 = inlined_call_operand.vmem [shape: f32[512,4], index: 0, kind: input, shape index: {}]   ;;  %s1295_s1 = inlined_call_operand.vmem [shape: f32[2,4], index: 1, kind: output, shape index: {}]  }
   0x1   :  { %13 = vst.msk [vmem:[%s1295_s1] sm:$0x3] %vm12_vm0, %v420_v0  ;;  %v438_v1 = vld [vmem:[%s1294_s0] sm:$0xff]  ;;  %v443_v2 = vld [vmem:[%s1294_s0 + $0x8] sm:$0xff]  ;;  %v448_v3 = vld [vmem:[%s1294_s0 + $0x10] sm:$0xff] }
   0x2   :  { %v79_v4 = vsel %vm78_vm1, %v438_v1, 0.0  ;;  %v80_v5 = vsel %vm78_vm1, %v443_v2, 0.0  ;;  %v82_v6 = vsel %vm78_vm1, %v448_v3, 0.0  ;;  %v459_v7 = vld [vmem:[%s1294_s0 + $0x18] sm:$0xff]  ;;  %v466_v10 = vld [vmem:[%s1294_s0 + $0x20] sm:$0xff]  ;;  %v473_v13 = vld [vmem:[%s1294_s0 + $0x28] sm:$0xff] }
   0x3   :  { %v81_v8 = vadd.f32 %v80_v5, %v79_v4  ;;  %v84_v9 = vsel %vm78_vm1, %v459_v7, 0.0  ;;  %v86_v12 = vsel %vm78_vm1, %v466_v10, 0.0  ;;  %v88_v15 = vsel %vm78_vm1, %v473_v13, 0.0  ;;  %v480_v16 = vld [vmem:[%s1294_s0 + $0x30] sm:$0xff]  ;;  %v485_v18 = vld [vmem:[%s1294_s0 + $0x38] sm:$0xff]  ;;  %v490_v19 = vld [vmem:[%s1294_s0 + $0x40] sm:$0xff] }
   0x4   :  { %v90_v20 = vsel %vm78_vm1, %v480_v16, 0.0  ;;  %v497_v21 = vld [vmem:[%s1294_s0 + $0x48] sm:$0xff]  ;;  %v502_v22 = vld [vmem:[%s1294_s0 + $0x50] sm:$0xff]  ;;  %v507_v23 = vld [vmem:[%s1294_s0 + $0x58] sm:$0xff]  ;;  %v92_v25 = vsel %vm78_vm1, %v485_v18, 0.0  ;;  %v94_v26 = vsel %vm78_vm1, %v490_v19, 0.0 }
   0x5   :  { %v83_v11 = vadd.f32 %v82_v6, %v81_v8  ;;  %v516_v27 = vld [vmem:[%s1294_s0 + $0x108] sm:$0xff]  ;;  %v521_v28 = vld [vmem:[%s1294_s0 + $0x110] sm:$0xff]  ;;  %v526_v29 = vld [vmem:[%s1294_s0 + $0x118] sm:$0xff]  ;;  %v96_v30 = vsel %vm78_vm1, %v497_v21, 0.0  ;;  %v98_v31 = vsel %vm78_vm1, %v502_v22, 0.0  ;;  %v534_v32 = vsel %vm78_vm1, %v507_v23, 0.0 }
   0x6   :  { %v539_v33 = vld [vmem:[%s1294_s0 + $0x120] sm:$0xff]  ;;  %v544_v34 = vld [vmem:[%s1294_s0 + $0x128] sm:$0xff]  ;;  %v549_v35 = vld [vmem:[%s1294_s0 + $0x130] sm:$0xff]  ;;  %v553_v37 = vsel %vm78_vm1, %v516_v27, 0.0  ;;  %v557_v38 = vsel %vm78_vm1, %v521_v28, 0.0  ;;  %v561_v39 = vsel %vm78_vm1, %v526_v29, 0.0 }
   0x7   :  { %v85_v14 = vadd.f32 %v84_v9, %v83_v11  ;;  %1314 = vst [vmem:[#allocation2_spill] sm:$0xff] %v553_v37  ;;  %1315 = vst [vmem:[#allocation3_spill] sm:$0xff] %v557_v38  ;;  %v566_v40 = vld [vmem:[%s1294_s0 + $0x138] sm:$0xff]  ;;  %v571_v41 = vld [vmem:[%s1294_s0 + $0x140] sm:$0xff]  ;;  %v580_v43 = vsel %vm78_vm1, %v539_v33, 0.0  ;;  %v584_v44 = vsel %vm78_vm1, %v544_v34, 0.0  ;;  %v214_v37 = vmul.f32 %v448_v3, %v448_v3 }
   0x8   :  { %1316 = vst [vmem:[#allocation4_spill] sm:$0xff] %v561_v39  ;;  %v576_v42 = vld [vmem:[%s1294_s0 + $0x148] sm:$0xff]  ;;  %1317 = vst [vmem:[#allocation5_spill] sm:$0xff] %v580_v43  ;;  %v588_v45 = vsel %vm78_vm1, %v549_v35, 0.0  ;;  %v593_v46 = vld [vmem:[%s1294_s0 + $0x150] sm:$0xff]  ;;  %v607_v50 = vsel %vm78_vm1, %v566_v40, 0.0 }
   0x9   :  { %v87_v17 = vadd.f32 %v86_v12, %v85_v14  ;;  %1318 = vst [vmem:[#allocation6_spill] sm:$0xff] %v584_v44  ;;  %1319 = vst [vmem:[#allocation7_spill] sm:$0xff] %v588_v45  ;;  %v598_v47 = vld [vmem:[%s1294_s0 + $0x158] sm:$0xff]  ;;  %v603_v48 = vld [vmem:[%s1294_s0 + $0x160] sm:$0xff]  ;;  %v611_v51 = vsel %vm78_vm1, %v571_v41, 0.0  ;;  %v615_v52 = vsel %vm78_vm1, %v576_v42, 0.0 }
   0xa   :  { %1320 = vst [vmem:[#allocation8_spill] sm:$0xff] %v607_v50  ;;  %1321 = vst [vmem:[#allocation9_spill] sm:$0xff] %v611_v51  ;;  %v620_v53 = vld [vmem:[%s1294_s0 + $0x168] sm:$0xff]  ;;  %v625_v54 = vld [vmem:[%s1294_s0 + $0x170] sm:$0xff]  ;;  %v634_v56 = vsel %vm78_vm1, %v593_v46, 0.0  ;;  %v638_v57 = vsel %vm78_vm1, %v598_v47, 0.0 }
   0xb   :  { %v89_v24 = vadd.f32 %v88_v15, %v87_v17  ;;  %1322 = vst [vmem:[#allocation10_spill] sm:$0xff] %v615_v52  ;;  %v630_v55 = vld [vmem:[%s1294_s0 + $0x178] sm:$0xff]  ;;  %1323 = vst [vmem:[#allocation11_spill] sm:$0xff] %v634_v56  ;;  %v642_v58 = vsel %vm78_vm1, %v603_v48, 0.0  ;;  %v647_v59 = vld [vmem:[%s1294_s0 + $0x180] sm:$0xff]  ;;  %v661_v63 = vsel %vm78_vm1, %v620_v53, 0.0 }
   0xc   :  { %1324 = vst [vmem:[#allocation12_spill] sm:$0xff] %v638_v57  ;;  %1325 = vst [vmem:[#allocation13_spill] sm:$0xff] %v642_v58  ;;  %v652_v60 = vld [vmem:[%s1294_s0 + $0x188] sm:$0xff]  ;;  %v657_v61 = vld [vmem:[%s1294_s0 + $0x190] sm:$0xff]  ;;  %v665_v0 = vsel %vm78_vm1, %v625_v54, 0.0  ;;  %v669_v4 = vsel %vm78_vm1, %v630_v55, 0.0 }
   0xd   :  { %v91_v36 = vadd.f32 %v90_v20, %v89_v24  ;;  %1326 = vst [vmem:[#allocation14_spill] sm:$0xff] %v661_v63  ;;  %1327 = vst [vmem:[#allocation15_spill] sm:$0xff] %v665_v0  ;;  %v674_v5 = vld [vmem:[%s1294_s0 + $0x198] sm:$0xff]  ;;  %v679_v6 = vld [vmem:[%s1294_s0 + $0x1a0] sm:$0xff]  ;;  %v688_v9 = vsel %vm78_vm1, %v647_v59, 0.0  ;;  %v692_v11 = vsel %vm78_vm1, %v652_v60, 0.0 }
   0xe   :  { %1328 = vst [vmem:[#allocation16_spill] sm:$0xff] %v669_v4  ;;  %v684_v8 = vld [vmem:[%s1294_s0 + $0x1a8] sm:$0xff]  ;;  %1329 = vst [vmem:[#allocation17_spill] sm:$0xff] %v688_v9  ;;  %v696_v12 = vsel %vm78_vm1, %v657_v61, 0.0  ;;  %v701_v14 = vld [vmem:[%s1294_s0 + $0x60] sm:$0xff] }
   0xf   :  { %v93_v49 = vadd.f32 %v92_v25, %v91_v36  ;;  %1330 = vst [vmem:[#allocation18_spill] sm:$0xff] %v692_v11  ;;  %1331 = vst [vmem:[#allocation19_spill] sm:$0xff] %v696_v12  ;;  %v706_v15 = vld [vmem:[%s1294_s0 + $0x1b0] sm:$0xff]  ;;  %v711_v17 = vld [vmem:[%s1294_s0 + $0x1b8] sm:$0xff]  ;;  %v720_v25 = vsel %vm78_vm1, %v674_v5, 0.0  ;;  %v728_v36 = vsel %vm78_vm1, %v684_v8, 0.0 }
  0x10   :  { %v716_v20 = vld [vmem:[%s1294_s0 + $0x1c0] sm:$0xff]  ;;  %1332 = vst [vmem:[#allocation20_spill] sm:$0xff] %v720_v25  ;;  %1334 = vst [vmem:[#allocation22_spill] sm:$0xff] %v728_v36  ;;  %v751_v36 = vsel %vm78_vm1, %v711_v17, 0.0  ;;  %v765_v11 = vld [vmem:[%s1294_s0 + $0x1e8] sm:$0xff] }
  0x11   :  { %v95_v62 = vadd.f32 %v94_v26, %v93_v49  ;;  %v724_v26 = vsel %vm78_vm1, %v679_v6, 0.0  ;;  %v733_v49 = vld [vmem:[%s1294_s0 + $0x1c8] sm:$0xff]  ;;  %1336 = vst [vmem:[#allocation24_spill] sm:$0xff] %v751_v36  ;;  %v755_v25 = vsel %vm78_vm1, %v716_v20, 0.0  ;;  %v760_v12 = vld [vmem:[%s1294_s0 + $0x1e0] sm:$0xff]  ;;  %v787_v0 = vld [vmem:[%s1294_s0 + $0x1f8] sm:$0xff] }
  0x12   :  { %1333 = vst [vmem:[#allocation21_spill] sm:$0xff] %v724_v26  ;;  %v747_v26 = vsel %vm78_vm1, %v706_v15, 0.0  ;;  %1337 = vst [vmem:[#allocation25_spill] sm:$0xff] %v755_v25  ;;  %v774_v9 = vsel %vm78_vm1, %v733_v49, 0.0  ;;  %v809_v58 = vsel %vm78_vm1, %v787_v0, 0.0  ;;  %v838_v56 = vld [vmem:[%s1294_s0 + $0x90] sm:$0xff] }
  0x13   :  { %v97_v24 = vadd.f32 %v96_v30, %v95_v62  ;;  %v738_v30 = vld [vmem:[%s1294_s0 + $0x1d0] sm:$0xff]  ;;  %v743_v62 = vld [vmem:[%s1294_s0 + $0x1d8] sm:$0xff]  ;;  %1335 = vst [vmem:[#allocation23_spill] sm:$0xff] %v747_v26  ;;  %1339 = vst [vmem:[#allocation27_spill] sm:$0xff] %v774_v9  ;;  %v797_v9 = vsel %vm78_vm1, %v765_v11, 0.0 }
  0x14   :  { %v770_v26 = vld [vmem:[%s1294_s0 + $0x1f0] sm:$0xff]  ;;  %v778_v25 = vsel %vm78_vm1, %v738_v30, 0.0  ;;  %v782_v4 = vsel %vm78_vm1, %v743_v62, 0.0  ;;  %1342 = vst [vmem:[#allocation30_spill] sm:$0xff] %v787_v0  ;;  %1344 = vst [vmem:[#allocation32_spill] sm:$0xff] %v797_v9  ;;  %v843_v52 = vld [vmem:[%s1294_s0 + $0x98] sm:$0xff] }
  0x15   :  { %1338 = vst [vmem:[#allocation26_spill] sm:$0xff] %v770_v26  ;;  %v99_v36 = vadd.f32 %v98_v31, %v97_v24  ;;  %1340 = vst [vmem:[#allocation28_spill] sm:$0xff] %v778_v25  ;;  %v102_v31 = vsel %vm78_vm1, %v701_v14, 0.0  ;;  %v793_v24 = vsel %vm78_vm1, %v760_v12, 0.0  ;;  %v801_v25 = vsel %vm78_vm1, %v770_v26, 0.0  ;;  %v28_v9 = vld [vmem:[%s1294_s0 + $0x70] sm:$0xff] }
  0x16   :  { %1341 = vst [vmem:[#allocation29_spill] sm:$0xff] %v782_v4  ;;  %1343 = vst [vmem:[#allocation31_spill] sm:$0xff] %v793_v24  ;;  %v27_v4 = vld [vmem:[%s1294_s0 + $0x68] sm:$0xff]  ;;  %v848_v51 = vld [vmem:[%s1294_s0 + $0xa0] sm:$0xff]  ;;  %v116_v39 = vsel %vm78_vm1, %v843_v52, 0.0 }
  0x17   :  { %1345 = vst [vmem:[#allocation33_spill] sm:$0xff] %v801_v25  ;;  %v101_v63 = vadd.f32 %v534_v32, %v99_v36  ;;  %1346 = vst [vmem:[#allocation34_spill] sm:$0xff] %v809_v58  ;;  %v104_v24 = vsel %vm78_vm1, %v27_v4, 0.0  ;;  %v818_v25 = vld [vmem:[%s1294_s0 + $0x78] sm:$0xff]  ;;  %v823_v32 = vld [vmem:[%s1294_s0 + $0x80] sm:$0xff]  ;;  %v106_v58 = vsel %vm78_vm1, %v28_v9, 0.0 }
  0x18   :  { %1347 = vst [vmem:[#allocation35_spill] sm:$0xff] %v818_v25  ;;  %1348 = vst [vmem:[#allocation36_spill] sm:$0xff] %v823_v32  ;;  %v828_v36 = vld [vmem:[%s1294_s0 + $0x88] sm:$0xff]  ;;  %v864_v43 = vld [vmem:[%s1294_s0 + $0xb0] sm:$0xff]  ;;  %v118_v38 = vsel %vm78_vm1, %v848_v51, 0.0 }
  0x19   :  { %v103_v57 = vadd.f32 %v102_v31, %v101_v63  ;;  %1349 = vst [vmem:[#allocation37_spill] sm:$0xff] %v828_v36  ;;  %v212_v63 = vmul.f32 %v438_v1, %v438_v1  ;;  %v213_v31 = vmul.f32 %v443_v2, %v443_v2  ;;  %1350 = vst [vmem:[#allocation38_spill] sm:$0xff] %v838_v56  ;;  %v108_v1 = vsel %vm78_vm1, %v818_v25, 0.0  ;;  %v859_v44 = vld [vmem:[%s1294_s0 + $0xa8] sm:$0xff]  ;;  %v905_v0 = vld [vmem:[%s1294_s0 + $0xd8] sm:$0xff] }
  0x1a   :  { %1351 = vst [vmem:[#allocation39_spill] sm:$0xff] %v843_v52  ;;  %1352 = vst [vmem:[#allocation40_spill] sm:$0xff] %v848_v51  ;;  %v110_v2 = vsel %vm78_vm1, %v823_v32, 0.0  ;;  %v112_v45 = vsel %vm78_vm1, %v828_v36, 0.0  ;;  %v882_v36 = vld [vmem:[%s1294_s0 + $0xc0] sm:$0xff]  ;;  %v887_v32 = vld [vmem:[%s1294_s0 + $0xc8] sm:$0xff]  ;;  %v215_v25 = vmul.f32 %v459_v7, %v459_v7 }
  0x1b   :  { %v105_v50 = vadd.f32 %v104_v24, %v103_v57  ;;  %1353 = vst [vmem:[#allocation41_spill] sm:$0xff] %v859_v44  ;;  %1354 = vst [vmem:[#allocation42_spill] sm:$0xff] %v864_v43  ;;  %v869_v57 = vld [vmem:[%s1294_s0 + $0xb8] sm:$0xff]  ;;  %v114_v24 = vsel %vm78_vm1, %v838_v56, 0.0  ;;  %v892_v52 = vld [vmem:[%s1294_s0 + $0xd0] sm:$0xff]  ;;  %v120_v51 = vsel %vm78_vm1, %v859_v44, 0.0 }
  0x1c   :  { %1355 = vst [vmem:[#allocation43_spill] sm:$0xff] %v869_v57  ;;  %1356 = vst [vmem:[#allocation44_spill] sm:$0xff] %v882_v36  ;;  %v898_v3 = vsel %vm78_vm1, %v864_v43, 0.0  ;;  %v910_v26 = vld [vmem:[%s1294_s0 + $0xe0] sm:$0xff]  ;;  %v922_v7 = vsel %vm78_vm1, %v887_v32, 0.0  ;;  %v926_v43 = vsel %vm78_vm1, %v892_v52, 0.0 }
  0x1d   :  { %1357 = vst [vmem:[#allocation45_spill] sm:$0xff] %v887_v32  ;;  %1358 = vst [vmem:[#allocation46_spill] sm:$0xff] %v892_v52  ;;  %v107_v56 = vadd.f32 %v106_v58, %v105_v50  ;;  %v914_v50 = vsel %vm78_vm1, %v869_v57, 0.0  ;;  %v918_v58 = vsel %vm78_vm1, %v882_v36, 0.0  ;;  %v931_v44 = vld [vmem:[%s1294_s0 + $0xe8] sm:$0xff]  ;;  %v936_v57 = vld [vmem:[%s1294_s0 + $0xf0] sm:$0xff]  ;;  %v216_v52 = vmul.f32 %v466_v10, %v466_v10 }
  0x1e   :  { %1359 = vst [vmem:[#allocation47_spill] sm:$0xff] %v905_v0  ;;  %1360 = vst [vmem:[#allocation48_spill] sm:$0xff] %v910_v26  ;;  %v944_v32 = vsel %vm78_vm1, %v910_v26, 0.0  ;;  %v219_v26 = vmul.f32 %v485_v18, %v485_v18  ;;  %v220_v10 = vmul.f32 %v490_v19, %v490_v19  ;;  %v245_v18 = vmul.f32 %v516_v27, %v516_v27 }
  0x1f   :  { %1361 = vst [vmem:[#allocation49_spill] sm:$0xff] %v918_v58  ;;  %1362 = vst [vmem:[#allocation50_spill] sm:$0xff] %v922_v7  ;;  %v109_v36 = vadd.f32 %v108_v1, %v107_v56  ;;  %v940_v58 = vsel %vm78_vm1, %v905_v0, 0.0  ;;  %v954_v7 = vsel %vm78_vm1, %v936_v57, 0.0  ;;  %v217_v56 = vmul.f32 %v473_v13, %v473_v13 }
  0x20   :  { %1363 = vst [vmem:[#allocation51_spill] sm:$0xff] %v926_v43  ;;  %1364 = vst [vmem:[#allocation52_spill] sm:$0xff] %v931_v44  ;;  %v950_v43 = vsel %vm78_vm1, %v931_v44, 0.0  ;;  %v218_v1 = vmul.f32 %v480_v16, %v480_v16  ;;  %v221_v44 = vmul.f32 %v497_v21, %v497_v21  ;;  %v224_v13 = vmul.f32 %v701_v14, %v701_v14 }
  0x21   :  { %1365 = vst [vmem:[#allocation53_spill] sm:$0xff] %v936_v57  ;;  %1366 = vst [vmem:[#allocation54_spill] sm:$0xff] %v954_v7  ;;  %v111_v0 = vadd.f32 %v110_v2, %v109_v36  ;;  %v222_v57 = vmul.f32 %v502_v22, %v502_v22  ;;  %v223_v7 = vmul.f32 %v507_v23, %v507_v23 }
  0x22   :  { %v972_v16 = vmul.f32 %v27_v4, %v27_v4  ;;  %v974_v2 = vmul.f32 %v28_v9, %v28_v9  ;;  %v246_v19 = vmul.f32 %v521_v28, %v521_v28  ;;  %v247_v21 = vmul.f32 %v526_v29, %v526_v29 }
  0x23   :  { %v113_v36 = vadd.f32 %v112_v45, %v111_v0  ;;  %v248_v22 = vmul.f32 %v539_v33, %v539_v33  ;;  %v249_v23 = vmul.f32 %v544_v34, %v544_v34  ;;  %v250_v45 = vmul.f32 %v549_v35, %v549_v35 }
  0x24   :  { %v251_v4 = vmul.f32 %v566_v40, %v566_v40  ;;  %v252_v27 = vmul.f32 %v571_v41, %v571_v41  ;;  %v253_v28 = vmul.f32 %v576_v42, %v576_v42  ;;  %v254_v29 = vmul.f32 %v593_v46, %v593_v46 }
  0x25   :  { %v115_v0 = vadd.f32 %v114_v24, %v113_v36  ;;  %v255_v33 = vmul.f32 %v598_v47, %v598_v47  ;;  %v276_v34 = vsel %vm78_vm1, %v212_v63, 0.0  ;;  %v277_v35 = vsel %vm78_vm1, %v213_v31, 0.0 }
  0x26   :  { %v256_v40 = vmul.f32 %v603_v48, %v603_v48  ;;  %v278_v14 = vadd.f32 %v277_v35, %v276_v34  ;;  %v279_v41 = vsel %vm78_vm1, %v214_v37, 0.0  ;;  %v257_v42 = vmul.f32 %v620_v53, %v620_v53  ;;  %v1368_v34 = vld [vmem:[#allocation30_spill] sm:$0xff] }
  0x27   :  { %v117_v9 = vadd.f32 %v116_v39, %v115_v0  ;;  %v258_v46 = vmul.f32 %v625_v54, %v625_v54  ;;  %v259_v47 = vmul.f32 %v630_v55, %v630_v55  ;;  %v281_v63 = vsel %vm78_vm1, %v215_v25, 0.0  ;;  %v1367_v0 = vld [vmem:[#allocation26_spill] sm:$0xff] }
  0x28   :  { %v260_v39 = vmul.f32 %v647_v59, %v647_v59  ;;  %v261_v48 = vmul.f32 %v652_v60, %v652_v60  ;;  %v280_v31 = vadd.f32 %v279_v41, %v278_v14  ;;  %v262_v37 = vmul.f32 %v657_v61, %v657_v61  ;;  %v1369_v41 = vld [vmem:[#allocation49_spill] sm:$0xff] }
  0x29   :  { %v119_v24 = vadd.f32 %v118_v38, %v117_v9  ;;  %v263_v53 = vmul.f32 %v674_v5, %v674_v5  ;;  %v264_v54 = vmul.f32 %v679_v6, %v679_v6  ;;  %v283_v55 = vsel %vm78_vm1, %v216_v52, 0.0 }
  0x2a   :  { %v265_v38 = vmul.f32 %v684_v8, %v684_v8  ;;  %v266_v59 = vmul.f32 %v706_v15, %v706_v15  ;;  %v282_v60 = vadd.f32 %v281_v63, %v280_v31  ;;  %v267_v36 = vmul.f32 %v711_v17, %v711_v17 }
  0x2b   :  { %v121_v25 = vadd.f32 %v120_v51, %v119_v24  ;;  %v268_v61 = vmul.f32 %v716_v20, %v716_v20  ;;  %v269_v5 = vmul.f32 %v733_v49, %v733_v49  ;;  %v285_v6 = vsel %vm78_vm1, %v217_v56, 0.0 }
  0x2c   :  { %v270_v52 = vmul.f32 %v738_v30, %v738_v30  ;;  %v271_v8 = vmul.f32 %v743_v62, %v743_v62  ;;  %v284_v15 = vadd.f32 %v283_v55, %v282_v60  ;;  %v272_v17 = vmul.f32 %v760_v12, %v760_v12 }
  0x2d   :  { %v123_v51 = vadd.f32 %v898_v3, %v121_v25  ;;  %v273_v20 = vmul.f32 %v765_v11, %v765_v11  ;;  %v274_v49 = vmul.f32 %v1367_v0, %v1367_v0  ;;  %v287_v56 = vsel %vm78_vm1, %v218_v1, 0.0  ;;  %v1371_v25 = vld [vmem:[#allocation51_spill] sm:$0xff] }
  0x2e   :  { %v275_v30 = vmul.f32 %v1368_v34, %v1368_v34  ;;  %v286_v35 = vadd.f32 %v285_v6, %v284_v15  ;;  %v289_v62 = vsel %vm78_vm1, %v219_v26, 0.0  ;;  %v291_v9 = vsel %vm78_vm1, %v220_v10, 0.0  ;;  %v1373_v34 = vld [vmem:[#allocation54_spill] sm:$0xff] }
  0x2f   :  { %v125_v3 = vadd.f32 %v914_v50, %v123_v51  ;;  %v293_v12 = vsel %vm78_vm1, %v221_v44, 0.0  ;;  %v295_v14 = vsel %vm78_vm1, %v222_v57, 0.0  ;;  %v297_v11 = vsel %vm78_vm1, %v223_v7, 0.0  ;;  %v1370_v7 = vld [vmem:[#allocation50_spill] sm:$0xff] }
  0x30   :  { %v288_v24 = vadd.f32 %v287_v56, %v286_v35  ;;  %v299_v1 = vsel %vm78_vm1, %v224_v13, 0.0  ;;  %v1055_v50 = vsel %vm78_vm1, %v245_v18, 0.0  ;;  %v1058_v31 = vsel %vm78_vm1, %v246_v19, 0.0  ;;  %v1372_v56 = vld [vmem:[#allocation35_spill] sm:$0xff] }
  0x31   :  { %v127_v63 = vadd.f32 %v1369_v41, %v125_v3  ;;  %v1061_v26 = vsel %vm78_vm1, %v247_v21, 0.0  ;;  %v1064_v44 = vsel %vm78_vm1, %v248_v22, 0.0  ;;  %v1067_v57 = vsel %vm78_vm1, %v249_v23, 0.0 }
  0x32   :  { %v290_v55 = vadd.f32 %v289_v62, %v288_v24  ;;  %v1071_v13 = vsel %vm78_vm1, %v250_v45, 0.0  ;;  %v1074_v18 = vsel %vm78_vm1, %v251_v4, 0.0  ;;  %v1077_v19 = vsel %vm78_vm1, %v252_v27, 0.0  ;;  %v1374_v62 = vld [vmem:[#allocation36_spill] sm:$0xff] }
  0x33   :  { %v129_v10 = vadd.f32 %v1370_v7, %v127_v63  ;;  %v1080_v21 = vsel %vm78_vm1, %v253_v28, 0.0  ;;  %v1083_v22 = vsel %vm78_vm1, %v254_v29, 0.0  ;;  %v1086_v23 = vsel %vm78_vm1, %v255_v33, 0.0 }
  0x34   :  { %v292_v6 = vadd.f32 %v291_v9, %v290_v55  ;;  %v1090_v45 = vsel %vm78_vm1, %v256_v40, 0.0  ;;  %v1093_v4 = vsel %vm78_vm1, %v257_v42, 0.0  ;;  %v1096_v27 = vsel %vm78_vm1, %v258_v46, 0.0 }
  0x35   :  { %v131_v60 = vadd.f32 %v1371_v25, %v129_v10  ;;  %v1099_v28 = vsel %vm78_vm1, %v259_v47, 0.0  ;;  %v1102_v29 = vsel %vm78_vm1, %v260_v39, 0.0  ;;  %v1105_v33 = vsel %vm78_vm1, %v261_v48, 0.0  ;;  %v1376_v10 = vld [vmem:[#allocation38_spill] sm:$0xff] }
  0x36   :  { %v294_v15 = vadd.f32 %v293_v12, %v292_v6  ;;  %v1109_v40 = vsel %vm78_vm1, %v262_v37, 0.0  ;;  %v1112_v42 = vsel %vm78_vm1, %v263_v53, 0.0  ;;  %v1115_v46 = vsel %vm78_vm1, %v264_v54, 0.0  ;;  %v1377_v25 = vld [vmem:[#allocation2_spill] sm:$0xff] }
  0x37   :  { %v133_v51 = vadd.f32 %v940_v58, %v131_v60  ;;  %v1118_v47 = vsel %vm78_vm1, %v265_v38, 0.0  ;;  %v1121_v39 = vsel %vm78_vm1, %v266_v59, 0.0  ;;  %v1124_v48 = vsel %vm78_vm1, %v267_v36, 0.0 }
  0x38   :  { %v296_v0 = vadd.f32 %v295_v14, %v294_v15  ;;  %v1128_v37 = vsel %vm78_vm1, %v268_v61, 0.0  ;;  %v1131_v53 = vsel %vm78_vm1, %v269_v5, 0.0  ;;  %v1134_v54 = vsel %vm78_vm1, %v270_v52, 0.0 }
  0x39   :  { %v135_v58 = vadd.f32 %v944_v32, %v133_v51  ;;  %v1137_v38 = vsel %vm78_vm1, %v271_v8, 0.0  ;;  %v1140_v59 = vsel %vm78_vm1, %v272_v17, 0.0  ;;  %v1143_v36 = vsel %vm78_vm1, %v273_v20, 0.0  ;;  %v1148_v32 = vld [vmem:[%s1294_s0 + $0xf8] sm:$0xff]  ;;  %v1378_v51 = vld [vmem:[#allocation39_spill] sm:$0xff] }
  0x3a   :  { %v298_v5 = vadd.f32 %v297_v11, %v296_v0  ;;  %v1152_v52 = vsel %vm78_vm1, %v274_v49, 0.0  ;;  %v1155_v8 = vsel %vm78_vm1, %v275_v30, 0.0  ;;  %v140_v17 = vsel %vm78_vm1, %v1148_v32, 0.0 }
  0x3b   :  { %v137_v61 = vadd.f32 %v950_v43, %v135_v58  ;;  %v227_v20 = vmul.f32 %v1372_v56, %v1372_v56  ;;  %v301_v3 = vsel %vm78_vm1, %v972_v16, 0.0  ;;  %v1166_v43 = vld [vmem:[%s1294_s0 + $0x100] sm:$0xff]  ;;  %v228_v9 = vmul.f32 %v1374_v62, %v1374_v62  ;;  %v1375_v16 = vld [vmem:[#allocation37_spill] sm:$0xff]  ;;  %v1379_v58 = vld [vmem:[#allocation3_spill] sm:$0xff] }
  0x3c   :  { %v300_v35 = vadd.f32 %v299_v1, %v298_v5  ;;  %v142_v30 = vsel %vm78_vm1, %v1166_v43, 0.0  ;;  %v303_v12 = vsel %vm78_vm1, %v974_v2, 0.0  ;;  %v229_v41 = vmul.f32 %v1375_v16, %v1375_v16  ;;  %v1380_v5 = vld [vmem:[#allocation40_spill] sm:$0xff]  ;;  %v1383_v62 = vld [vmem:[#allocation5_spill] sm:$0xff] }
  0x3d   :  { %v139_v49 = vadd.f32 %v1373_v34, %v137_v61  ;;  %v305_v63 = vsel %vm78_vm1, %v227_v20, 0.0  ;;  %v230_v1 = vmul.f32 %v1376_v10, %v1376_v10  ;;  %v307_v55 = vsel %vm78_vm1, %v228_v9, 0.0  ;;  %v1381_v20 = vld [vmem:[#allocation4_spill] sm:$0xff] }
  0x3e   :  { %v302_v11 = vadd.f32 %v301_v3, %v300_v35  ;;  %v231_v2 = vmul.f32 %v1378_v51, %v1378_v51  ;;  %v309_v15 = vsel %vm78_vm1, %v229_v41, 0.0  ;;  %v1385_v41 = vld [vmem:[#allocation6_spill] sm:$0xff] }
  0x3f   :  { %v141_v14 = vadd.f32 %v140_v17, %v139_v49  ;;  %v232_v17 = vmul.f32 %v1380_v5, %v1380_v5  ;;  %v311_v56 = vsel %vm78_vm1, %v230_v1, 0.0  ;;  %v1382_v49 = vld [vmem:[#allocation41_spill] sm:$0xff] }
  0x40   :  { %v304_v7 = vadd.f32 %v303_v12, %v302_v11  ;;  %v233_v35 = vmul.f32 %v1382_v49, %v1382_v49 }
  0x41   :  { %v143_v24 = vadd.f32 %v142_v30, %v141_v14  ;;  %v313_v30 = vsel %vm78_vm1, %v231_v2, 0.0  ;;  %v1384_v14 = vld [vmem:[#allocation42_spill] sm:$0xff]  ;;  %v315_v16 = vsel %vm78_vm1, %v232_v17, 0.0 }
  0x42   :  { %v306_v6 = vadd.f32 %v305_v63, %v304_v7  ;;  %v234_v11 = vmul.f32 %v1384_v14, %v1384_v14  ;;  %v1386_v7 = vld [vmem:[#allocation43_spill] sm:$0xff]  ;;  %v317_v1 = vsel %vm78_vm1, %v233_v35, 0.0 }
  0x43   :  { %v145_v60 = vadd.f32 %v1377_v25, %v143_v24  ;;  %v235_v10 = vmul.f32 %v1386_v7, %v1386_v7 }
  0x44   :  { %v308_v61 = vadd.f32 %v307_v55, %v306_v6  ;;  %v1387_v55 = vld [vmem:[#allocation7_spill] sm:$0xff]  ;;  %v1388_v6 = vld [vmem:[#allocation44_spill] sm:$0xff]  ;;  %v319_v2 = vsel %vm78_vm1, %v234_v11, 0.0 }
  0x45   :  { %v147_v0 = vadd.f32 %v1379_v58, %v145_v60  ;;  %v236_v51 = vmul.f32 %v1388_v6, %v1388_v6  ;;  %v321_v17 = vsel %vm78_vm1, %v235_v10, 0.0 }
  0x46   :  { %v310_v34 = vadd.f32 %v309_v15, %v308_v61  ;;  %v1389_v15 = vld [vmem:[#allocation8_spill] sm:$0xff]  ;;  %v1390_v61 = vld [vmem:[#allocation45_spill] sm:$0xff] }
  0x47   :  { %v149_v3 = vadd.f32 %v1381_v20, %v147_v0  ;;  %v237_v5 = vmul.f32 %v1390_v61, %v1390_v61  ;;  %v323_v35 = vsel %vm78_vm1, %v236_v51, 0.0 }
  0x48   :  { %v312_v12 = vadd.f32 %v311_v56, %v310_v34  ;;  %v1391_v56 = vld [vmem:[#allocation9_spill] sm:$0xff]  ;;  %v1392_v34 = vld [vmem:[#allocation46_spill] sm:$0xff] }
  0x49   :  { %v151_v9 = vadd.f32 %v1383_v62, %v149_v3  ;;  %v238_v49 = vmul.f32 %v1392_v34, %v1392_v34  ;;  %v325_v11 = vsel %vm78_vm1, %v237_v5, 0.0 }
  0x4a   :  { %v314_v24 = vadd.f32 %v313_v30, %v312_v12  ;;  %v1393_v30 = vld [vmem:[#allocation10_spill] sm:$0xff]  ;;  %v1394_v12 = vld [vmem:[#allocation47_spill] sm:$0xff] }
  0x4b   :  { %v153_v63 = vadd.f32 %v1385_v41, %v151_v9  ;;  %v239_v14 = vmul.f32 %v1394_v12, %v1394_v12  ;;  %v327_v10 = vsel %vm78_vm1, %v238_v49, 0.0  ;;  %v1402_v49 = vld [vmem:[#allocation15_spill] sm:$0xff]  ;;  %v1403_v12 = vld [vmem:[#allocation16_spill] sm:$0xff] }
  0x4c   :  { %v316_v60 = vadd.f32 %v315_v16, %v314_v24  ;;  %v1395_v16 = vld [vmem:[#allocation11_spill] sm:$0xff]  ;;  %v1396_v24 = vld [vmem:[#allocation48_spill] sm:$0xff] }
  0x4d   :  { %v155_v25 = vadd.f32 %v1387_v55, %v153_v63  ;;  %v240_v7 = vmul.f32 %v1396_v24, %v1396_v24  ;;  %v329_v51 = vsel %vm78_vm1, %v239_v14, 0.0 }
  0x4e   :  { %v318_v0 = vadd.f32 %v317_v1, %v316_v60  ;;  %v1397_v1 = vld [vmem:[#allocation12_spill] sm:$0xff] }
  0x4f   :  { %v157_v58 = vadd.f32 %v1389_v15, %v155_v25  ;;  %v1398_v60 = vld [vmem:[#allocation52_spill] sm:$0xff]  ;;  %v331_v5 = vsel %vm78_vm1, %v240_v7, 0.0  ;;  %v1405_v7 = vld [vmem:[#allocation18_spill] sm:$0xff] }
  0x50   :  { %v320_v3 = vadd.f32 %v319_v2, %v318_v0  ;;  %v241_v6 = vmul.f32 %v1398_v60, %v1398_v60  ;;  %v1399_v2 = vld [vmem:[#allocation13_spill] sm:$0xff] }
  0x51   :  { %v159_v20 = vadd.f32 %v1391_v56, %v157_v58  ;;  %v1400_v0 = vld [vmem:[#allocation53_spill] sm:$0xff] }
  0x52   :  { %v322_v9 = vadd.f32 %v321_v17, %v320_v3  ;;  %v242_v61 = vmul.f32 %v1400_v0, %v1400_v0  ;;  %v1401_v17 = vld [vmem:[#allocation14_spill] sm:$0xff]  ;;  %v243_v3 = vmul.f32 %v1148_v32, %v1148_v32  ;;  %v333_v34 = vsel %vm78_vm1, %v241_v6, 0.0  ;;  %v1407_v6 = vld [vmem:[#allocation20_spill] sm:$0xff] }
  0x53   :  { %v161_v62 = vadd.f32 %v1393_v30, %v159_v20  ;;  %v1409_v0 = vld [vmem:[#allocation22_spill] sm:$0xff] }
  0x54   :  { %v324_v63 = vadd.f32 %v323_v35, %v322_v9  ;;  %v335_v9 = vsel %vm78_vm1, %v242_v61, 0.0 }
  0x55   :  { %v163_v41 = vadd.f32 %v1395_v16, %v161_v62  ;;  %v244_v62 = vmul.f32 %v1166_v43, %v1166_v43  ;;  %v337_v16 = vsel %vm78_vm1, %v243_v3, 0.0  ;;  %v1411_v3 = vld [vmem:[#allocation24_spill] sm:$0xff] }
  0x56   :  { %v326_v25 = vadd.f32 %v325_v11, %v324_v63 }
  0x57   :  { %v165_v55 = vadd.f32 %v1397_v1, %v163_v41  ;;  %v1404_v41 = vld [vmem:[#allocation17_spill] sm:$0xff]  ;;  %v339_v32 = vsel %vm78_vm1, %v244_v62, 0.0  ;;  %v1413_v62 = vld [vmem:[#allocation27_spill] sm:$0xff] }
  0x58   :  { %v328_v58 = vadd.f32 %v327_v10, %v326_v25 }
  0x59   :  { %v167_v15 = vadd.f32 %v1399_v2, %v165_v55  ;;  %v1406_v55 = vld [vmem:[#allocation19_spill] sm:$0xff]  ;;  %v1408_v2 = vld [vmem:[#allocation21_spill] sm:$0xff] }
  0x5a   :  { %v330_v20 = vadd.f32 %v329_v51, %v328_v58 }
  0x5b   :  { %v169_v56 = vadd.f32 %v1401_v17, %v167_v15  ;;  %v1410_v17 = vld [vmem:[#allocation23_spill] sm:$0xff] }
  0x5c   :  { %v332_v30 = vadd.f32 %v331_v5, %v330_v20 }
  0x5d   :  { %v171_v35 = vadd.f32 %v1402_v49, %v169_v56 }
  0x5e   :  { %v334_v11 = vadd.f32 %v333_v34, %v332_v30 }
  0x5f   :  { %v173_v14 = vadd.f32 %v1403_v12, %v171_v35  ;;  %v1412_v35 = vld [vmem:[#allocation25_spill] sm:$0xff]  ;;  %v1414_v12 = vld [vmem:[#allocation28_spill] sm:$0xff] }
  0x60   :  { %v336_v24 = vadd.f32 %v335_v9, %v334_v11  ;;  %v1415_v11 = vld [vmem:[#allocation29_spill] sm:$0xff] }
  0x61   :  { %v175_v63 = vadd.f32 %v1404_v41, %v173_v14  ;;  %v1416_v41 = vld [vmem:[#allocation31_spill] sm:$0xff] }
  0x62   :  { %v338_v1 = vadd.f32 %v337_v16, %v336_v24  ;;  %v1417_v24 = vld [vmem:[#allocation32_spill] sm:$0xff] }
  0x63   :  { %v177_v10 = vadd.f32 %v1405_v7, %v175_v63  ;;  %v1418_v7 = vld [vmem:[#allocation33_spill] sm:$0xff] }
  0x64   :  { %v340_v60 = vadd.f32 %v339_v32, %v338_v1  ;;  %v1419_v1 = vld [vmem:[#allocation34_spill] sm:$0xff] }
  0x65   :  { %v179_v25 = vadd.f32 %v1406_v55, %v177_v10 }
  0x66   :  { %v342_v51 = vadd.f32 %v1055_v50, %v340_v60 }
  0x67   :  { %v181_v43 = vadd.f32 %v1407_v6, %v179_v25 }
  0x68   :  { %v344_v58 = vadd.f32 %v1058_v31, %v342_v51 }
  0x69   :  { %v183_v15 = vadd.f32 %v1408_v2, %v181_v43 }
  0x6a   :  { %v346_v5 = vadd.f32 %v1061_v26, %v344_v58 }
  0x6b   :  { %v185_v61 = vadd.f32 %v1409_v0, %v183_v15 }
  0x6c   :  { %v348_v20 = vadd.f32 %v1064_v44, %v346_v5 }
  0x6d   :  { %v187_v56 = vadd.f32 %v1410_v17, %v185_v61 }
  0x6e   :  { %v350_v49 = vadd.f32 %v1067_v57, %v348_v20 }
  0x6f   :  { %v189_v34 = vadd.f32 %v1411_v3, %v187_v56 }
  0x70   :  { %v352_v50 = vadd.f32 %v1071_v13, %v350_v49 }
  0x71   :  { %v191_v30 = vadd.f32 %v1412_v35, %v189_v34 }
  0x72   :  { %v354_v31 = vadd.f32 %v1074_v18, %v352_v50 }
  0x73   :  { %v193_v9 = vadd.f32 %v1413_v62, %v191_v30 }
  0x74   :  { %v356_v26 = vadd.f32 %v1077_v19, %v354_v31 }
  0x75   :  { %v195_v14 = vadd.f32 %v1414_v12, %v193_v9 }
  0x76   :  { %v358_v44 = vadd.f32 %v1080_v21, %v356_v26 }
  0x77   :  { %v197_v16 = vadd.f32 %v1415_v11, %v195_v14 }
  0x78   :  { %v360_v57 = vadd.f32 %v1083_v22, %v358_v44 }
  0x79   :  { %v199_v63 = vadd.f32 %v1416_v41, %v197_v16 }
  0x7a   :  { %v362_v13 = vadd.f32 %v1086_v23, %v360_v57 }
  0x7b   :  { %v201_v32 = vadd.f32 %v1417_v24, %v199_v63 }
  0x7c   :  { %v364_v18 = vadd.f32 %v1090_v45, %v362_v13 }
  0x7d   :  { %v203_v10 = vadd.f32 %v1418_v7, %v201_v32 }
  0x7e   :  { %v366_v19 = vadd.f32 %v1093_v4, %v364_v18 }
  0x7f   :  { %v205_v55 = vadd.f32 %v1419_v1, %v203_v10 }
  0x80   :  { %v368_v25 = vadd.f32 %v1096_v27, %v366_v19 }
  0x81   :  { %v206_v2 = vrot.slane %v205_v55, 4 }
  0x82   :  { %v370_v21 = vadd.f32 %v1099_v28, %v368_v25 }
  0x84   :  { %v372_v60 = vadd.f32 %v1102_v29, %v370_v21 }
  0x86   :  { %v374_v22 = vadd.f32 %v1105_v33, %v372_v60 }
  0x88   :  { %v376_v6 = vadd.f32 %v1109_v40, %v374_v22  ;;  %v207_v40 = vadd.f32 %v206_v2, %v205_v55 }
  0x8a   :  { %v378_v23 = vadd.f32 %v1112_v42, %v376_v6  ;;  %v208_v15 = vrot.slane %v207_v40, 2 }
  0x8c   :  { %v380_v43 = vadd.f32 %v1115_v46, %v378_v23 }
  0x8e   :  { %v382_v45 = vadd.f32 %v1118_v47, %v380_v43 }
  0x90   :  { %v384_v51 = vadd.f32 %v1121_v39, %v382_v45 }
  0x92   :  { %v386_v4 = vadd.f32 %v1124_v48, %v384_v51  ;;  %v209_v48 = vadd.f32 %v208_v15, %v207_v40 }
  0x94   :  { %v388_v27 = vadd.f32 %v1128_v37, %v386_v4  ;;  %v210_v0 = vrot.slane %v209_v48, 1 }
  0x96   :  { %v390_v28 = vadd.f32 %v1131_v53, %v388_v27  ;;  %v211_v5 = vadd.f32 %v210_v0, %v209_v48 }
  0x98   :  { %v392_v29 = vadd.f32 %v1134_v54, %v390_v28 }
  0x9a   :  { %v394_v33 = vadd.f32 %v1137_v38, %v392_v29 }
  0x9c   :  { %v396_v42 = vadd.f32 %v1140_v59, %v394_v33  ;;  %v409_v59 = vld [vmem:[%s1295_s1] sm:$0x3] }
  0x9e   :  { %v398_v46 = vadd.f32 %v1143_v36, %v396_v42 }
  0xa0   :  { %v400_v47 = vadd.f32 %v1152_v52, %v398_v46 }
  0xa2   :  { %v402_v39 = vadd.f32 %v1155_v8, %v400_v47 }
  0xa4   :  { %v403_v58 = vrot.slane %v402_v39, 4 }
  0xa6   :  { %v404_v37 = vadd.f32 %v403_v58, %v402_v39 }
  0xa8   :  { %v405_v53 = vrot.slane %v404_v37, 2 }
  0xaa   :  { %v406_v61 = vadd.f32 %v405_v53, %v404_v37 }
  0xac   :  { %v407_v54 = vrot.slane %v406_v61, 1 }
  0xae   :  { %v408_v38 = vadd.f32 %v407_v54, %v406_v61 }
  0xb0   :  { %v411_v36 = vsel %vm410_vm2, %v211_v5, %v408_v38 }
  0xb1   :  { %v412_v17 = vadd.f32 %v411_v36, %v409_v59 }
  0xb3   :  { %414 = vst.msk [vmem:[%s1295_s1] sm:$0x3] %vm12_vm0, %v412_v17 }

// kernel: preact_block_forward.5
= control target key start
LH: loop header
LB: loop body
LE: loop exit
PB: predicated region body
PF: predicated region fallthrough
CT: control target
= control target key end

     0   :  { %s3947_s18 = smov 0   ;;  %s5138_s0 = inlined_call_operand.vmem [shape: f32[512,8], index: 0, kind: input, shape index: {}]   ;;  %s5139_s1 = inlined_call_operand.vmem [shape: f32[1,8], index: 1, kind: input, shape index: {}]   ;;  %s5140_s2 = inlined_call_operand.vmem [shape: f32[1,8], index: 2, kind: input, shape index: {}]   ;;  %s5141_s3 = inlined_call_operand.vmem [shape: bf16[9,8,8], index: 3, kind: input, shape index: {}]   ;;  %s5142_s4 = inlined_call_operand.vmem [shape: f32[512,8], index: 4, kind: input, shape index: {}]   ;;  %s5143_s5 = inlined_call_operand.vmem [shape: f32[512,8], index: 5, kind: output, shape index: {}]  }
   0x1 LB: > { %s3261_s19 = sadd.s32 4294967295, %s3914_s18   ;;  %p3265_p0 = scmp.ge.s32.totalorder %s3914_s18, 1  ;;  %s3914_s18 = sphi %s3947_s18, %s15_s18  }
   0x2   : > { %p199_p1 = scmp.lt.s32.totalorder %s3914_s18, 3 }
   0x4   : > { %p200_p2 = pnand %p3265_p0, %p199_p1 }
   0x6   : > { %203 = sbr.rel (%p200_p2) target bundleno = 535 (0x217), region = 40 }
   0xb   : > { %v562_v0 = vld [vmem:[%s5141_s3] sm:$0xf]  ;;  %vm611_vm0 = vcmask 1043456   ;;  %vm393_vm1 = vcmask 64512   ;;  %s3958_s22 = sshll.u32 %s3261_s19, 5  ;;  %v3916_v2 = vmov 0.0  }
   0xc   : > { %3889 = vmatprep.subr.msk.bf16.mxu0 %vm611_vm0, %v562_v0  ;;  %3890 = vmatprep.subr.msk.bf16.mxu1 %vm611_vm0, %v562_v0  ;;  %v613_v1 = vsel %vm611_vm0, %v562_v0, 0  ;;  %394 = vst.msk [vmem:[#allocation2] sm:$0xff] %vm393_vm1, %v3916_v2  ;;  %395 = vst.msk [vmem:[#allocation2 + $0x8] sm:$0xff] %vm393_vm1, %v3916_v2  ;;  %p233_p3 = scmp.lt.s32.totalorder %s3958_s22, 63  ;;  %vm396_vm2 = vcmask 58368  }
   0xd   : > { %398 = vst.msk [vmem:[#allocation2 + $0x18] sm:$0xff] %vm393_vm1, %v3916_v2  ;;  %399 = vst.msk [vmem:[#allocation2 + $0x20] sm:$0xff] %vm393_vm1, %v3916_v2  ;;  %3582 = vmatpush3.bf16.msra.mxu0 %v613_v1  ;;  %3888 = vmatpush3.bf16.msra.mxu1 %v613_v1  ;;  %v3290_v3 = vld [vmem:[%s5141_s3 + $0x4] sm:$0xf]  ;;  %v3307_v4 = vld [vmem:[%s5141_s3 + $0x8] sm:$0xf] }
   0xe   : > { %401 = vst.msk [vmem:[#allocation2 + $0x30] sm:$0xff] %vm393_vm1, %v3916_v2  ;;  %402 = vst.msk [vmem:[#allocation2 + $0x38] sm:$0xff] %vm393_vm1, %v3916_v2  ;;  %s5229_s22 = smov (!%p233_p3, %s3958_s22), 63  ;;  %3891 = vmatprep.subr.msk.bf16.mxu1 %vm611_vm0, %v3290_v3  ;;  %3892 = vmatprep.subr.msk.bf16.mxu0 %vm611_vm0, %v3307_v4  ;;  %v4032_v5 = vld [vmem:[%s5139_s1] ss:$0 sm:$0xff]  ;;  %v4056_v20 = vsel %vm611_vm0, %v3290_v3, 0 }
   0xf   : > { %404 = vst.msk [vmem:[#allocation2 + $0x48] sm:$0xff] %vm393_vm1, %v3916_v2  ;;  %405 = vst.msk [vmem:[#allocation2 + $0x50] sm:$0xff] %vm393_vm1, %v3916_v2  ;;  %s4027_s27 = sshll.u32 %s5229_s22, 3  ;;  %v4043_v6 = vld [vmem:[%s5140_s2] ss:$0 sm:$0xff]  ;;  %v4059_v21 = vsel %vm611_vm0, %v3307_v4, 0 }
  0x10   : > { %407 = vst.msk [vmem:[#allocation2 + $0x60] sm:$0xff] %vm393_vm1, %v3916_v2  ;;  %408 = vst.msk [vmem:[#allocation2 + $0x68] sm:$0xff] %vm393_vm1, %v3916_v2  ;;  %s4038_s7 = scalar_lea.vmem %s5138_s0, %s4027_s27  ;;  %s4581_s25 = scalar_lea.vmem %s5142_s4, %s4027_s27 }
  0x11   : > { %410 = vst.msk [vmem:[#allocation2 + $0x78] sm:$0xff] %vm393_vm1, %v3916_v2  ;;  %411 = vst.msk [vmem:[#allocation2 + $0x80] sm:$0xff] %vm393_vm1, %v3916_v2  ;;  %v251_v7 = vld [vmem:[%s4038_s7] sm:$0xff]  ;;  %v252_v8 = vld [vmem:[%s4038_s7 + $0x8] sm:$0xff]  ;;  %s4983_s29 = scalar_lea.vmem %s5143_s5, %s4027_s27 }
  0x12   : > { %413 = vst.msk [vmem:[#allocation2 + $0x90] sm:$0xff] %vm393_vm1, %v3916_v2  ;;  %414 = vst.msk [vmem:[#allocation2 + $0x98] sm:$0xff] %vm393_vm1, %v3916_v2  ;;  %v265_v9 = vld [vmem:[%s4038_s7 + $0x70] sm:$0xff]  ;;  %v290_v12 = vmul.f32 %v4032_v5, %v251_v7  ;;  %v291_v13 = vmul.f32 %v4032_v5, %v252_v8  ;;  %v266_v14 = vld [vmem:[%s4038_s7 + $0x78] sm:$0xff] }
  0x13   : > { %416 = vst.msk [vmem:[#allocation2 + $0xa8] sm:$0xff] %vm393_vm1, %v3916_v2  ;;  %417 = vst.msk [vmem:[#allocation2 + $0xb0] sm:$0xff] %vm393_vm1, %v3916_v2  ;;  %v514_v10 = vld [vmem:[#allocation2] sm:$0xff]  ;;  %v515_v11 = vld [vmem:[#allocation2 + $0x8] sm:$0xff]  ;;  %v304_v15 = vmul.f32 %v4032_v5, %v265_v9  ;;  %v305_v17 = vmul.f32 %v4032_v5, %v266_v14 }
  0x14   : > { %419 = vst.msk [vmem:[#allocation2 + $0xc0] sm:$0xff] %vm393_vm1, %v3916_v2  ;;  %420 = vst.msk [vmem:[#allocation2 + $0xc8] sm:$0xff] %vm393_vm1, %v3916_v2  ;;  %v546_v16 = vpack.c.bf16 %v515_v11, %v514_v10  ;;  %v267_v18 = vld [vmem:[%s4038_s7 + $0x80] sm:$0xff]  ;;  %v268_v19 = vld [vmem:[%s4038_s7 + $0x88] sm:$0xff]  ;;  %v329_v23 = vadd.f32 %v4043_v6, %v290_v12  ;;  %v330_v24 = vadd.f32 %v4043_v6, %v291_v13 }
  0x15   : > { %422 = vst.msk [vmem:[#allocation2 + $0xd8] sm:$0xff] %vm393_vm1, %v3916_v2  ;;  %423 = vst.msk [vmem:[#allocation2 + $0xe0] sm:$0xff] %vm393_vm1, %v3916_v2  ;;  %v253_v22 = vld [vmem:[%s4038_s7 + $0x10] sm:$0xff]  ;;  %v343_v25 = vadd.f32 %v4043_v6, %v304_v15  ;;  %v306_v26 = vmul.f32 %v4032_v5, %v267_v18  ;;  %v254_v27 = vld [vmem:[%s4038_s7 + $0x18] sm:$0xff]  ;;  %v344_v28 = vadd.f32 %v4043_v6, %v305_v17 }
  0x16   : > { %425 = vst.msk [vmem:[#allocation2 + $0xf0] sm:$0xff] %vm393_vm1, %v3916_v2  ;;  %426 = vst.msk [vmem:[#allocation2 + $0xf8] sm:$0xff] %vm393_vm1, %v3916_v2  ;;  %3583 = vmatprep.mubr.msk.bf16.mxu0 %vm393_vm1, %v546_v16  ;;  %v307_v29 = vmul.f32 %v4032_v5, %v268_v19  ;;  %v292_v30 = vmul.f32 %v4032_v5, %v253_v22  ;;  %v293_v31 = vmul.f32 %v4032_v5, %v254_v27  ;;  %v255_v32 = vld [vmem:[%s4038_s7 + $0x20] sm:$0xff]  ;;  %v256_v33 = vld [vmem:[%s4038_s7 + $0x28] sm:$0xff] }
  0x17   : > { %428 = vst.msk [vmem:[#allocation2 + $0x108] sm:$0xff] %vm393_vm1, %v3916_v2  ;;  %429 = vst.msk [vmem:[#allocation2 + $0x110] sm:$0xff] %vm393_vm1, %v3916_v2  ;;  %v269_v34 = vld [vmem:[%s4038_s7 + $0x90] sm:$0xff]  ;;  %v361_v35 = vmax.f32 %v329_v23, 0.0  ;;  %v362_v36 = vmax.f32 %v330_v24, 0.0  ;;  %v375_v37 = vmax.f32 %v343_v25, 0.0  ;;  %v345_v38 = vadd.f32 %v4043_v6, %v306_v26 }
  0x18   : > { %431 = vst.msk [vmem:[#allocation2 + $0x120] sm:$0xff] %vm393_vm1, %v3916_v2  ;;  %432 = vst.msk [vmem:[#allocation2 + $0x128] sm:$0xff] %vm393_vm1, %v3916_v2  ;;  %v270_v39 = vld [vmem:[%s4038_s7 + $0x98] sm:$0xff]  ;;  %v376_v40 = vmax.f32 %v344_v28, 0.0  ;;  %v346_v41 = vadd.f32 %v4043_v6, %v307_v29  ;;  %v331_v42 = vadd.f32 %v4043_v6, %v292_v30  ;;  %v332_v43 = vadd.f32 %v4043_v6, %v293_v31  ;;  %v271_v44 = vld [vmem:[%s4038_s7 + $0xa0] sm:$0xff] }
  0x19   : > { %434 = vst.msk [vmem:[#allocation2 + $0x138] sm:$0xff] %vm393_vm1, %v3916_v2  ;;  %435 = vst.msk [vmem:[#allocation2 + $0x140] sm:$0xff] %vm393_vm1, %v3916_v2  ;;  %v377_v45 = vmax.f32 %v345_v38, 0.0  ;;  %v294_v46 = vmul.f32 %v4032_v5, %v255_v32  ;;  %v295_v47 = vmul.f32 %v4032_v5, %v256_v33  ;;  %v308_v48 = vmul.f32 %v4032_v5, %v269_v34  ;;  %v272_v49 = vld [vmem:[%s4038_s7 + $0xa8] sm:$0xff]  ;;  %v257_v50 = vld [vmem:[%s4038_s7 + $0x30] sm:$0xff] }
  0x1a   : > { %437 = vst.msk [vmem:[#allocation2 + $0x150] sm:$0xff] %vm393_vm1, %v3916_v2  ;;  %438 = vst.msk [vmem:[#allocation2 + $0x158] sm:$0xff] %vm393_vm1, %v3916_v2  ;;  %v258_v51 = vld [vmem:[%s4038_s7 + $0x38] sm:$0xff]  ;;  %v378_v52 = vmax.f32 %v346_v41, 0.0  ;;  %v363_v53 = vmax.f32 %v331_v42, 0.0  ;;  %v364_v54 = vmax.f32 %v332_v43, 0.0  ;;  %v309_v55 = vmul.f32 %v4032_v5, %v270_v39 }
  0x1b   : > { %440 = vst.msk [vmem:[#allocation2 + $0x168] sm:$0xff] %vm393_vm1, %v3916_v2  ;;  %441 = vst.msk [vmem:[#allocation2 + $0x170] sm:$0xff] %vm393_vm1, %v3916_v2  ;;  %v333_v56 = vadd.f32 %v4043_v6, %v294_v46  ;;  %v334_v57 = vadd.f32 %v4043_v6, %v295_v47  ;;  %v347_v58 = vadd.f32 %v4043_v6, %v308_v48  ;;  %v259_v0 = vld [vmem:[%s4038_s7 + $0x40] sm:$0xff]  ;;  %v260_v1 = vld [vmem:[%s4038_s7 + $0x48] sm:$0xff] }
  0x1c   : > { %443 = vst.msk [vmem:[#allocation2 + $0x180] sm:$0xff] %vm393_vm1, %v3916_v2  ;;  %444 = vst.msk [vmem:[#allocation2 + $0x188] sm:$0xff] %vm393_vm1, %v3916_v2  ;;  %v310_v59 = vmul.f32 %v4032_v5, %v271_v44  ;;  %v348_v60 = vadd.f32 %v4043_v6, %v309_v55  ;;  %v311_v61 = vmul.f32 %v4032_v5, %v272_v49  ;;  %v274_v9 = vld [vmem:[%s4038_s7 + $0xb8] sm:$0xff]  ;;  %v275_v18 = vld [vmem:[%s4038_s7 + $0xc0] sm:$0xff] }
  0x1d   : > { %446 = vst.msk [vmem:[#allocation2 + $0x198] sm:$0xff] %vm393_vm1, %v3916_v2  ;;  %447 = vst.msk [vmem:[#allocation2 + $0x1a0] sm:$0xff] %vm393_vm1, %v3916_v2  ;;  %v296_v62 = vmul.f32 %v4032_v5, %v257_v50  ;;  %v297_v63 = vmul.f32 %v4032_v5, %v258_v51  ;;  %v365_v3 = vmax.f32 %v333_v56, 0.0  ;;  %v366_v4 = vmax.f32 %v334_v57, 0.0  ;;  %v276_v19 = vld [vmem:[%s4038_s7 + $0xc8] sm:$0xff]  ;;  %v261_v22 = vld [vmem:[%s4038_s7 + $0x50] sm:$0xff] }
  0x1e   : > { %400 = vst.msk [vmem:[#allocation2 + $0x28] sm:$0x3] %vm396_vm2, %v3916_v2  ;;  %397 = vst.msk [vmem:[#allocation2 + $0x10] sm:$0x3] %vm396_vm2, %v3916_v2  ;;  %v379_v7 = vmax.f32 %v347_v58, 0.0  ;;  %v349_v8 = vadd.f32 %v4043_v6, %v310_v59  ;;  %v380_v10 = vmax.f32 %v348_v60, 0.0  ;;  %v350_v11 = vadd.f32 %v4043_v6, %v311_v61 }
  0x1f   : > { %403 = vst.msk [vmem:[#allocation2 + $0x40] sm:$0x3] %vm396_vm2, %v3916_v2  ;;  %406 = vst.msk [vmem:[#allocation2 + $0x58] sm:$0x3] %vm396_vm2, %v3916_v2  ;;  %v335_v12 = vadd.f32 %v4043_v6, %v296_v62  ;;  %v336_v13 = vadd.f32 %v4043_v6, %v297_v63  ;;  %v298_v15 = vmul.f32 %v4032_v5, %v259_v0  ;;  %v262_v30 = vld [vmem:[%s4038_s7 + $0x58] sm:$0xff]  ;;  %v264_v38 = vld [vmem:[%s4038_s7 + $0x68] sm:$0xff] }
  0x20   : > { %409 = vst.msk [vmem:[#allocation2 + $0x70] sm:$0x3] %vm396_vm2, %v3916_v2  ;;  %412 = vst.msk [vmem:[#allocation2 + $0x88] sm:$0x3] %vm396_vm2, %v3916_v2  ;;  %v381_v14 = vmax.f32 %v349_v8, 0.0  ;;  %v299_v16 = vmul.f32 %v4032_v5, %v260_v1  ;;  %v382_v26 = vmax.f32 %v350_v11, 0.0  ;;  %v313_v29 = vmul.f32 %v4032_v5, %v274_v9 }
  0x21   : > { %415 = vst.msk [vmem:[#allocation2 + $0xa0] sm:$0x3] %vm396_vm2, %v3916_v2  ;;  %418 = vst.msk [vmem:[#allocation2 + $0xb8] sm:$0x3] %vm396_vm2, %v3916_v2  ;;  %v367_v27 = vmax.f32 %v335_v12, 0.0  ;;  %v368_v28 = vmax.f32 %v336_v13, 0.0  ;;  %v337_v34 = vadd.f32 %v4043_v6, %v298_v15  ;;  %v314_v42 = vmul.f32 %v4032_v5, %v275_v18 }
  0x22   : > { %421 = vst.msk [vmem:[#allocation2 + $0xd0] sm:$0x3] %vm396_vm2, %v3916_v2  ;;  %424 = vst.msk [vmem:[#allocation2 + $0xe8] sm:$0x3] %vm396_vm2, %v3916_v2  ;;  %v4127_v31 = vld [vmem:[%s5141_s3 + $0x10] sm:$0xf]  ;;  %v352_v41 = vadd.f32 %v4043_v6, %v313_v29  ;;  %v315_v43 = vmul.f32 %v4032_v5, %v276_v19  ;;  %v301_v58 = vmul.f32 %v4032_v5, %v262_v30 }
  0x23   : > { %427 = vst.msk [vmem:[#allocation2 + $0x100] sm:$0x3] %vm396_vm2, %v3916_v2  ;;  %430 = vst.msk [vmem:[#allocation2 + $0x118] sm:$0x3] %vm396_vm2, %v3916_v2  ;;  %v277_v44 = vld [vmem:[%s4038_s7 + $0xd0] sm:$0xff]  ;;  %v369_v49 = vmax.f32 %v337_v34, 0.0  ;;  %v353_v56 = vadd.f32 %v4043_v6, %v314_v42 }
  0x24   : > { %433 = vst.msk [vmem:[#allocation2 + $0x130] sm:$0x3] %vm396_vm2, %v3916_v2  ;;  %436 = vst.msk [vmem:[#allocation2 + $0x148] sm:$0x3] %vm396_vm2, %v3916_v2  ;;  %v384_v55 = vmax.f32 %v352_v41, 0.0  ;;  %v354_v57 = vadd.f32 %v4043_v6, %v315_v43  ;;  %v280_v61 = vld [vmem:[%s4038_s7 + $0xe8] sm:$0xff]  ;;  %v340_v11 = vadd.f32 %v4043_v6, %v301_v58 }
  0x25   : > { %439 = vst.msk [vmem:[#allocation2 + $0x160] sm:$0x3] %vm396_vm2, %v3916_v2  ;;  %442 = vst.msk [vmem:[#allocation2 + $0x178] sm:$0x3] %vm396_vm2, %v3916_v2  ;;  %v4170_v62 = vld [vmem:[%s5141_s3 + $0xc] sm:$0xf] }
  0x26   : > { %445 = vst.msk [vmem:[#allocation2 + $0x190] sm:$0x3] %vm396_vm2, %v3916_v2  ;;  %448 = vst.msk [vmem:[#allocation2 + $0x1a8] sm:$0x3] %vm396_vm2, %v3916_v2  ;;  %v273_v2 = vld [vmem:[%s4038_s7 + $0xb0] sm:$0xff]  ;;  %v1102_v58 = vld [vmem:[#allocation2 + $0x2] sm:$0xff] }
  0x27   : > { %450 = vst.msk [vmem:[#allocation2 + $0x19] sm:$0xff] %vm393_vm1, %v361_v35  ;;  %451 = vst.msk [vmem:[#allocation2 + $0x21] sm:$0xff] %vm393_vm1, %v362_v36  ;;  %v312_v17 = vmul.f32 %v4032_v5, %v273_v2  ;;  %v338_v35 = vadd.f32 %v4043_v6, %v299_v16  ;;  %v385_v2 = vmax.f32 %v353_v56, 0.0 }
  0x28   : > { %464 = vst.msk [vmem:[#allocation2 + $0xc1] sm:$0xff] %vm393_vm1, %v375_v37  ;;  %465 = vst.msk [vmem:[#allocation2 + $0xc9] sm:$0xff] %vm393_vm1, %v376_v40  ;;  %v263_v37 = vld [vmem:[%s4038_s7 + $0x60] sm:$0xff] }
  0x29   : > { %466 = vst.msk [vmem:[#allocation2 + $0xd9] sm:$0xff] %vm393_vm1, %v377_v45  ;;  %467 = vst.msk [vmem:[#allocation2 + $0xe1] sm:$0xff] %vm393_vm1, %v378_v52  ;;  %v351_v36 = vadd.f32 %v4043_v6, %v312_v17  ;;  %v278_v45 = vld [vmem:[%s4038_s7 + $0xd8] sm:$0xff]  ;;  %v370_v50 = vmax.f32 %v338_v35, 0.0  ;;  %v300_v52 = vmul.f32 %v4032_v5, %v261_v22  ;;  %v302_v60 = vmul.f32 %v4032_v5, %v263_v37 }
  0x2a   : > { %452 = vst.msk [vmem:[#allocation2 + $0x31] sm:$0xff] %vm393_vm1, %v363_v53  ;;  %453 = vst.msk [vmem:[#allocation2 + $0x39] sm:$0xff] %vm393_vm1, %v364_v54  ;;  %v372_v22 = vmax.f32 %v340_v11, 0.0  ;;  %v281_v11 = vld [vmem:[%s4038_s7 + $0xf0] sm:$0xff] }
  0x2b   : > { %454 = vst.msk [vmem:[#allocation2 + $0x49] sm:$0xff] %vm393_vm1, %v365_v3  ;;  %455 = vst.msk [vmem:[#allocation2 + $0x51] sm:$0xff] %vm393_vm1, %v366_v4  ;;  %v383_v51 = vmax.f32 %v351_v36, 0.0  ;;  %v339_v59 = vadd.f32 %v4043_v6, %v300_v52  ;;  %v303_v3 = vmul.f32 %v4032_v5, %v264_v38  ;;  %v316_v4 = vmul.f32 %v4032_v5, %v277_v44 }
  0x2c   : > { %468 = vst.msk [vmem:[#allocation2 + $0xf1] sm:$0xff] %vm393_vm1, %v379_v7  ;;  %469 = vst.msk [vmem:[#allocation2 + $0xf9] sm:$0xff] %vm393_vm1, %v380_v10  ;;  %v317_v7 = vmul.f32 %v4032_v5, %v278_v45  ;;  %v386_v10 = vmax.f32 %v354_v57, 0.0  ;;  %v341_v15 = vadd.f32 %v4043_v6, %v302_v60 }
  0x2d   : > { %470 = vst.msk [vmem:[#allocation2 + $0x109] sm:$0xff] %vm393_vm1, %v381_v14  ;;  %471 = vst.msk [vmem:[#allocation2 + $0x111] sm:$0xff] %vm393_vm1, %v382_v26  ;;  %v371_v12 = vmax.f32 %v339_v59, 0.0  ;;  %v342_v16 = vadd.f32 %v4043_v6, %v303_v3  ;;  %v355_v17 = vadd.f32 %v4043_v6, %v316_v4  ;;  %v1103_v59 = vld [vmem:[#allocation2 + $0xa] sm:$0xff] }
  0x2e   : > { %v516_v23 = vld [vmem:[#allocation2 + $0x18] sm:$0xff]  ;;  %v517_v24 = vld [vmem:[#allocation2 + $0x20] sm:$0xff]  ;;  %456 = vst.msk [vmem:[#allocation2 + $0x61] sm:$0xff] %vm393_vm1, %v367_v27  ;;  %457 = vst.msk [vmem:[#allocation2 + $0x69] sm:$0xff] %vm393_vm1, %v368_v28  ;;  %v373_v28 = vmax.f32 %v341_v15, 0.0 }
  0x2f   : > { %v530_v25 = vld [vmem:[#allocation2 + $0xc0] sm:$0xff]  ;;  %v4129_v32 = vpack.c.bf16 %v517_v24, %v516_v23  ;;  %v531_v33 = vld [vmem:[#allocation2 + $0xc8] sm:$0xff]  ;;  %458 = vst.msk [vmem:[#allocation2 + $0x79] sm:$0xff] %vm393_vm1, %v369_v49  ;;  %459 = vst.msk [vmem:[#allocation2 + $0x81] sm:$0xff] %vm393_vm1, %v370_v50  ;;  %v356_v23 = vadd.f32 %v4043_v6, %v317_v7  ;;  %v374_v29 = vmax.f32 %v342_v16, 0.0  ;;  %v387_v30 = vmax.f32 %v355_v17, 0.0 }
  0x30   : > { %v4137_v39 = vpack.c.bf16 %v531_v33, %v530_v25  ;;  %v532_v40 = vld [vmem:[#allocation2 + $0xd8] sm:$0xff]  ;;  %v533_v46 = vld [vmem:[#allocation2 + $0xe0] sm:$0xff]  ;;  %472 = vst.msk [vmem:[#allocation2 + $0x121] sm:$0xff] %vm393_vm1, %v383_v51  ;;  %473 = vst.msk [vmem:[#allocation2 + $0x129] sm:$0xff] %vm393_vm1, %v384_v55  ;;  %v319_v25 = vmul.f32 %v4032_v5, %v280_v61  ;;  %v320_v17 = vmul.f32 %v4032_v5, %v281_v11 }
  0x31   : > { %3584 = vmatmul.mubr.msk.bf16.vlgmr.msra.gmra.mxu0 %vm393_vm1, %v4129_v32  ;;  %v518_v47 = vld [vmem:[#allocation2 + $0x30] sm:$0xff]  ;;  %v519_v48 = vld [vmem:[#allocation2 + $0x38] sm:$0xff]  ;;  %v4152_v53 = vpack.c.bf16 %v533_v46, %v532_v40  ;;  %474 = vst.msk [vmem:[#allocation2 + $0x139] sm:$0xff] %vm393_vm1, %v385_v2  ;;  %475 = vst.msk [vmem:[#allocation2 + $0x141] sm:$0xff] %vm393_vm1, %v386_v10  ;;  %v388_v33 = vmax.f32 %v356_v23, 0.0  ;;  %v1789_v23 = vsel %vm611_vm0, %v4127_v31, 0 }
  0x32   : > { %3599 = vmatprep.mubr.msk.bf16.mxu1 %vm393_vm1, %v4137_v39  ;;  %3650 = vmatpush3.bf16.msra.mxu0 %v4059_v21  ;;  %v4155_v54 = vpack.c.bf16 %v519_v48, %v518_v47  ;;  %v279_v21 = vld [vmem:[%s4038_s7 + $0xe0] sm:$0xff]  ;;  %v520_v63 = vld [vmem:[#allocation2 + $0x48] sm:$0xff]  ;;  %v521_v0 = vld [vmem:[#allocation2 + $0x50] sm:$0xff]  ;;  %460 = vst.msk [vmem:[#allocation2 + $0x91] sm:$0xff] %vm393_vm1, %v371_v12  ;;  %v358_v35 = vadd.f32 %v4043_v6, %v319_v25 }
  0x33   : > { %3894 = vmatprep.subr.msk.bf16.mxu0 %vm611_vm0, %v4127_v31  ;;  %3600 = vmatmul.mubr.msk.bf16.vlgmr.msra.gmra.mxu1 %vm393_vm1, %v4152_v53  ;;  %v534_v1 = vld [vmem:[#allocation2 + $0xf0] sm:$0xff]  ;;  %v4183_v8 = vpack.c.bf16 %v521_v0, %v520_v63  ;;  %v535_v9 = vld [vmem:[#allocation2 + $0xf8] sm:$0xff]  ;;  %v318_v24 = vmul.f32 %v4032_v5, %v279_v21  ;;  %461 = vst.msk [vmem:[#allocation2 + $0x99] sm:$0xff] %vm393_vm1, %v372_v22  ;;  %462 = vst.msk [vmem:[#allocation2 + $0xa9] sm:$0xff] %vm393_vm1, %v373_v28  ;;  %v1495_v31 = vsel %vm611_vm0, %v4170_v62, 0 }
  0x34   : > { %3587 = vmatprep.mubr.msk.bf16.mxu0 %vm393_vm1, %v4155_v54  ;;  %3616 = vmatpush3.bf16.msra.mxu1 %v4056_v20  ;;  %v4186_v13 = vpack.c.bf16 %v535_v9, %v534_v1  ;;  %v536_v14 = vld [vmem:[#allocation2 + $0x108] sm:$0xff]  ;;  %v537_v20 = vld [vmem:[#allocation2 + $0x110] sm:$0xff]  ;;  %463 = vst.msk [vmem:[#allocation2 + $0xb1] sm:$0xff] %vm393_vm1, %v374_v29  ;;  %476 = vst.msk [vmem:[#allocation2 + $0x151] sm:$0xff] %vm393_vm1, %v387_v30  ;;  %v390_v42 = vmax.f32 %v358_v35, 0.0  ;;  %v1134_v63 = vpack.c.bf16 %v1103_v59, %v1102_v58 }
  0x35   : > { %3893 = vmatprep.subr.msk.bf16.mxu1 %vm611_vm0, %v4170_v62  ;;  %v522_v18 = vld [vmem:[#allocation2 + $0x60] sm:$0xff]  ;;  %v523_v19 = vld [vmem:[#allocation2 + $0x68] sm:$0xff]  ;;  %v4201_v26 = vpack.c.bf16 %v537_v20, %v536_v14  ;;  %v357_v34 = vadd.f32 %v4043_v6, %v318_v24  ;;  %477 = vst.msk [vmem:[#allocation2 + $0x159] sm:$0xff] %vm393_vm1, %v388_v33  ;;  %v1106_v9 = vld [vmem:[#allocation2 + $0x32] sm:$0xff]  ;;  %v359_v24 = vadd.f32 %v4043_v6, %v320_v17 }
  0x36   : > { %3603 = vmatprep.mubr.msk.bf16.mxu1 %vm393_vm1, %v4186_v13  ;;  %v4203_v27 = vpack.c.bf16 %v523_v19, %v522_v18  ;;  %v524_v36 = vld [vmem:[#allocation2 + $0x78] sm:$0xff]  ;;  %v525_v37 = vld [vmem:[#allocation2 + $0x80] sm:$0xff]  ;;  %479 = vst.msk [vmem:[#allocation2 + $0x171] sm:$0xff] %vm393_vm1, %v390_v42  ;;  %v809_v1 = vld [vmem:[#allocation2 + $0x9] sm:$0xff] }
  0x37   : > { %v538_v38 = vld [vmem:[#allocation2 + $0x120] sm:$0xff]  ;;  %v539_v40 = vld [vmem:[#allocation2 + $0x128] sm:$0xff]  ;;  %v389_v41 = vmax.f32 %v357_v34, 0.0  ;;  %v4220_v44 = vpack.c.bf16 %v525_v37, %v524_v36  ;;  %v282_v12 = vld [vmem:[%s4038_s7 + $0xf8] sm:$0xff]  ;;  %v391_v30 = vmax.f32 %v359_v24, 0.0 }
  0x38   : > { %v4218_v43 = vpack.c.bf16 %v539_v40, %v538_v38  ;;  %v540_v45 = vld [vmem:[#allocation2 + $0x138] sm:$0xff]  ;;  %v541_v46 = vld [vmem:[#allocation2 + $0x140] sm:$0xff]  ;;  %v321_v20 = vmul.f32 %v4032_v5, %v282_v12  ;;  %v1111_v36 = vld [vmem:[#allocation2 + $0x6a] sm:$0xff] }
  0x39   : > { %3588 = vmatmul.mubr.msk.bf16.gmra.mxu0 %vm393_vm1, %v4183_v8  ;;  %478 = vst.msk [vmem:[#allocation2 + $0x169] sm:$0xff] %vm393_vm1, %v389_v41  ;;  %v526_v47 = vld [vmem:[#allocation2 + $0x90] sm:$0xff]  ;;  %v4226_v48 = vpack.c.bf16 %v541_v46, %v540_v45  ;;  %v808_v0 = vld [vmem:[#allocation2 + $0x1] sm:$0xff]  ;;  %v810_v15 = vld [vmem:[#allocation2 + $0x19] sm:$0xff] }
  0x3a   : > { %3591 = vmatprep.mubr.msk.bf16.mxu0 %vm393_vm1, %v4203_v27  ;;  %v527_v49 = vld [vmem:[#allocation2 + $0x98] sm:$0xff]  ;;  %v528_v51 = vld [vmem:[#allocation2 + $0xa8] sm:$0xff]  ;;  %v840_v3 = vpack.c.bf16 %v809_v1, %v808_v0  ;;  %v360_v25 = vadd.f32 %v4043_v6, %v321_v20  ;;  %v4280_v37 = vld [vmem:[%s5141_s3 + $0x14] sm:$0xf]  ;;  %480 = vst.msk [vmem:[#allocation2 + $0x181] sm:$0xff] %vm393_vm1, %v391_v30 }
  0x3b   : > { %3604 = vmatmul.mubr.msk.bf16.gmra.mxu1 %vm393_vm1, %v4201_v26  ;;  %v4230_v50 = vpack.c.bf16 %v527_v49, %v526_v47  ;;  %v529_v52 = vld [vmem:[#allocation2 + $0xb0] sm:$0xff]  ;;  %v1104_v4 = vld [vmem:[#allocation2 + $0x1a] sm:$0xff]  ;;  %v1105_v7 = vld [vmem:[#allocation2 + $0x22] sm:$0xff] }
  0x3c   : > { %3607 = vmatprep.mubr.msk.bf16.mxu1 %vm393_vm1, %v4218_v43  ;;  %v542_v55 = vld [vmem:[#allocation2 + $0x150] sm:$0xff]  ;;  %v543_v56 = vld [vmem:[#allocation2 + $0x158] sm:$0xff]  ;;  %v4238_v60 = vpack.c.bf16 %v529_v52, %v528_v51  ;;  %v4252_v14 = vpack.c.bf16 %v1105_v7, %v1104_v4  ;;  %v811_v16 = vld [vmem:[#allocation2 + $0x21] sm:$0xff]  ;;  %v392_v33 = vmax.f32 %v360_v25, 0.0 }
  0x3d   : > { %v4234_v57 = vpack.c.bf16 %v543_v56, %v542_v55  ;;  %v1107_v10 = vld [vmem:[#allocation2 + $0x3a] sm:$0xff]  ;;  %v812_v19 = vld [vmem:[#allocation2 + $0x31] sm:$0xff]  ;;  %v4262_v28 = vpack.c.bf16 %v811_v16, %v810_v15  ;;  %v1110_v35 = vld [vmem:[#allocation2 + $0x62] sm:$0xff] }
  0x3e   : > { %v4256_v18 = vpack.c.bf16 %v1107_v10, %v1106_v9  ;;  %v813_v22 = vld [vmem:[#allocation2 + $0x39] sm:$0xff]  ;;  %v1108_v6 = vld [vmem:[#allocation2 + $0x4a] sm:$0xff]  ;;  %481 = vst.msk [vmem:[#allocation2 + $0x189] sm:$0xff] %vm393_vm1, %v392_v33  ;;  %v4292_v41 = vpack.c.bf16 %v1111_v36, %v1110_v35  ;;  %v816_v42 = vld [vmem:[#allocation2 + $0x61] sm:$0xff] }
  0x3f   : > { %v4267_v29 = vld [vmem:[%s5141_s3 + $0x18] sm:$0xf]  ;;  %v4271_v5 = vpack.c.bf16 %v813_v22, %v812_v19  ;;  %v814_v38 = vld [vmem:[#allocation2 + $0x49] sm:$0xff]  ;;  %v819_v59 = vld [vmem:[#allocation2 + $0x81] sm:$0xff] }
  0x40   : > { %v544_v21 = vld [vmem:[#allocation2 + $0x168] sm:$0xff]  ;;  %v545_v61 = vld [vmem:[#allocation2 + $0x170] sm:$0xff]  ;;  %v1112_v49 = vld [vmem:[#allocation2 + $0x7a] sm:$0xff] }
  0x41   : > { %3592 = vmatmul.mubr.msk.bf16.gmra.mxu0 %vm393_vm1, %v4220_v44  ;;  %v4242_v2 = vpack.c.bf16 %v545_v61, %v544_v21  ;;  %v1109_v34 = vld [vmem:[#allocation2 + $0x52] sm:$0xff]  ;;  %v817_v45 = vld [vmem:[#allocation2 + $0x69] sm:$0xff]  ;;  %v1115_v55 = vld [vmem:[#allocation2 + $0x9a] sm:$0xff] }
  0x42   : > { %3595 = vmatprep.mubr.msk.bf16.mxu0 %vm393_vm1, %v4230_v50  ;;  %v4290_v62 = vpack.c.bf16 %v1109_v34, %v1108_v6  ;;  %v815_v40 = vld [vmem:[#allocation2 + $0x51] sm:$0xff]  ;;  %v4300_v47 = vpack.c.bf16 %v817_v45, %v816_v42  ;;  %v1113_v51 = vld [vmem:[#allocation2 + $0x82] sm:$0xff]  ;;  %v818_v58 = vld [vmem:[#allocation2 + $0x79] sm:$0xff] }
  0x43   : > { %3608 = vmatmul.mubr.msk.bf16.gmra.mxu1 %vm393_vm1, %v4226_v48  ;;  %v4296_v46 = vpack.c.bf16 %v815_v40, %v814_v38  ;;  %v1114_v52 = vld [vmem:[#allocation2 + $0x92] sm:$0xff]  ;;  %v4308_v56 = vpack.c.bf16 %v1113_v51, %v1112_v49  ;;  %v4312_v0 = vpack.c.bf16 %v819_v59, %v818_v58  ;;  %v1118_v7 = vld [vmem:[#allocation2 + $0xc2] sm:$0xff]  ;;  %v1119_v9 = vld [vmem:[#allocation2 + $0xca] sm:$0xff] }
  0x44   : > { %3611 = vmatprep.mubr.msk.bf16.mxu1 %vm393_vm1, %v4234_v57  ;;  %v4310_v21 = vpack.c.bf16 %v1115_v55, %v1114_v52  ;;  %v820_v61 = vld [vmem:[#allocation2 + $0x91] sm:$0xff]  ;;  %v822_v11 = vld [vmem:[#allocation2 + $0xa9] sm:$0xff]  ;;  %v4326_v15 = vpack.c.bf16 %v1119_v9, %v1118_v7  ;;  %v824_v16 = vld [vmem:[#allocation2 + $0xc1] sm:$0xff] }
  0x45   : > { %v1117_v4 = vld [vmem:[#allocation2 + $0xb2] sm:$0xff]  ;;  %v825_v17 = vld [vmem:[#allocation2 + $0xc9] sm:$0xff]  ;;  %v1120_v22 = vld [vmem:[#allocation2 + $0xda] sm:$0xff] }
  0x46   : > { %v823_v12 = vld [vmem:[#allocation2 + $0xb1] sm:$0xff]  ;;  %v4332_v19 = vpack.c.bf16 %v825_v17, %v824_v16  ;;  %v1123_v25 = vld [vmem:[#allocation2 + $0xfa] sm:$0xff]  ;;  %v1126_v45 = vld [vmem:[#allocation2 + $0x122] sm:$0xff] }
  0x47   : > { %v4328_v20 = vpack.c.bf16 %v823_v12, %v822_v11  ;;  %v1122_v24 = vld [vmem:[#allocation2 + $0xf2] sm:$0xff]  ;;  %v1124_v40 = vld [vmem:[#allocation2 + $0x10a] sm:$0xff]  ;;  %v832_v59 = vld [vmem:[#allocation2 + $0x121] sm:$0xff] }
  0x48   : > { %v826_v33 = vld [vmem:[#allocation2 + $0xd9] sm:$0xff]  ;;  %v4342_v6 = vpack.c.bf16 %v1123_v25, %v1122_v24  ;;  %v828_v34 = vld [vmem:[#allocation2 + $0xf1] sm:$0xff]  ;;  %v830_v52 = vld [vmem:[#allocation2 + $0x109] sm:$0xff] }
  0x49   : > { %3596 = vmatmul.mubr.msk.bf16.gmra.mxu0 %vm393_vm1, %v4238_v60  ;;  %v829_v35 = vld [vmem:[#allocation2 + $0xf9] sm:$0xff]  ;;  %v1127_v49 = vld [vmem:[#allocation2 + $0x12a] sm:$0xff]  ;;  %v1129_v7 = vld [vmem:[#allocation2 + $0x142] sm:$0xff] }
  0x4a   : > { %3651 = vmatprep.mubr.msk.bf16.mxu0 %vm393_vm1, %v1134_v63  ;;  %v821_v63 = vld [vmem:[#allocation2 + $0x99] sm:$0xff]  ;;  %v4348_v38 = vpack.c.bf16 %v829_v35, %v828_v34  ;;  %v831_v55 = vld [vmem:[#allocation2 + $0x111] sm:$0xff]  ;;  %v4358_v58 = vpack.c.bf16 %v1127_v49, %v1126_v45  ;;  %v835_v17 = vld [vmem:[#allocation2 + $0x141] sm:$0xff]  ;;  %v2378_v49 = vsel %vm611_vm0, %v4267_v29, 0 }
  0x4b   : > { %3612 = vmatmul.mubr.msk.bf16.gmra.mxu1 %vm393_vm1, %v4242_v2  ;;  %v4316_v1 = vpack.c.bf16 %v821_v63, %v820_v61  ;;  %v1125_v42 = vld [vmem:[#allocation2 + $0x112] sm:$0xff]  ;;  %v833_v61 = vld [vmem:[#allocation2 + $0x129] sm:$0xff]  ;;  %v851_v63 = vpack.c.bf16 %v831_v55, %v830_v52  ;;  %v1131_v11 = vld [vmem:[#allocation2 + $0x15a] sm:$0xff]  ;;  %v2083_v55 = vsel %vm611_vm0, %v4280_v37, 0 }
  0x4c   : > { %3617 = vmatprep.mubr.msk.bf16.mxu1 %vm393_vm1, %v840_v3  ;;  %v1116_v3 = vld [vmem:[#allocation2 + $0xaa] sm:$0xff]  ;;  %v4356_v51 = vpack.c.bf16 %v1125_v42, %v1124_v40  ;;  %v1130_v9 = vld [vmem:[#allocation2 + $0x152] sm:$0xff]  ;;  %v3409_v52 = vld [vmem:[%s5141_s3 + $0x20] sm:$0xf] }
  0x4d   : > { %v4324_v10 = vpack.c.bf16 %v1117_v4, %v1116_v3  ;;  %v852_v3 = vpack.c.bf16 %v833_v61, %v832_v59  ;;  %v1128_v4 = vld [vmem:[#allocation2 + $0x13a] sm:$0xff]  ;;  %v1133_v34 = vld [vmem:[#allocation2 + $0x172] sm:$0xff]  ;;  %v838_v40 = vld [vmem:[#allocation2 + $0x169] sm:$0xff] }
  0x4e   : > { %v4366_v12 = vpack.c.bf16 %v1129_v7, %v1128_v4  ;;  %v834_v16 = vld [vmem:[#allocation2 + $0x139] sm:$0xff]  ;;  %v839_v42 = vld [vmem:[#allocation2 + $0x171] sm:$0xff] }
  0x4f   : > { %v837_v24 = vld [vmem:[#allocation2 + $0x159] sm:$0xff]  ;;  %v853_v25 = vpack.c.bf16 %v835_v17, %v834_v16  ;;  %v855_v45 = vpack.c.bf16 %v839_v42, %v838_v40  ;;  %v484_v40 = vld [vmem:[%s4581_s25 + $0x10] sm:$0xff] }
  0x51   : > { %3652 = vmatmul.mubr.msk.bf16.vlgmr.msra.gmra.mxu0 %vm393_vm1, %v4252_v14 }
  0x52   : > { %3718 = vmatpush3.bf16.msra.mxu0 %v1789_v23  ;;  %3655 = vmatprep.mubr.msk.bf16.mxu0 %vm393_vm1, %v4256_v18  ;;  %v1121_v23 = vld [vmem:[#allocation2 + $0xe2] sm:$0xff] }
  0x53   : > { %3896 = vmatprep.subr.msk.bf16.mxu0 %vm611_vm0, %v4267_v29  ;;  %3618 = vmatmul.mubr.msk.bf16.vlgmr.msra.gmra.mxu1 %vm393_vm1, %v4262_v28  ;;  %v4340_v30 = vpack.c.bf16 %v1121_v23, %v1120_v22  ;;  %v4368_v22 = vpack.c.bf16 %v1131_v11, %v1130_v9  ;;  %v836_v23 = vld [vmem:[#allocation2 + $0x151] sm:$0xff]  ;;  %v1426_v29 = vld [vmem:[#allocation2 + $0x180] sm:$0xff] }
  0x54   : > { %3684 = vmatpush3.bf16.msra.mxu1 %v1495_v31  ;;  %3621 = vmatprep.mubr.msk.bf16.mxu1 %vm393_vm1, %v4271_v5  ;;  %v827_v31 = vld [vmem:[#allocation2 + $0xe1] sm:$0xff] }
  0x55   : > { %3895 = vmatprep.subr.msk.bf16.mxu1 %vm611_vm0, %v4280_v37  ;;  %v4344_v36 = vpack.c.bf16 %v827_v31, %v826_v33  ;;  %v854_v33 = vpack.c.bf16 %v837_v24, %v836_v23  ;;  %v1132_v31 = vld [vmem:[#allocation2 + $0x16a] sm:$0xff] }
  0x56   : > { %v4376_v35 = vpack.c.bf16 %v1133_v34, %v1132_v31  ;;  %v1427_v37 = vld [vmem:[#allocation2 + $0x188] sm:$0xff] }
  0x59   : > { %3656 = vmatmul.mubr.msk.bf16.gmra.mxu0 %vm393_vm1, %v4290_v62 }
  0x5a   : > { %3659 = vmatprep.mubr.msk.bf16.mxu0 %vm393_vm1, %v4292_v41 }
  0x5b   : > { %3622 = vmatmul.mubr.msk.bf16.gmra.mxu1 %vm393_vm1, %v4296_v46 }
  0x5c   : > { %3625 = vmatprep.mubr.msk.bf16.mxu1 %vm393_vm1, %v4300_v47 }
  0x61   : > { %3660 = vmatmul.mubr.msk.bf16.gmra.mxu0 %vm393_vm1, %v4308_v56 }
  0x62   : > { %3663 = vmatprep.mubr.msk.bf16.mxu0 %vm393_vm1, %v4310_v21 }
  0x63   : > { %3626 = vmatmul.mubr.msk.bf16.gmra.mxu1 %vm393_vm1, %v4312_v0 }
  0x64   : > { %3629 = vmatprep.mubr.msk.bf16.mxu1 %vm393_vm1, %v4316_v1 }
  0x69   : > { %3664 = vmatmul.mubr.msk.bf16.gmra.mxu0 %vm393_vm1, %v4324_v10 }
  0x6a   : > { %3667 = vmatprep.mubr.msk.bf16.mxu0 %vm393_vm1, %v4326_v15 }
  0x6b   : > { %3630 = vmatmul.mubr.msk.bf16.gmra.mxu1 %vm393_vm1, %v4328_v20 }
  0x6c   : > { %3633 = vmatprep.mubr.msk.bf16.mxu1 %vm393_vm1, %v4332_v19 }
  0x71   : > { %3668 = vmatmul.mubr.msk.bf16.gmra.mxu0 %vm393_vm1, %v4340_v30 }
  0x72   : > { %3671 = vmatprep.mubr.msk.bf16.mxu0 %vm393_vm1, %v4342_v6 }
  0x73   : > { %3634 = vmatmul.mubr.msk.bf16.gmra.mxu1 %vm393_vm1, %v4344_v36 }
  0x74   : > { %3637 = vmatprep.mubr.msk.bf16.mxu1 %vm393_vm1, %v4348_v38 }
  0x79   : > { %3672 = vmatmul.mubr.msk.bf16.gmra.mxu0 %vm393_vm1, %v4356_v51 }
  0x7a   : > { %3675 = vmatprep.mubr.msk.bf16.mxu0 %vm393_vm1, %v4358_v58 }
  0x7b   : > { %3638 = vmatmul.mubr.msk.bf16.gmra.mxu1 %vm393_vm1, %v851_v63 }
  0x7c   : > { %3641 = vmatprep.mubr.msk.bf16.mxu1 %vm393_vm1, %v852_v3 }
  0x81   : > { %3676 = vmatmul.mubr.msk.bf16.gmra.mxu0 %vm393_vm1, %v4366_v12 }
  0x82   : > { %3679 = vmatprep.mubr.msk.bf16.mxu0 %vm393_vm1, %v4368_v22 }
  0x83   : > { %3642 = vmatmul.mubr.msk.bf16.gmra.mxu1 %vm393_vm1, %v853_v25 }
  0x84   : > { %3645 = vmatprep.mubr.msk.bf16.mxu1 %vm393_vm1, %v854_v33 }
  0x89   : > { %3680 = vmatmul.mubr.msk.bf16.gmra.mxu0 %vm393_vm1, %v4376_v35 }
  0x8a   : > { %3719 = vmatprep.mubr.msk.bf16.mxu0 %vm393_vm1, %v4262_v28 }
  0x8b   : > { %3646 = vmatmul.mubr.msk.bf16.gmra.mxu1 %vm393_vm1, %v855_v45 }
  0x8c   : > { %3685 = vmatprep.mubr.msk.bf16.mxu1 %vm393_vm1, %v4129_v32  ;;  %v3392_v32 = vld [vmem:[%s5141_s3 + $0x1c] sm:$0xf] }
  0x91   : > { %3720 = vmatmul.mubr.msk.bf16.vlgmr.msra.gmra.mxu0 %vm393_vm1, %v4271_v5 }
  0x92   : > { %3786 = vmatpush3.bf16.msra.mxu0 %v2378_v49  ;;  %3723 = vmatprep.mubr.msk.bf16.mxu0 %vm393_vm1, %v4296_v46 }
  0x93   : > { %3898 = vmatprep.subr.msk.bf16.mxu0 %vm611_vm0, %v3409_v52  ;;  %3686 = vmatmul.mubr.msk.bf16.vlgmr.msra.gmra.mxu1 %vm393_vm1, %v4155_v54 }
  0x94   : > { %3752 = vmatpush3.bf16.msra.mxu1 %v2083_v55  ;;  %3689 = vmatprep.mubr.msk.bf16.mxu1 %vm393_vm1, %v4183_v8 }
  0x95   : > { %3897 = vmatprep.subr.msk.bf16.mxu1 %vm611_vm0, %v3392_v32 }
  0x99   : > { %3724 = vmatmul.mubr.msk.bf16.gmra.mxu0 %vm393_vm1, %v4300_v47 }
  0x9a   : > { %3727 = vmatprep.mubr.msk.bf16.mxu0 %vm393_vm1, %v4312_v0 }
  0x9b   : > { %3690 = vmatmul.mubr.msk.bf16.gmra.mxu1 %vm393_vm1, %v4203_v27 }
  0x9c   : > { %3693 = vmatprep.mubr.msk.bf16.mxu1 %vm393_vm1, %v4220_v44 }
  0xa1   : > { %3728 = vmatmul.mubr.msk.bf16.gmra.mxu0 %vm393_vm1, %v4316_v1  ;;  %v1443_v1 = vpack.c.bf16 %v1427_v37, %v1426_v29 }
  0xa2   : > { %3731 = vmatprep.mubr.msk.bf16.mxu0 %vm393_vm1, %v4328_v20  ;;  %v2966_v20 = vsel %vm611_vm0, %v3409_v52, 0 }
  0xa3   : > { %3694 = vmatmul.mubr.msk.bf16.gmra.mxu1 %vm393_vm1, %v4230_v50 }
  0xa4   : > { %3697 = vmatprep.mubr.msk.bf16.mxu1 %vm393_vm1, %v4238_v60 }
  0xa9   : > { %3732 = vmatmul.mubr.msk.bf16.gmra.mxu0 %vm393_vm1, %v4332_v19  ;;  %v2672_v19 = vsel %vm611_vm0, %v3392_v32, 0  ;;  %v2875_v32 = vld [vmem:[#allocation2 + $0x92] sm:$0xff] }
  0xaa   : > { %3735 = vmatprep.mubr.msk.bf16.mxu0 %vm393_vm1, %v4344_v36  ;;  %v2294_v36 = vld [vmem:[#allocation2 + $0xe0] sm:$0xff] }
  0xab   : > { %3698 = vmatmul.mubr.msk.bf16.gmra.mxu1 %vm393_vm1, %v4137_v39  ;;  %v1720_v39 = vld [vmem:[#allocation2 + $0x181] sm:$0xff] }
  0xac   : > { %3701 = vmatprep.mubr.msk.bf16.mxu1 %vm393_vm1, %v4152_v53  ;;  %v1721_v53 = vld [vmem:[#allocation2 + $0x189] sm:$0xff] }
  0xad   : > { %v4448_v28 = vpack.c.bf16 %v1721_v53, %v1720_v39  ;;  %v2876_v39 = vld [vmem:[#allocation2 + $0x9a] sm:$0xff] }
  0xae   : > { %v485_v53 = vld [vmem:[%s4581_s25 + $0x18] sm:$0xff] }
  0xb1   : > { %3736 = vmatmul.mubr.msk.bf16.gmra.mxu0 %vm393_vm1, %v4348_v38 }
  0xb2   : > { %3739 = vmatprep.mubr.msk.bf16.mxu0 %vm393_vm1, %v851_v63 }
  0xb3   : > { %3702 = vmatmul.mubr.msk.bf16.gmra.mxu1 %vm393_vm1, %v4186_v13 }
  0xb4   : > { %3705 = vmatprep.mubr.msk.bf16.mxu1 %vm393_vm1, %v4201_v26 }
  0xb9   : > { %3740 = vmatmul.mubr.msk.bf16.gmra.mxu0 %vm393_vm1, %v852_v3  ;;  %v2310_v3 = vld [vmem:[#allocation2 + $0x1a0] sm:$0xff] }
  0xba   : > { %3743 = vmatprep.mubr.msk.bf16.mxu0 %vm393_vm1, %v853_v25 }
  0xbb   : > { %3706 = vmatmul.mubr.msk.bf16.gmra.mxu1 %vm393_vm1, %v4218_v43 }
  0xbc   : > { %3709 = vmatprep.mubr.msk.bf16.mxu1 %vm393_vm1, %v4226_v48 }
  0xc1   : > { %3744 = vmatmul.mubr.msk.bf16.gmra.mxu0 %vm393_vm1, %v854_v33 }
  0xc2   : > { %3747 = vmatprep.mubr.msk.bf16.mxu0 %vm393_vm1, %v855_v45 }
  0xc3   : > { %3710 = vmatmul.mubr.msk.bf16.gmra.mxu1 %vm393_vm1, %v4234_v57 }
  0xc4   : > { %3713 = vmatprep.mubr.msk.bf16.mxu1 %vm393_vm1, %v4242_v2 }
  0xc9   : > { %3748 = vmatmul.mubr.msk.bf16.gmra.mxu0 %vm393_vm1, %v4448_v28 }
  0xca   : > { %3787 = vmatprep.mubr.msk.bf16.mxu0 %vm393_vm1, %v4155_v54  ;;  %v2291_v54 = vld [vmem:[#allocation2 + $0xc0] sm:$0xff] }
  0xcb   : > { %3714 = vmatmul.mubr.msk.bf16.gmra.mxu1 %vm393_vm1, %v1443_v1 }
  0xcc   : > { %3753 = vmatprep.mubr.msk.bf16.mxu1 %vm393_vm1, %v4252_v14  ;;  %v2293_v14 = vld [vmem:[#allocation2 + $0xd8] sm:$0xff] }
  0xd1   : > { %3788 = vmatmul.mubr.msk.bf16.vlgmr.msra.gmra.mxu0 %vm393_vm1, %v4183_v8  ;;  %v2292_v8 = vld [vmem:[#allocation2 + $0xc8] sm:$0xff] }
  0xd2   : > { %3854 = vmatpush3.bf16.msra.mxu0 %v2966_v20  ;;  %3791 = vmatprep.mubr.msk.bf16.mxu0 %vm393_vm1, %v4203_v27  ;;  %v2317_v27 = vpack.c.bf16 %v2292_v8, %v2291_v54  ;;  %v483_v20 = vld [vmem:[%s4581_s25 + $0x8] sm:$0xff]  ;;  %v2581_v54 = vld [vmem:[#allocation2 + $0x91] sm:$0xff]  ;;  %v2582_v8 = vld [vmem:[#allocation2 + $0x99] sm:$0xff] }
  0xd3   : > { %3754 = vmatmul.mubr.msk.bf16.vlgmr.msra.gmra.mxu1 %vm393_vm1, %v4256_v18 }
  0xd4   : > { %3820 = vmatpush3.bf16.msra.mxu1 %v2672_v19  ;;  %3757 = vmatprep.mubr.msk.bf16.mxu1 %vm393_vm1, %v4290_v62 }
  0xd9   : > { %3792 = vmatmul.mubr.msk.bf16.gmra.mxu0 %vm393_vm1, %v4220_v44  ;;  %v2318_v44 = vpack.c.bf16 %v2294_v36, %v2293_v14 }
  0xda   : > { %3795 = vmatprep.mubr.msk.bf16.mxu0 %vm393_vm1, %v4230_v50 }
  0xdb   : > { %3758 = vmatmul.mubr.msk.bf16.gmra.mxu1 %vm393_vm1, %v4292_v41 }
  0xdc   : > { %3761 = vmatprep.mubr.msk.bf16.mxu1 %vm393_vm1, %v4308_v56 }
  0xe1   : > { %3796 = vmatmul.mubr.msk.bf16.gmra.mxu0 %vm393_vm1, %v4238_v60 }
  0xe2   : > { %3799 = vmatprep.mubr.msk.bf16.mxu0 %vm393_vm1, %v2317_v27 }
  0xe3   : > { %3762 = vmatmul.mubr.msk.bf16.gmra.mxu1 %vm393_vm1, %v4310_v21 }
  0xe4   : > { %3765 = vmatprep.mubr.msk.bf16.mxu1 %vm393_vm1, %v4324_v10 }
  0xe9   : > { %3800 = vmatmul.mubr.msk.bf16.gmra.mxu0 %vm393_vm1, %v2318_v44 }
  0xea   : > { %3803 = vmatprep.mubr.msk.bf16.mxu0 %vm393_vm1, %v4186_v13 }
  0xeb   : > { %3766 = vmatmul.mubr.msk.bf16.gmra.mxu1 %vm393_vm1, %v4326_v15 }
  0xec   : > { %3769 = vmatprep.mubr.msk.bf16.mxu1 %vm393_vm1, %v4340_v30 }
  0xf1   : > { %v3585_v50 = vpop.f32.mrf.mxu0  ;;  %3804 = vmatmul.mubr.msk.bf16.gmra.mxu0 %vm393_vm1, %v4201_v26 }
  0xf2   : > { %3807 = vmatprep.mubr.msk.bf16.mxu0 %vm393_vm1, %v4218_v43  ;;  %v778_v52 = vadd.f32 %v3585_v50, %v484_v40  ;;  %v2878_v40 = vld [vmem:[#allocation2 + $0xb2] sm:$0xff] }
  0xf3   : > { %v4493_v60 = vpop.f32.mrf.mxu0  ;;  %v4495_v21 = vpop.f32.mrf.mxu1  ;;  %3770 = vmatmul.mubr.msk.bf16.gmra.mxu1 %vm393_vm1, %v4342_v6 }
  0xf4   : > { %3773 = vmatprep.mubr.msk.bf16.mxu1 %vm393_vm1, %v4356_v51 }
  0xf5   : > { %v4499_v13 = vpop.f32.mrf.mxu0  ;;  %v4503_v10 = vpop.f32.mrf.mxu1 }
  0xf6   : > { %v779_v27 = vadd.f32 %v4499_v13, %v485_v53  ;;  %v2877_v13 = vld [vmem:[#allocation2 + $0xaa] sm:$0xff]  ;;  %v489_v53 = vld [vmem:[%s4581_s25 + $0x38] sm:$0xff] }
  0xf7   : > { %v4505_v15 = vpop.f32.mrf.mxu0  ;;  %v4507_v26 = vpop.f32.mrf.mxu1 }
  0xf9   : > { %v4509_v30 = vpop.f32.mrf.mxu0  ;;  %3808 = vmatmul.mubr.msk.bf16.gmra.mxu0 %vm393_vm1, %v4226_v48  ;;  %v4513_v43 = vpop.f32.mrf.mxu1 }
  0xfa   : > { %3811 = vmatprep.mubr.msk.bf16.mxu0 %vm393_vm1, %v4234_v57 }
  0xfb   : > { %v4517_v6 = vpop.f32.mrf.mxu0  ;;  %v4519_v38 = vpop.f32.mrf.mxu1  ;;  %3774 = vmatmul.mubr.msk.bf16.gmra.mxu1 %vm393_vm1, %v4358_v58  ;;  %v2309_v58 = vld [vmem:[#allocation2 + $0x198] sm:$0xff] }
  0xfc   : > { %3777 = vmatprep.mubr.msk.bf16.mxu1 %vm393_vm1, %v4366_v12  ;;  %v2326_v11 = vpack.c.bf16 %v2310_v3, %v2309_v58  ;;  %v2015_v12 = vld [vmem:[#allocation2 + $0x18a] sm:$0xff] }
  0xfd   : > { %v4523_v51 = vpop.f32.mrf.mxu0  ;;  %v4527_v59 = vpop.f32.mrf.mxu1 }
  0xff   : > { %v4529_v48 = vpop.f32.mrf.mxu0  ;;  %v4531_v61 = vpop.f32.mrf.mxu1 }
 0x101   : > { %v4533_v63 = vpop.f32.mrf.mxu0  ;;  %3812 = vmatmul.mubr.msk.bf16.gmra.mxu0 %vm393_vm1, %v4242_v2  ;;  %v4537_v57 = vpop.f32.mrf.mxu1  ;;  %v2014_v2 = vld [vmem:[#allocation2 + $0x182] sm:$0xff] }
 0x102   : > { %3815 = vmatprep.mubr.msk.bf16.mxu0 %vm393_vm1, %v1443_v1  ;;  %v4556_v24 = vpack.c.bf16 %v2015_v12, %v2014_v2  ;;  %v486_v2 = vld [vmem:[%s4581_s25 + $0x20] sm:$0xff] }
 0x103   : > { %v4540_v4 = vpop.f32.mrf.mxu0  ;;  %v4542_v7 = vpop.f32.mrf.mxu1  ;;  %3778 = vmatmul.mubr.msk.bf16.gmra.mxu1 %vm393_vm1, %v4368_v22 }
 0x104   : > { %3781 = vmatprep.mubr.msk.bf16.mxu1 %vm393_vm1, %v4376_v35 }
 0x105   : > { %v4546_v9 = vpop.f32.mrf.mxu0  ;;  %v4550_v16 = vpop.f32.mrf.mxu1 }
 0x107   : > { %v4552_v17 = vpop.f32.mrf.mxu0  ;;  %v4554_v23 = vpop.f32.mrf.mxu1 }
 0x109   : > { %v4558_v25 = vpop.f32.mrf.mxu0  ;;  %3816 = vmatmul.mubr.msk.bf16.gmra.mxu0 %vm393_vm1, %v2326_v11  ;;  %v4561_v22 = vpop.f32.mrf.mxu1 }
 0x10a   : > { %3855 = vmatprep.mubr.msk.bf16.mxu0 %vm393_vm1, %v4256_v18 }
 0x10b   : > { %v4565_v33 = vpop.f32.mrf.mxu0  ;;  %v4567_v31 = vpop.f32.mrf.mxu1  ;;  %3782 = vmatmul.mubr.msk.bf16.gmra.mxu1 %vm393_vm1, %v4556_v24 }
 0x10c   : > { %3821 = vmatprep.mubr.msk.bf16.mxu1 %vm393_vm1, %v4271_v5  ;;  %v482_v5 = vld [vmem:[%s4581_s25] sm:$0xff] }
 0x10d   : > { %v4571_v34 = vpop.f32.mrf.mxu0  ;;  %v4575_v35 = vpop.f32.mrf.mxu1  ;;  %v776_v37 = vadd.f32 %v4493_v60, %v482_v5  ;;  %v777_v60 = vadd.f32 %v4505_v15, %v483_v20  ;;  %v2584_v20 = vld [vmem:[#allocation2 + $0xb1] sm:$0xff] }
 0x10f   : > { %v4583_v18 = vpop.f32.mrf.mxu0  ;;  %v4586_v42 = vpop.f32.mrf.mxu1 }
 0x111   : > { %v3653_v45 = vpop.f32.mrf.mxu0  ;;  %3856 = vmatmul.mubr.msk.bf16.vlgmr.msra.gmra.mxu0 %vm393_vm1, %v4290_v62  ;;  %v4591_v49 = vpop.f32.mrf.mxu1 }
 0x112   : > { %3859 = vmatprep.mubr.msk.bf16.mxu0 %vm393_vm1, %v4292_v41  ;;  %v2903_v41 = vpack.c.bf16 %v2876_v39, %v2875_v32  ;;  %v2880_v32 = vld [vmem:[#allocation2 + $0xca] sm:$0xff] }
 0x113   : > { %v1237_v55 = vpop.f32.mrf.mxu0  ;;  %v3619_v29 = vpop.f32.mrf.mxu1  ;;  %3822 = vmatmul.mubr.msk.bf16.vlgmr.msra.gmra.mxu1 %vm393_vm1, %v4296_v46  ;;  %v488_v46 = vld [vmem:[%s4581_s25 + $0x30] sm:$0xff] }
 0x114   : > { %v1072_v1 = vadd.f32 %v3619_v29, %v778_v52  ;;  %3825 = vmatprep.mubr.msk.bf16.mxu1 %vm393_vm1, %v4300_v47  ;;  %v2609_v47 = vpack.c.bf16 %v2582_v8, %v2581_v54  ;;  %v2879_v52 = vld [vmem:[#allocation2 + $0xc2] sm:$0xff] }
 0x115   : > { %v3654_v62 = vpop.f32.mrf.mxu0  ;;  %v943_v19 = vpop.f32.mrf.mxu1  ;;  %v2905_v54 = vpack.c.bf16 %v2880_v32, %v2879_v52  ;;  %v2585_v8 = vld [vmem:[#allocation2 + $0xc1] sm:$0xff] }
 0x116   : > { %v1070_v14 = vadd.f32 %v943_v19, %v776_v37  ;;  %v4603_v44 = vadd.f32 %v3653_v45, %v1072_v1  ;;  %v782_v45 = vadd.f32 %v4509_v30, %v488_v46  ;;  %v2904_v30 = vpack.c.bf16 %v2878_v40, %v2877_v13  ;;  %v2583_v1 = vld [vmem:[#allocation2 + $0xa9] sm:$0xff]  ;;  %v490_v40 = vld [vmem:[%s4581_s25 + $0x40] sm:$0xff] }
 0x117   : > { %v1240_v36 = vpop.f32.mrf.mxu0  ;;  %v3620_v50 = vpop.f32.mrf.mxu1 }
 0x118   : > { %v1073_v58 = vadd.f32 %v3620_v50, %v779_v27  ;;  %v4609_v11 = vadd.f32 %v1237_v55, %v1070_v14  ;;  %v780_v55 = vadd.f32 %v4517_v6, %v486_v2  ;;  %v2586_v27 = vld [vmem:[#allocation2 + $0xc9] sm:$0xff] }
 0x119   : > { %v3657_v3 = vpop.f32.mrf.mxu0  ;;  %3860 = vmatmul.mubr.msk.bf16.gmra.mxu0 %vm393_vm1, %v4308_v56  ;;  %v946_v12 = vpop.f32.mrf.mxu1  ;;  %v492_v50 = vld [vmem:[%s4581_s25 + $0x50] sm:$0xff] }
 0x11a   : > { %3863 = vmatprep.mubr.msk.bf16.mxu0 %vm393_vm1, %v2903_v41  ;;  %v1071_v5 = vadd.f32 %v946_v12, %v777_v60  ;;  %v4614_v39 = vadd.f32 %v3654_v62, %v1073_v58  ;;  %v487_v41 = vld [vmem:[%s4581_s25 + $0x28] sm:$0xff]  ;;  %v2610_v58 = vpack.c.bf16 %v2584_v20, %v2583_v1  ;;  %v2611_v12 = vpack.c.bf16 %v2586_v27, %v2585_v8  ;;  %v2589_v27 = vld [vmem:[#allocation2 + $0xf1] sm:$0xff] }
 0x11b   : > { %v1253_v15 = vpop.f32.mrf.mxu0  ;;  %v3623_v56 = vpop.f32.mrf.mxu1  ;;  %3826 = vmatmul.mubr.msk.bf16.gmra.mxu1 %vm393_vm1, %v4312_v0  ;;  %v783_v0 = vadd.f32 %v4523_v51, %v489_v53  ;;  %v2881_v51 = vld [vmem:[#allocation2 + $0xda] sm:$0xff] }
 0x11c   : > { %v1076_v29 = vadd.f32 %v3623_v56, %v782_v45  ;;  %3829 = vmatprep.mubr.msk.bf16.mxu1 %vm393_vm1, %v2609_v47  ;;  %v4621_v19 = vadd.f32 %v1240_v36, %v1071_v5  ;;  %v781_v47 = vadd.f32 %v4529_v48, %v487_v41  ;;  %v786_v5 = vadd.f32 %v4533_v63, %v492_v50  ;;  %v2883_v48 = vld [vmem:[#allocation2 + $0xf2] sm:$0xff]  ;;  %v2884_v53 = vld [vmem:[#allocation2 + $0xfa] sm:$0xff] }
 0x11d   : > { %v3658_v37 = vpop.f32.mrf.mxu0  ;;  %v959_v62 = vpop.f32.mrf.mxu1  ;;  %v2587_v63 = vld [vmem:[#allocation2 + $0xd9] sm:$0xff]  ;;  %v2588_v41 = vld [vmem:[#allocation2 + $0xe1] sm:$0xff] }
 0x11e   : > { %v1074_v14 = vadd.f32 %v959_v62, %v780_v55  ;;  %v4625_v46 = vadd.f32 %v3657_v3, %v1076_v29  ;;  %v2882_v3 = vld [vmem:[#allocation2 + $0xe2] sm:$0xff]  ;;  %v493_v55 = vld [vmem:[%s4581_s25 + $0x58] sm:$0xff] }
 0x11f   : > { %v1256_v6 = vpop.f32.mrf.mxu0  ;;  %v3624_v60 = vpop.f32.mrf.mxu1  ;;  %v2906_v20 = vpack.c.bf16 %v2882_v3, %v2881_v51  ;;  %v494_v3 = vld [vmem:[%s4581_s25 + $0x60] sm:$0xff] }
 0x120   : > { %v1077_v2 = vadd.f32 %v3624_v60, %v783_v0  ;;  %v4630_v13 = vadd.f32 %v1253_v15, %v1074_v14  ;;  %v784_v15 = vadd.f32 %v4540_v4, %v490_v40  ;;  %v2590_v0 = vld [vmem:[#allocation2 + $0xf9] sm:$0xff]  ;;  %v787_v14 = vadd.f32 %v4546_v9, %v493_v55  ;;  %v2885_v9 = vld [vmem:[#allocation2 + $0x10a] sm:$0xff] }
 0x121   : > { %v3661_v36 = vpop.f32.mrf.mxu0  ;;  %3864 = vmatmul.mubr.msk.bf16.gmra.mxu0 %vm393_vm1, %v2904_v30  ;;  %v962_v45 = vpop.f32.mrf.mxu1  ;;  %v2888_v55 = vld [vmem:[#allocation2 + $0x12a] sm:$0xff] }
 0x122   : > { %3867 = vmatprep.mubr.msk.bf16.mxu0 %vm393_vm1, %v2905_v54  ;;  %v1075_v52 = vadd.f32 %v962_v45, %v781_v47  ;;  %v4635_v56 = vadd.f32 %v3658_v37, %v1077_v2  ;;  %v491_v54 = vld [vmem:[%s4581_s25 + $0x48] sm:$0xff]  ;;  %v2907_v37 = vpack.c.bf16 %v2884_v53, %v2883_v48  ;;  %v2612_v2 = vpack.c.bf16 %v2588_v41, %v2587_v63 }
 0x123   : > { %v1269_v32 = vpop.f32.mrf.mxu0  ;;  %v3627_v29 = vpop.f32.mrf.mxu1  ;;  %3830 = vmatmul.mubr.msk.bf16.gmra.mxu1 %vm393_vm1, %v2610_v58  ;;  %v496_v58 = vld [vmem:[%s4581_s25 + $0x70] sm:$0xff]  ;;  %v2613_v45 = vpack.c.bf16 %v2590_v0, %v2589_v27  ;;  %v2593_v0 = vld [vmem:[#allocation2 + $0x121] sm:$0xff] }
 0x124   : > { %v1080_v30 = vadd.f32 %v3627_v29, %v786_v5  ;;  %3833 = vmatprep.mubr.msk.bf16.mxu1 %vm393_vm1, %v2611_v12  ;;  %v4641_v62 = vadd.f32 %v1256_v6, %v1075_v52  ;;  %v785_v12 = vadd.f32 %v4552_v17, %v491_v54  ;;  %v790_v52 = vadd.f32 %v4558_v25, %v496_v58  ;;  %v2887_v17 = vld [vmem:[#allocation2 + $0x122] sm:$0xff]  ;;  %v2592_v54 = vld [vmem:[#allocation2 + $0x111] sm:$0xff] }
 0x125   : > { %v3662_v1 = vpop.f32.mrf.mxu0  ;;  %v975_v8 = vpop.f32.mrf.mxu1  ;;  %v2591_v25 = vld [vmem:[#allocation2 + $0x109] sm:$0xff] }
 0x126   : > { %v1078_v50 = vadd.f32 %v975_v8, %v784_v15  ;;  %v4645_v60 = vadd.f32 %v3661_v36, %v1080_v30  ;;  %v2886_v36 = vld [vmem:[#allocation2 + $0x112] sm:$0xff] }
 0x127   : > { %v1272_v4 = vpop.f32.mrf.mxu0  ;;  %v3628_v47 = vpop.f32.mrf.mxu1  ;;  %v497_v15 = vld [vmem:[%s4581_s25 + $0x78] sm:$0xff]  ;;  %v2908_v41 = vpack.c.bf16 %v2886_v36, %v2885_v9  ;;  %v498_v36 = vld [vmem:[%s4581_s25 + $0x80] sm:$0xff] }
 0x128   : > { %v1081_v40 = vadd.f32 %v3628_v47, %v787_v14  ;;  %v4650_v51 = vadd.f32 %v1269_v32, %v1078_v50  ;;  %v788_v32 = vadd.f32 %v4565_v33, %v494_v3  ;;  %v2594_v14 = vld [vmem:[#allocation2 + $0x129] sm:$0xff]  ;;  %v791_v50 = vadd.f32 %v4571_v34, %v497_v15  ;;  %v2889_v34 = vld [vmem:[#allocation2 + $0x13a] sm:$0xff] }
 0x129   : > { %v3665_v6 = vpop.f32.mrf.mxu0  ;;  %3868 = vmatmul.mubr.msk.bf16.gmra.mxu0 %vm393_vm1, %v2906_v20  ;;  %v978_v5 = vpop.f32.mrf.mxu1  ;;  %v2892_v15 = vld [vmem:[#allocation2 + $0x15a] sm:$0xff] }
 0x12a   : > { %3871 = vmatprep.mubr.msk.bf16.mxu0 %vm393_vm1, %v2907_v37  ;;  %v1079_v48 = vadd.f32 %v978_v5, %v785_v12  ;;  %v4655_v29 = vadd.f32 %v3662_v1, %v1081_v40  ;;  %v495_v37 = vld [vmem:[%s4581_s25 + $0x68] sm:$0xff]  ;;  %v2909_v1 = vpack.c.bf16 %v2888_v55, %v2887_v17  ;;  %v2614_v40 = vpack.c.bf16 %v2592_v54, %v2591_v25 }
 0x12b   : > { %v1285_v53 = vpop.f32.mrf.mxu0  ;;  %v3631_v30 = vpop.f32.mrf.mxu1  ;;  %3834 = vmatmul.mubr.msk.bf16.gmra.mxu1 %vm393_vm1, %v2612_v2  ;;  %v500_v2 = vld [vmem:[%s4581_s25 + $0x90] sm:$0xff]  ;;  %v2615_v5 = vpack.c.bf16 %v2594_v14, %v2593_v0 }
 0x12c   : > { %v1084_v20 = vadd.f32 %v3631_v30, %v790_v52  ;;  %3837 = vmatprep.mubr.msk.bf16.mxu1 %vm393_vm1, %v2613_v45  ;;  %v4661_v8 = vadd.f32 %v1272_v4, %v1079_v48  ;;  %v789_v45 = vadd.f32 %v4583_v18, %v495_v37  ;;  %v794_v48 = vadd.f32 %v4495_v21, %v500_v2  ;;  %v2891_v18 = vld [vmem:[#allocation2 + $0x152] sm:$0xff]  ;;  %v2596_v37 = vld [vmem:[#allocation2 + $0x141] sm:$0xff] }
 0x12d   : > { %v3666_v63 = vpop.f32.mrf.mxu0  ;;  %v991_v27 = vpop.f32.mrf.mxu1  ;;  %v2595_v21 = vld [vmem:[#allocation2 + $0x139] sm:$0xff]  ;;  %v2597_v14 = vld [vmem:[#allocation2 + $0x151] sm:$0xff] }
 0x12e   : > { %v1082_v58 = vadd.f32 %v991_v27, %v788_v32  ;;  %v4665_v47 = vadd.f32 %v3665_v6, %v1084_v20  ;;  %v2890_v6 = vld [vmem:[#allocation2 + $0x142] sm:$0xff]  ;;  %v501_v32 = vld [vmem:[%s4581_s25 + $0x98] sm:$0xff] }
 0x12f   : > { %v1288_v33 = vpop.f32.mrf.mxu0  ;;  %v3632_v12 = vpop.f32.mrf.mxu1  ;;  %v2910_v54 = vpack.c.bf16 %v2890_v6, %v2889_v34  ;;  %v502_v6 = vld [vmem:[%s4581_s25 + $0xa0] sm:$0xff] }
 0x130   : > { %v1085_v3 = vadd.f32 %v3632_v12, %v791_v50  ;;  %v4670_v9 = vadd.f32 %v1285_v53, %v1082_v58  ;;  %v792_v53 = vadd.f32 %v4503_v10, %v498_v36  ;;  %v2598_v50 = vld [vmem:[#allocation2 + $0x159] sm:$0xff]  ;;  %v795_v58 = vadd.f32 %v4507_v26, %v501_v32  ;;  %v2893_v26 = vld [vmem:[#allocation2 + $0x16a] sm:$0xff] }
 0x131   : > { %v3669_v4 = vpop.f32.mrf.mxu0  ;;  %3872 = vmatmul.mubr.msk.bf16.gmra.mxu0 %vm393_vm1, %v2908_v41  ;;  %v994_v52 = vpop.f32.mrf.mxu1 }
 0x132   : > { %3875 = vmatprep.mubr.msk.bf16.mxu0 %vm393_vm1, %v2909_v1  ;;  %v1083_v17 = vadd.f32 %v994_v52, %v789_v45  ;;  %v4675_v30 = vadd.f32 %v3666_v63, %v1085_v3  ;;  %v499_v1 = vld [vmem:[%s4581_s25 + $0x88] sm:$0xff]  ;;  %v2911_v63 = vpack.c.bf16 %v2892_v15, %v2891_v18  ;;  %v2616_v3 = vpack.c.bf16 %v2596_v37, %v2595_v21  ;;  %v2600_v37 = vld [vmem:[#allocation2 + $0x171] sm:$0xff] }
 0x133   : > { %v1301_v55 = vpop.f32.mrf.mxu0  ;;  %v3635_v20 = vpop.f32.mrf.mxu1  ;;  %3838 = vmatmul.mubr.msk.bf16.gmra.mxu1 %vm393_vm1, %v2614_v40  ;;  %v504_v40 = vld [vmem:[%s4581_s25 + $0xb0] sm:$0xff]  ;;  %v2617_v52 = vpack.c.bf16 %v2598_v50, %v2597_v14 }
 0x134   : > { %v1088_v41 = vadd.f32 %v3635_v20, %v794_v48  ;;  %3841 = vmatprep.mubr.msk.bf16.mxu1 %vm393_vm1, %v2615_v5  ;;  %v4681_v27 = vadd.f32 %v1288_v33, %v1083_v17  ;;  %v793_v5 = vadd.f32 %v4513_v43, %v499_v1  ;;  %v798_v17 = vadd.f32 %v4519_v38, %v504_v40  ;;  %v505_v43 = vld [vmem:[%s4581_s25 + $0xb8] sm:$0xff]  ;;  %v2599_v21 = vld [vmem:[#allocation2 + $0x169] sm:$0xff] }
 0x135   : > { %v3670_v25 = vpop.f32.mrf.mxu0  ;;  %v1007_v0 = vpop.f32.mrf.mxu1  ;;  %v503_v1 = vld [vmem:[%s4581_s25 + $0xa8] sm:$0xff] }
 0x136   : > { %v1086_v2 = vadd.f32 %v1007_v0, %v792_v53  ;;  %v4685_v12 = vadd.f32 %v3669_v4, %v1088_v41  ;;  %v2894_v4 = vld [vmem:[#allocation2 + $0x172] sm:$0xff]  ;;  %v799_v0 = vadd.f32 %v4531_v61, %v505_v43  ;;  %v797_v40 = vadd.f32 %v4537_v57, %v503_v1  ;;  %v2897_v61 = vld [vmem:[#allocation2 + $0x19a] sm:$0xff] }
 0x137   : > { %v1304_v10 = vpop.f32.mrf.mxu0  ;;  %v3636_v45 = vpop.f32.mrf.mxu1  ;;  %v509_v57 = vld [vmem:[%s4581_s25 + $0xd8] sm:$0xff] }
 0x138   : > { %v1089_v33 = vadd.f32 %v3636_v45, %v795_v58  ;;  %v4690_v34 = vadd.f32 %v1301_v55, %v1086_v2  ;;  %v796_v55 = vadd.f32 %v4527_v59, %v502_v6  ;;  %v508_v58 = vld [vmem:[%s4581_s25 + $0xd0] sm:$0xff]  ;;  %v2618_v2 = vpack.c.bf16 %v2600_v37, %v2599_v21  ;;  %v2603_v43 = vld [vmem:[#allocation2 + $0x199] sm:$0xff] }
 0x139   : > { %v3673_v36 = vpop.f32.mrf.mxu0  ;;  %3876 = vmatmul.mubr.msk.bf16.gmra.mxu0 %vm393_vm1, %v2910_v54  ;;  %v1010_v48 = vpop.f32.mrf.mxu1  ;;  %v2912_v54 = vpack.c.bf16 %v2894_v4, %v2893_v26 }
 0x13a   : > { %3879 = vmatprep.mubr.msk.bf16.mxu0 %vm393_vm1, %v2911_v63  ;;  %v1087_v18 = vadd.f32 %v1010_v48, %v793_v5  ;;  %v4695_v32 = vadd.f32 %v3670_v25, %v1089_v33  ;;  %v506_v5 = vld [vmem:[%s4581_s25 + $0xc0] sm:$0xff] }
 0x13b   : > { %v1317_v15 = vpop.f32.mrf.mxu0  ;;  %v3639_v20 = vpop.f32.mrf.mxu1  ;;  %3842 = vmatmul.mubr.msk.bf16.gmra.mxu1 %vm393_vm1, %v2616_v3 }
 0x13c   : > { %v1092_v53 = vadd.f32 %v3639_v20, %v798_v17  ;;  %3845 = vmatprep.mubr.msk.bf16.mxu1 %vm393_vm1, %v2617_v52  ;;  %v4701_v38 = vadd.f32 %v1304_v10, %v1087_v18  ;;  %v802_v52 = vadd.f32 %v4542_v7, %v508_v58  ;;  %v800_v17 = vadd.f32 %v4550_v16, %v506_v5  ;;  %v2604_v20 = vld [vmem:[#allocation2 + $0x1a1] sm:$0xff]  ;;  %v512_v16 = vld [vmem:[%s4581_s25 + $0xf0] sm:$0xff] }
 0x13d   : > { %v3674_v41 = vpop.f32.mrf.mxu0  ;;  %v1023_v25 = vpop.f32.mrf.mxu1  ;;  %v510_v58 = vld [vmem:[%s4581_s25 + $0xe0] sm:$0xff] }
 0x13e   : > { %v1090_v63 = vadd.f32 %v1023_v25, %v796_v55  ;;  %v4705_v50 = vadd.f32 %v3673_v36, %v1092_v53  ;;  %v2898_v36 = vld [vmem:[#allocation2 + $0x1a2] sm:$0xff]  ;;  %v2620_v25 = vpack.c.bf16 %v2604_v20, %v2603_v43 }
 0x13f   : > { %v1320_v14 = vpop.f32.mrf.mxu0  ;;  %v3640_v59 = vpop.f32.mrf.mxu1  ;;  %v507_v55 = vld [vmem:[%s4581_s25 + $0xc8] sm:$0xff] }
 0x140   : > { %v1093_v45 = vadd.f32 %v3640_v59, %v799_v0  ;;  %v4710_v10 = vadd.f32 %v1317_v15, %v1090_v63 }
 0x141   : > { %v3677_v3 = vpop.f32.mrf.mxu0  ;;  %3880 = vmatmul.mubr.msk.bf16.gmra.mxu0 %vm393_vm1, %v2912_v54  ;;  %v1026_v33 = vpop.f32.mrf.mxu1 }
 0x142   : > { %3883 = vmatprep.mubr.msk.bf16.mxu0 %vm393_vm1, %v4556_v24  ;;  %v1091_v6 = vadd.f32 %v1026_v33, %v797_v40  ;;  %v4716_v26 = vadd.f32 %v3674_v41, %v1093_v45  ;;  %v2914_v24 = vpack.c.bf16 %v2898_v36, %v2897_v61  ;;  %v803_v41 = vadd.f32 %v4554_v23, %v509_v57 }
 0x143   : > { %v1333_v48 = vpop.f32.mrf.mxu0  ;;  %v3643_v4 = vpop.f32.mrf.mxu1  ;;  %3846 = vmatmul.mubr.msk.bf16.gmra.mxu1 %vm393_vm1, %v2618_v2  ;;  %v806_v23 = vadd.f32 %v4567_v31, %v512_v16 }
 0x144   : > { %v1096_v18 = vadd.f32 %v3643_v4, %v802_v52  ;;  %3849 = vmatprep.mubr.msk.bf16.mxu1 %vm393_vm1, %v4448_v28  ;;  %v4723_v7 = vadd.f32 %v1320_v14, %v1091_v6  ;;  %v801_v28 = vadd.f32 %v4561_v22, %v507_v55  ;;  %v804_v22 = vadd.f32 %v4575_v35, %v510_v58  ;;  %v511_v52 = vld [vmem:[%s4581_s25 + $0xe8] sm:$0xff] }
 0x145   : > { %v3678_v15 = vpop.f32.mrf.mxu0  ;;  %v1039_v53 = vpop.f32.mrf.mxu1 }
 0x146   : > { %v1094_v54 = vadd.f32 %v1039_v53, %v800_v17  ;;  %v4727_v37 = vadd.f32 %v3677_v3, %v1096_v18  ;;  %v513_v3 = vld [vmem:[%s4581_s25 + $0xf8] sm:$0xff]  ;;  %v805_v18 = vadd.f32 %v4591_v49, %v511_v52 }
 0x147   : > { %v1336_v21 = vpop.f32.mrf.mxu0  ;;  %v3644_v1 = vpop.f32.mrf.mxu1 }
 0x148   : > { %v1097_v0 = vadd.f32 %v3644_v1, %v803_v41  ;;  %v4732_v14 = vadd.f32 %v1333_v48, %v1094_v54  ;;  %v807_v48 = vadd.f32 %v4586_v42, %v513_v3 }
 0x149   : > { %v3681_v63 = vpop.f32.mrf.mxu0  ;;  %3884 = vmatmul.mubr.msk.bf16.gmra.mxu0 %vm393_vm1, %v2914_v24  ;;  %v1042_v59 = vpop.f32.mrf.mxu1 }
 0x14a   : > { %v1095_v2 = vadd.f32 %v1042_v59, %v801_v28  ;;  %v4736_v45 = vadd.f32 %v3678_v15, %v1097_v0 }
 0x14b   : > { %v1349_v40 = vpop.f32.mrf.mxu0  ;;  %v3647_v5 = vpop.f32.mrf.mxu1  ;;  %3850 = vmatmul.mubr.msk.bf16.gmra.mxu1 %vm393_vm1, %v2620_v25 }
 0x14c   : > { %v1100_v33 = vadd.f32 %v3647_v5, %v806_v23  ;;  %v4741_v36 = vadd.f32 %v1336_v21, %v1095_v2 }
 0x14d   : > { %v3682_v61 = vpop.f32.mrf.mxu0  ;;  %v1055_v6 = vpop.f32.mrf.mxu1 }
 0x14e   : > { %v1098_v57 = vadd.f32 %v1055_v6, %v804_v22  ;;  %v4745_v4 = vadd.f32 %v3681_v63, %v1100_v33 }
 0x14f   : > { %v1352_v31 = vpop.f32.mrf.mxu0  ;;  %v3648_v17 = vpop.f32.mrf.mxu1 }
 0x150   : > { %v1101_v15 = vadd.f32 %v3648_v17, %v807_v48  ;;  %v4748_v43 = vadd.f32 %v1349_v40, %v1098_v57 }
 0x151   : > { %v3721_v24 = vpop.f32.mrf.mxu0  ;;  %v1058_v35 = vpop.f32.mrf.mxu1 }
 0x152   : > { %v1099_v20 = vadd.f32 %v1058_v35, %v805_v18  ;;  %v4750_v53 = vadd.f32 %v3682_v61, %v1101_v15 }
 0x153   : > { %v1825_v55 = vpop.f32.mrf.mxu0  ;;  %v3687_v41 = vpop.f32.mrf.mxu1 }
 0x154   : > { %v1660_v54 = vadd.f32 %v3687_v41, %v4603_v44  ;;  %v4753_v21 = vadd.f32 %v1352_v31, %v1099_v20 }
 0x155   : > { %v3722_v42 = vpop.f32.mrf.mxu0  ;;  %v1531_v16 = vpop.f32.mrf.mxu1 }
 0x156   : > { %v1658_v1 = vadd.f32 %v1531_v16, %v4609_v11  ;;  %v4756_v49 = vadd.f32 %v3721_v24, %v1660_v54 }
 0x157   : > { %v1828_v25 = vpop.f32.mrf.mxu0  ;;  %v3688_v28 = vpop.f32.mrf.mxu1 }
 0x158   : > { %v1661_v0 = vadd.f32 %v3688_v28, %v4614_v39  ;;  %v4759_v58 = vadd.f32 %v1825_v55, %v1658_v1 }
 0x159   : > { %v3725_v63 = vpop.f32.mrf.mxu0  ;;  %v1534_v59 = vpop.f32.mrf.mxu1 }
 0x15a   : > { %v1659_v23 = vadd.f32 %v1534_v59, %v4621_v19  ;;  %v4762_v44 = vadd.f32 %v3722_v42, %v1661_v0 }
 0x15b   : > { %v1841_v2 = vpop.f32.mrf.mxu0  ;;  %v3691_v40 = vpop.f32.mrf.mxu1 }
 0x15c   : > { %v1664_v3 = vadd.f32 %v3691_v40, %v4625_v46  ;;  %v4765_v11 = vadd.f32 %v1828_v25, %v1659_v23 }
 0x15d   : > { %v3726_v5 = vpop.f32.mrf.mxu0  ;;  %v1547_v22 = vpop.f32.mrf.mxu1 }
 0x15e   : > { %v1662_v33 = vadd.f32 %v1547_v22, %v4630_v13  ;;  %v4768_v39 = vadd.f32 %v3725_v63, %v1664_v3 }
 0x15f   : > { %v1844_v61 = vpop.f32.mrf.mxu0  ;;  %v3692_v52 = vpop.f32.mrf.mxu1 }
 0x160   : > { %v1665_v6 = vadd.f32 %v3692_v52, %v4635_v56  ;;  %v4771_v19 = vadd.f32 %v1841_v2, %v1662_v33 }
 0x161   : > { %v3729_v48 = vpop.f32.mrf.mxu0  ;;  %v1550_v57 = vpop.f32.mrf.mxu1 }
 0x162   : > { %v1663_v31 = vadd.f32 %v1550_v57, %v4641_v62  ;;  %v4774_v46 = vadd.f32 %v3726_v5, %v1665_v6 }
 0x163   : > { %v1857_v17 = vpop.f32.mrf.mxu0  ;;  %v3695_v18 = vpop.f32.mrf.mxu1 }
 0x164   : > { %v1668_v15 = vadd.f32 %v3695_v18, %v4645_v60  ;;  %v4777_v13 = vadd.f32 %v1844_v61, %v1663_v31 }
 0x165   : > { %v3730_v24 = vpop.f32.mrf.mxu0  ;;  %v1563_v35 = vpop.f32.mrf.mxu1 }
 0x166   : > { %v1666_v20 = vadd.f32 %v1563_v35, %v4650_v51  ;;  %v4780_v56 = vadd.f32 %v3729_v48, %v1668_v15 }
 0x167   : > { %v1860_v55 = vpop.f32.mrf.mxu0  ;;  %v3696_v41 = vpop.f32.mrf.mxu1 }
 0x168   : > { %v1669_v54 = vadd.f32 %v3696_v41, %v4655_v29  ;;  %v4783_v62 = vadd.f32 %v1857_v17, %v1666_v20 }
 0x169   : > { %v3733_v42 = vpop.f32.mrf.mxu0  ;;  %v1566_v16 = vpop.f32.mrf.mxu1 }
 0x16a   : > { %v1667_v1 = vadd.f32 %v1566_v16, %v4661_v8  ;;  %v4786_v60 = vadd.f32 %v3730_v24, %v1669_v54 }
 0x16b   : > { %v1873_v25 = vpop.f32.mrf.mxu0  ;;  %v3699_v28 = vpop.f32.mrf.mxu1 }
 0x16c   : > { %v1672_v0 = vadd.f32 %v3699_v28, %v4665_v47  ;;  %v4789_v51 = vadd.f32 %v1860_v55, %v1667_v1 }
 0x16d   : > { %v3734_v63 = vpop.f32.mrf.mxu0  ;;  %v1579_v59 = vpop.f32.mrf.mxu1 }
 0x16e   : > { %v1670_v23 = vadd.f32 %v1579_v59, %v4670_v9  ;;  %v4792_v29 = vadd.f32 %v3733_v42, %v1672_v0 }
 0x16f   : > { %v1876_v2 = vpop.f32.mrf.mxu0  ;;  %v3700_v40 = vpop.f32.mrf.mxu1 }
 0x170   : > { %v1673_v3 = vadd.f32 %v3700_v40, %v4675_v30  ;;  %v4795_v8 = vadd.f32 %v1873_v25, %v1670_v23 }
 0x171   : > { %v3737_v5 = vpop.f32.mrf.mxu0  ;;  %v1582_v22 = vpop.f32.mrf.mxu1 }
 0x172   : > { %v1671_v33 = vadd.f32 %v1582_v22, %v4681_v27  ;;  %v4798_v47 = vadd.f32 %v3734_v63, %v1673_v3 }
 0x173   : > { %v1889_v61 = vpop.f32.mrf.mxu0  ;;  %v3703_v52 = vpop.f32.mrf.mxu1 }
 0x174   : > { %v1676_v6 = vadd.f32 %v3703_v52, %v4685_v12  ;;  %v4801_v9 = vadd.f32 %v1876_v2, %v1671_v33 }
 0x175   : > { %v3738_v48 = vpop.f32.mrf.mxu0  ;;  %v1595_v57 = vpop.f32.mrf.mxu1 }
 0x176   : > { %v1674_v31 = vadd.f32 %v1595_v57, %v4690_v34  ;;  %v4804_v30 = vadd.f32 %v3737_v5, %v1676_v6 }
 0x177   : > { %v1892_v17 = vpop.f32.mrf.mxu0  ;;  %v3704_v18 = vpop.f32.mrf.mxu1 }
 0x178   : > { %v1677_v15 = vadd.f32 %v3704_v18, %v4695_v32  ;;  %v4807_v27 = vadd.f32 %v1889_v61, %v1674_v31 }
 0x179   : > { %v3741_v24 = vpop.f32.mrf.mxu0  ;;  %v1598_v35 = vpop.f32.mrf.mxu1 }
 0x17a   : > { %v1675_v20 = vadd.f32 %v1598_v35, %v4701_v38  ;;  %v4810_v12 = vadd.f32 %v3738_v48, %v1677_v15 }
 0x17b   : > { %v1905_v55 = vpop.f32.mrf.mxu0  ;;  %v3707_v41 = vpop.f32.mrf.mxu1 }
 0x17c   : > { %5144 = vst [vmem:[#allocation3_spill] sm:$0xff] %v4810_v12  ;;  %v1680_v54 = vadd.f32 %v3707_v41, %v4705_v50  ;;  %v4813_v34 = vadd.f32 %v1892_v17, %v1675_v20 }
 0x17d   : > { %v3742_v42 = vpop.f32.mrf.mxu0  ;;  %v1611_v16 = vpop.f32.mrf.mxu1 }
 0x17e   : > { %5145 = vst [vmem:[#allocation4_spill] sm:$0xff] %v4813_v34  ;;  %v1678_v1 = vadd.f32 %v1611_v16, %v4710_v10  ;;  %v4816_v32 = vadd.f32 %v3741_v24, %v1680_v54 }
 0x17f   : > { %v1908_v25 = vpop.f32.mrf.mxu0  ;;  %v3708_v28 = vpop.f32.mrf.mxu1 }
 0x180   : > { %5146 = vst [vmem:[#allocation5_spill] sm:$0xff] %v4816_v32  ;;  %v1681_v0 = vadd.f32 %v3708_v28, %v4716_v26  ;;  %v4819_v38 = vadd.f32 %v1905_v55, %v1678_v1 }
 0x181   : > { %v3745_v63 = vpop.f32.mrf.mxu0  ;;  %v1614_v59 = vpop.f32.mrf.mxu1 }
 0x182   : > { %5147 = vst [vmem:[#allocation6_spill] sm:$0xff] %v4819_v38  ;;  %v1679_v23 = vadd.f32 %v1614_v59, %v4723_v7  ;;  %v4822_v50 = vadd.f32 %v3742_v42, %v1681_v0 }
 0x183   : > { %v1921_v2 = vpop.f32.mrf.mxu0  ;;  %v3711_v40 = vpop.f32.mrf.mxu1 }
 0x184   : > { %5148 = vst [vmem:[#allocation7_spill] sm:$0xff] %v4822_v50  ;;  %v1684_v3 = vadd.f32 %v3711_v40, %v4727_v37  ;;  %v4825_v10 = vadd.f32 %v1908_v25, %v1679_v23 }
 0x185   : > { %v3746_v5 = vpop.f32.mrf.mxu0  ;;  %v1627_v22 = vpop.f32.mrf.mxu1 }
 0x186   : > { %5149 = vst [vmem:[#allocation8_spill] sm:$0xff] %v4825_v10  ;;  %v1682_v33 = vadd.f32 %v1627_v22, %v4732_v14  ;;  %v4828_v26 = vadd.f32 %v3745_v63, %v1684_v3 }
 0x187   : > { %v1924_v61 = vpop.f32.mrf.mxu0  ;;  %v3712_v52 = vpop.f32.mrf.mxu1 }
 0x188   : > { %5150 = vst [vmem:[#allocation9_spill] sm:$0xff] %v4828_v26  ;;  %v1685_v6 = vadd.f32 %v3712_v52, %v4736_v45  ;;  %v4831_v7 = vadd.f32 %v1921_v2, %v1682_v33 }
 0x189   : > { %v3749_v48 = vpop.f32.mrf.mxu0  ;;  %v1630_v57 = vpop.f32.mrf.mxu1 }
 0x18a   : > { %5151 = vst [vmem:[#allocation10_spill] sm:$0xff] %v4831_v7  ;;  %v1683_v31 = vadd.f32 %v1630_v57, %v4741_v36  ;;  %v4834_v37 = vadd.f32 %v3746_v5, %v1685_v6 }
 0x18b   : > { %v1937_v17 = vpop.f32.mrf.mxu0  ;;  %v3715_v18 = vpop.f32.mrf.mxu1 }
 0x18c   : > { %5152 = vst [vmem:[#allocation11_spill] sm:$0xff] %v4834_v37  ;;  %v1688_v15 = vadd.f32 %v3715_v18, %v4745_v4  ;;  %v4837_v14 = vadd.f32 %v1924_v61, %v1683_v31 }
 0x18d   : > { %v3750_v24 = vpop.f32.mrf.mxu0  ;;  %v1643_v35 = vpop.f32.mrf.mxu1 }
 0x18e   : > { %5153 = vst [vmem:[#allocation12_spill] sm:$0xff] %v4837_v14  ;;  %v1686_v20 = vadd.f32 %v1643_v35, %v4748_v43  ;;  %v4840_v45 = vadd.f32 %v3749_v48, %v1688_v15 }
 0x18f   : > { %v1940_v55 = vpop.f32.mrf.mxu0  ;;  %v3716_v41 = vpop.f32.mrf.mxu1 }
 0x190   : > { %5154 = vst [vmem:[#allocation13_spill] sm:$0xff] %v4840_v45  ;;  %v1689_v54 = vadd.f32 %v3716_v41, %v4750_v53  ;;  %v4845_v36 = vadd.f32 %v1937_v17, %v1686_v20 }
 0x191   : > { %v4843_v42 = vpop.f32.mrf.mxu0  ;;  %v1646_v16 = vpop.f32.mrf.mxu1 }
 0x192   : > { %5155 = vst [vmem:[#allocation14_spill] sm:$0xff] %v4845_v36  ;;  %v1687_v1 = vadd.f32 %v1646_v16, %v4753_v21  ;;  %v4850_v25 = vadd.f32 %v3750_v24, %v1689_v54 }
 0x193   : > { %v4848_v4 = vpop.f32.mrf.mxu0  ;;  %v3755_v28 = vpop.f32.mrf.mxu1 }
 0x194   : > { %5156 = vst [vmem:[#allocation15_spill] sm:$0xff] %v4850_v25  ;;  %v4854_v43 = vadd.f32 %v1940_v55, %v1687_v1 }
 0x195   : > { %v4852_v0 = vpop.f32.mrf.mxu0  ;;  %v2119_v63 = vpop.f32.mrf.mxu1 }
 0x196   : > { %5157 = vst [vmem:[#allocation16_spill] sm:$0xff] %v4854_v43 }
 0x197   : > { %v4856_v59 = vpop.f32.mrf.mxu0  ;;  %v3756_v53 = vpop.f32.mrf.mxu1 }
 0x199   : > { %v4858_v23 = vpop.f32.mrf.mxu0  ;;  %v4860_v2 = vpop.f32.mrf.mxu1 }
 0x19b   : > { %v4862_v40 = vpop.f32.mrf.mxu0  ;;  %v4864_v21 = vpop.f32.mrf.mxu1 }
 0x19d   : > { %v4866_v3 = vpop.f32.mrf.mxu0  ;;  %v4868_v5 = vpop.f32.mrf.mxu1 }
 0x19f   : > { %v4870_v22 = vpop.f32.mrf.mxu0  ;;  %v4872_v33 = vpop.f32.mrf.mxu1 }
 0x1a1   : > { %v4874_v61 = vpop.f32.mrf.mxu0  ;;  %v4876_v52 = vpop.f32.mrf.mxu1 }
 0x1a3   : > { %v4878_v6 = vpop.f32.mrf.mxu0  ;;  %v4880_v48 = vpop.f32.mrf.mxu1 }
 0x1a5   : > { %v4882_v57 = vpop.f32.mrf.mxu0  ;;  %v4884_v31 = vpop.f32.mrf.mxu1 }
 0x1a7   : > { %v4886_v17 = vpop.f32.mrf.mxu0  ;;  %v4888_v18 = vpop.f32.mrf.mxu1 }
 0x1a9   : > { %v4890_v15 = vpop.f32.mrf.mxu0  ;;  %v4892_v24 = vpop.f32.mrf.mxu1 }
 0x1ab   : > { %v4894_v35 = vpop.f32.mrf.mxu0  ;;  %v4896_v20 = vpop.f32.mrf.mxu1 }
 0x1ad   : > { %v4898_v55 = vpop.f32.mrf.mxu0  ;;  %v4900_v41 = vpop.f32.mrf.mxu1 }
 0x1af   : > { %v4902_v54 = vpop.f32.mrf.mxu0  ;;  %v4904_v16 = vpop.f32.mrf.mxu1 }
 0x1b1   : > { %v4906_v1 = vpop.f32.mrf.mxu0  ;;  %v4908_v43 = vpop.f32.mrf.mxu1 }
 0x1b2   : > { %5158 = vst [vmem:[#allocation17_spill] sm:$0xff] %v4906_v1 }
 0x1b3   : > { %v4910_v25 = vpop.f32.mrf.mxu0  ;;  %v4912_v36 = vpop.f32.mrf.mxu1 }
 0x1b4   : > { %5159 = vst [vmem:[#allocation18_spill] sm:$0xff] %v4910_v25 }
 0x1b5   : > { %v4914_v45 = vpop.f32.mrf.mxu0  ;;  %v4916_v14 = vpop.f32.mrf.mxu1 }
 0x1b6   : > { %5160 = vst [vmem:[#allocation19_spill] sm:$0xff] %v4914_v45 }
 0x1b7   : > { %v4918_v37 = vpop.f32.mrf.mxu0  ;;  %v4920_v7 = vpop.f32.mrf.mxu1 }
 0x1b8   : > { %5161 = vst [vmem:[#allocation20_spill] sm:$0xff] %v4918_v37  ;;  %5162 = vst [vmem:[#allocation21_spill] sm:$0xff] %v4920_v7 }
 0x1b9   : > { %v4922_v26 = vpop.f32.mrf.mxu0  ;;  %v4924_v10 = vpop.f32.mrf.mxu1 }
 0x1ba   : > { %5163 = vst [vmem:[#allocation22_spill] sm:$0xff] %v4922_v26  ;;  %5164 = vst [vmem:[#allocation23_spill] sm:$0xff] %v4924_v10 }
 0x1bb   : > { %v4926_v50 = vpop.f32.mrf.mxu0  ;;  %v4928_v38 = vpop.f32.mrf.mxu1 }
 0x1bc   : > { %5165 = vst [vmem:[#allocation24_spill] sm:$0xff] %v4926_v50  ;;  %5166 = vst [vmem:[#allocation25_spill] sm:$0xff] %v4928_v38 }
 0x1bd   : > { %v4930_v32 = vpop.f32.mrf.mxu0  ;;  %v4932_v25 = vpop.f32.mrf.mxu1 }
 0x1be   : > { %5167 = vst [vmem:[#allocation26_spill] sm:$0xff] %v4930_v32  ;;  %5168 = vst [vmem:[#allocation27_spill] sm:$0xff] %v4932_v25 }
 0x1bf   : > { %v4934_v34 = vpop.f32.mrf.mxu0  ;;  %v4936_v45 = vpop.f32.mrf.mxu1 }
 0x1c0   : > { %5169 = vst [vmem:[#allocation28_spill] sm:$0xff] %v4934_v34  ;;  %5170 = vst [vmem:[#allocation29_spill] sm:$0xff] %v4936_v45 }
 0x1c1   : > { %v4938_v1 = vpop.f32.mrf.mxu0  ;;  %v4940_v37 = vpop.f32.mrf.mxu1 }
 0x1c2   : > { %5171 = vst [vmem:[#allocation30_spill] sm:$0xff] %v4938_v1  ;;  %5172 = vst [vmem:[#allocation31_spill] sm:$0xff] %v4940_v37 }
 0x1c3   : > { %v4942_v7 = vpop.f32.mrf.mxu0  ;;  %v4944_v26 = vpop.f32.mrf.mxu1 }
 0x1c4   : > { %5173 = vst [vmem:[#allocation32_spill] sm:$0xff] %v4942_v7  ;;  %5174 = vst [vmem:[#allocation33_spill] sm:$0xff] %v4944_v26 }
 0x1c5   : > { %v4946_v10 = vpop.f32.mrf.mxu0  ;;  %v4948_v50 = vpop.f32.mrf.mxu1 }
 0x1c6   : > { %5175 = vst [vmem:[#allocation34_spill] sm:$0xff] %v4946_v10  ;;  %5176 = vst [vmem:[#allocation35_spill] sm:$0xff] %v4948_v50  ;;  %v2248_v10 = vadd.f32 %v3755_v28, %v4756_v49 }
 0x1c7   : > { %v4950_v38 = vpop.f32.mrf.mxu0  ;;  %v4952_v32 = vpop.f32.mrf.mxu1 }
 0x1c8   : > { %5177 = vst [vmem:[#allocation36_spill] sm:$0xff] %v4950_v38  ;;  %5178 = vst [vmem:[#allocation37_spill] sm:$0xff] %v4952_v32  ;;  %v2246_v32 = vadd.f32 %v2119_v63, %v4759_v58 }
 0x1c9   : > { %v4954_v25 = vpop.f32.mrf.mxu0  ;;  %v4956_v34 = vpop.f32.mrf.mxu1 }
 0x1ca   : > { %5179 = vst [vmem:[#allocation38_spill] sm:$0xff] %v4954_v25  ;;  %5180 = vst [vmem:[#allocation39_spill] sm:$0xff] %v4956_v34  ;;  %v2541_v49 = vadd.f32 %v4848_v4, %v2246_v32  ;;  %v2250_v32 = vadd.f32 %v4868_v5, %v4771_v19 }
 0x1cb   : > { %v4958_v45 = vpop.f32.mrf.mxu0  ;;  %v4960_v1 = vpop.f32.mrf.mxu1 }
 0x1cc   : > { %5181 = vst [vmem:[#allocation40_spill] sm:$0xff] %v4958_v45  ;;  %5182 = vst [vmem:[#allocation41_spill] sm:$0xff] %v4960_v1  ;;  %v2249_v45 = vadd.f32 %v3756_v53, %v4762_v44  ;;  %v2543_v1 = vadd.f32 %v4843_v42, %v2248_v10  ;;  %v2252_v44 = vadd.f32 %v4864_v21, %v4768_v39 }
 0x1cd   : > { %v4962_v37 = vpop.f32.mrf.mxu0  ;;  %v4964_v7 = vpop.f32.mrf.mxu1  ;;  %v2253_v39 = vadd.f32 %v4872_v33, %v4774_v46  ;;  %v2545_v21 = vadd.f32 %v4862_v40, %v2250_v32 }
 0x1ce   : > { %5183 = vst [vmem:[#allocation42_spill] sm:$0xff] %v4962_v37  ;;  %5184 = vst [vmem:[#allocation43_spill] sm:$0xff] %v4964_v7  ;;  %v2247_v7 = vadd.f32 %v4860_v2, %v4765_v11  ;;  %v2544_v63 = vadd.f32 %v4852_v0, %v2249_v45 }
 0x1cf   : > { %v4967_v50 = vpop.f32.mrf.mxu0  ;;  %v4969_v38 = vpop.f32.mrf.mxu1 }
 0x1d0   : > { %5185 = vst [vmem:[#allocation44_spill] sm:$0xff] %v4967_v50  ;;  %v2542_v2 = vadd.f32 %v4856_v59, %v2247_v7 }
 0x1d1   : > { %v3857_v25 = vpop.f32.mrf.mxu0  ;;  %v4972_v26 = vpop.f32.mrf.mxu1 }
 0x1d3   : > { %v3002_v34 = vpop.f32.mrf.mxu0  ;;  %v3823_v37 = vpop.f32.mrf.mxu1 }
 0x1d4   : > { %v2837_v12 = vadd.f32 %v3823_v37, %v2543_v1 }
 0x1d5   : > { %v3858_v28 = vpop.f32.mrf.mxu0  ;;  %v2708_v58 = vpop.f32.mrf.mxu1 }
 0x1d6   : > { %v3131_v10 = vadd.f32 %v3857_v25, %v2837_v12  ;;  %v2835_v42 = vadd.f32 %v2708_v58, %v2541_v49  ;;  %v2547_v25 = vadd.f32 %v4858_v23, %v2252_v44  ;;  %v2548_v49 = vadd.f32 %v4866_v3, %v2253_v39 }
 0x1d7   : > { %v3005_v11 = vpop.f32.mrf.mxu0  ;;  %v3824_v37 = vpop.f32.mrf.mxu1 }
 0x1d8   : > { %3163 = vst.msk [vmem:[%s4983_s29 + $0x10] sm:$0xff] %vm393_vm1, %v3131_v10  ;;  %v3129_v4 = vadd.f32 %v3002_v34, %v2835_v42  ;;  %v2838_v53 = vadd.f32 %v3824_v37, %v2544_v63  ;;  %v2251_v34 = vadd.f32 %v4876_v52, %v4777_v13  ;;  %v2254_v52 = vadd.f32 %v4884_v31, %v4783_v62 }
 0x1d9   : > { %v3861_v1 = vpop.f32.mrf.mxu0  ;;  %v2711_v50 = vpop.f32.mrf.mxu1  ;;  %v2255_v31 = vadd.f32 %v4892_v24, %v4789_v51  ;;  %v2258_v24 = vadd.f32 %v4900_v41, %v4795_v8  ;;  %v2259_v41 = vadd.f32 %v4908_v43, %v4801_v9  ;;  %v2262_v43 = vadd.f32 %v4916_v14, %v4807_v27  ;;  %v5189_v14 = vld [vmem:[#allocation4_spill] sm:$0xff] }
 0x1da   : > { %3161 = vst.msk [vmem:[%s4983_s29] sm:$0xff] %vm393_vm1, %v3129_v4  ;;  %v3132_v12 = vadd.f32 %v3858_v28, %v2838_v53  ;;  %v2836_v45 = vadd.f32 %v2711_v50, %v2542_v2  ;;  %v2256_v50 = vadd.f32 %v4880_v48, %v4780_v56  ;;  %v2546_v44 = vadd.f32 %v4870_v22, %v2251_v34 }
 0x1db   : > { %v3018_v0 = vpop.f32.mrf.mxu0  ;;  %v3827_v19 = vpop.f32.mrf.mxu1  ;;  %v2257_v48 = vadd.f32 %v4888_v18, %v4786_v60  ;;  %v2549_v32 = vadd.f32 %v4878_v6, %v2254_v52  ;;  %v2260_v18 = vadd.f32 %v4896_v20, %v4792_v29  ;;  %v2261_v20 = vadd.f32 %v4904_v16, %v4798_v47  ;;  %v5188_v52 = vld [vmem:[#allocation17_spill] sm:$0xff] }
 0x1dc   : > { %3164 = vst.msk [vmem:[%s4983_s29 + $0x18] sm:$0xff] %vm393_vm1, %v3132_v12  ;;  %v3130_v7 = vadd.f32 %v3005_v11, %v2836_v45  ;;  %v2841_v59 = vadd.f32 %v3827_v19, %v2547_v25  ;;  %v2551_v63 = vadd.f32 %v4874_v61, %v2256_v50  ;;  %v2550_v12 = vadd.f32 %v4886_v17, %v2255_v31 }
 0x1dd   : > { %v3862_v5 = vpop.f32.mrf.mxu0  ;;  %v2724_v46 = vpop.f32.mrf.mxu1  ;;  %v2552_v2 = vadd.f32 %v4882_v57, %v2257_v48  ;;  %v2264_v16 = vadd.f32 %v4912_v36, %v4804_v30  ;;  %v5186_v36 = vld [vmem:[#allocation3_spill] sm:$0xff]  ;;  %v5191_v48 = vld [vmem:[#allocation18_spill] sm:$0xff] }
 0x1de   : > { %3162 = vst.msk [vmem:[%s4983_s29 + $0x8] sm:$0xff] %vm393_vm1, %v3130_v7  ;;  %v3135_v23 = vadd.f32 %v3861_v1, %v2841_v59  ;;  %v2839_v33 = vadd.f32 %v2724_v46, %v2545_v21  ;;  %v2553_v7 = vadd.f32 %v4894_v35, %v2258_v24  ;;  %v5197_v24 = vld [vmem:[#allocation20_spill] sm:$0xff] }
 0x1df   : > { %v3021_v28 = vpop.f32.mrf.mxu0  ;;  %v3828_v13 = vpop.f32.mrf.mxu1 }
 0x1e0   : > { %3167 = vst.msk [vmem:[%s4983_s29 + $0x30] sm:$0xff] %vm393_vm1, %v3135_v23  ;;  %v3133_v40 = vadd.f32 %v3018_v0, %v2839_v33  ;;  %v2842_v58 = vadd.f32 %v3828_v13, %v2548_v49  ;;  %v2555_v0 = vadd.f32 %v4890_v15, %v2260_v18  ;;  %v2554_v23 = vadd.f32 %v4902_v54, %v2259_v41  ;;  %v5187_v49 = vld [vmem:[#allocation21_spill] sm:$0xff] }
 0x1e1   : > { %v3865_v10 = vpop.f32.mrf.mxu0  ;;  %v2727_v56 = vpop.f32.mrf.mxu1 }
 0x1e2   : > { %3165 = vst.msk [vmem:[%s4983_s29 + $0x20] sm:$0xff] %vm393_vm1, %v3133_v40  ;;  %v3136_v3 = vadd.f32 %v3862_v5, %v2842_v58  ;;  %v2840_v42 = vadd.f32 %v2727_v56, %v2546_v44  ;;  %v2556_v5 = vadd.f32 %v4898_v55, %v2261_v20  ;;  %v2559_v40 = vadd.f32 %v5188_v52, %v2264_v16  ;;  %v5190_v44 = vld [vmem:[#allocation23_spill] sm:$0xff]  ;;  %v5203_v16 = vld [vmem:[#allocation24_spill] sm:$0xff] }
 0x1e3   : > { %v3034_v11 = vpop.f32.mrf.mxu0  ;;  %v3831_v62 = vpop.f32.mrf.mxu1 }
 0x1e4   : > { %3168 = vst.msk [vmem:[%s4983_s29 + $0x38] sm:$0xff] %vm393_vm1, %v3136_v3  ;;  %v3134_v22 = vadd.f32 %v3021_v28, %v2840_v42  ;;  %v2845_v37 = vadd.f32 %v3831_v62, %v2551_v63  ;;  %v2265_v28 = vadd.f32 %v5187_v49, %v5186_v36  ;;  %v2557_v3 = vadd.f32 %v5191_v48, %v2262_v43  ;;  %v5193_v62 = vld [vmem:[#allocation25_spill] sm:$0xff]  ;;  %v5207_v49 = vld [vmem:[#allocation10_spill] sm:$0xff] }
 0x1e5   : > { %v3866_v4 = vpop.f32.mrf.mxu0  ;;  %v2740_v60 = vpop.f32.mrf.mxu1 }
 0x1e6   : > { %3166 = vst.msk [vmem:[%s4983_s29 + $0x28] sm:$0xff] %vm393_vm1, %v3134_v22  ;;  %v3139_v61 = vadd.f32 %v3865_v10, %v2845_v37  ;;  %v2843_v53 = vadd.f32 %v2740_v60, %v2549_v32  ;;  %v2263_v10 = vadd.f32 %v5190_v44, %v5189_v14  ;;  %v5194_v32 = vld [vmem:[#allocation19_spill] sm:$0xff] }
 0x1e7   : > { %v3037_v1 = vpop.f32.mrf.mxu0  ;;  %v3832_v51 = vpop.f32.mrf.mxu1  ;;  %v5210_v44 = vld [vmem:[#allocation11_spill] sm:$0xff] }
 0x1e8   : > { %3171 = vst.msk [vmem:[%s4983_s29 + $0x50] sm:$0xff] %vm393_vm1, %v3139_v61  ;;  %v3137_v6 = vadd.f32 %v3034_v11, %v2843_v53  ;;  %v2846_v39 = vadd.f32 %v3832_v51, %v2552_v2  ;;  %v5192_v11 = vld [vmem:[#allocation5_spill] sm:$0xff]  ;;  %v5195_v61 = vld [vmem:[#allocation6_spill] sm:$0xff]  ;;  %v5196_v53 = vld [vmem:[#allocation27_spill] sm:$0xff] }
 0x1e9   : > { %v3869_v45 = vpop.f32.mrf.mxu0  ;;  %v2743_v29 = vpop.f32.mrf.mxu1  ;;  %v2268_v31 = vadd.f32 %v5193_v62, %v5192_v11  ;;  %v2266_v2 = vadd.f32 %v5196_v53, %v5195_v61  ;;  %v5213_v62 = vld [vmem:[#allocation12_spill] sm:$0xff]  ;;  %v5216_v53 = vld [vmem:[#allocation13_spill] sm:$0xff] }
 0x1ea   : > { %3169 = vst.msk [vmem:[%s4983_s29 + $0x40] sm:$0xff] %vm393_vm1, %v3137_v6  ;;  %v3140_v57 = vadd.f32 %v3866_v4, %v2846_v39  ;;  %v2844_v25 = vadd.f32 %v2743_v29, %v2550_v12  ;;  %v2560_v4 = vadd.f32 %v5194_v32, %v2265_v28  ;;  %v2558_v6 = vadd.f32 %v5197_v24, %v2263_v10  ;;  %v5199_v29 = vld [vmem:[#allocation29_spill] sm:$0xff]  ;;  %v5208_v28 = vld [vmem:[#allocation35_spill] sm:$0xff] }
 0x1eb   : > { %v3050_v19 = vpop.f32.mrf.mxu0  ;;  %v3835_v8 = vpop.f32.mrf.mxu1  ;;  %v5211_v10 = vld [vmem:[#allocation37_spill] sm:$0xff] }
 0x1ec   : > { %3172 = vst.msk [vmem:[%s4983_s29 + $0x58] sm:$0xff] %vm393_vm1, %v3140_v57  ;;  %v3138_v17 = vadd.f32 %v3037_v1, %v2844_v25  ;;  %v2849_v34 = vadd.f32 %v3835_v8, %v2555_v0  ;;  %v5200_v0 = vld [vmem:[#allocation22_spill] sm:$0xff] }
 0x1ed   : > { %v3870_v59 = vpop.f32.mrf.mxu0  ;;  %v2756_v47 = vpop.f32.mrf.mxu1 }
 0x1ee   : > { %3170 = vst.msk [vmem:[%s4983_s29 + $0x48] sm:$0xff] %vm393_vm1, %v3138_v17  ;;  %v3143_v15 = vadd.f32 %v3869_v45, %v2849_v34  ;;  %v2847_v21 = vadd.f32 %v2756_v47, %v2553_v7  ;;  %v5198_v45 = vld [vmem:[#allocation7_spill] sm:$0xff]  ;;  %v5201_v17 = vld [vmem:[#allocation8_spill] sm:$0xff] }
 0x1ef   : > { %v3053_v46 = vpop.f32.mrf.mxu0  ;;  %v3836_v9 = vpop.f32.mrf.mxu1  ;;  %v2269_v20 = vadd.f32 %v5199_v29, %v5198_v45  ;;  %v5202_v34 = vld [vmem:[#allocation31_spill] sm:$0xff]  ;;  %v5219_v29 = vld [vmem:[#allocation14_spill] sm:$0xff] }
 0x1f0   : > { %3175 = vst.msk [vmem:[%s4983_s29 + $0x70] sm:$0xff] %vm393_vm1, %v3143_v15  ;;  %v3141_v35 = vadd.f32 %v3050_v19, %v2847_v21  ;;  %v2850_v50 = vadd.f32 %v3836_v9, %v2556_v5  ;;  %v2563_v19 = vadd.f32 %v5200_v0, %v2268_v31  ;;  %v2267_v7 = vadd.f32 %v5202_v34, %v5201_v17  ;;  %v5205_v9 = vld [vmem:[#allocation33_spill] sm:$0xff]  ;;  %v5214_v31 = vld [vmem:[#allocation39_spill] sm:$0xff] }
 0x1f1   : > { %v3873_v33 = vpop.f32.mrf.mxu0  ;;  %v2759_v30 = vpop.f32.mrf.mxu1  ;;  %v2561_v15 = vadd.f32 %v5203_v16, %v2266_v2  ;;  %v5217_v2 = vld [vmem:[#allocation41_spill] sm:$0xff]  ;;  %v5222_v34 = vld [vmem:[#allocation15_spill] sm:$0xff]  ;;  %v5223_v16 = vld [vmem:[#allocation38_spill] sm:$0xff] }
 0x1f2   : > { %3173 = vst.msk [vmem:[%s4983_s29 + $0x60] sm:$0xff] %vm393_vm1, %v3141_v35  ;;  %v3144_v55 = vadd.f32 %v3870_v59, %v2850_v50  ;;  %v2848_v13 = vadd.f32 %v2759_v30, %v2554_v23  ;;  %v5206_v23 = vld [vmem:[#allocation26_spill] sm:$0xff] }
 0x1f3   : > { %v3066_v58 = vpop.f32.mrf.mxu0  ;;  %v3839_v27 = vpop.f32.mrf.mxu1 }
 0x1f4   : > { %3176 = vst.msk [vmem:[%s4983_s29 + $0x78] sm:$0xff] %vm393_vm1, %v3144_v55  ;;  %v3142_v54 = vadd.f32 %v3053_v46, %v2848_v13  ;;  %v2853_v56 = vadd.f32 %v3839_v27, %v2559_v40  ;;  %v5204_v46 = vld [vmem:[#allocation9_spill] sm:$0xff]  ;;  %v2270_v55 = vadd.f32 %v5208_v28, %v5207_v49  ;;  %v5209_v40 = vld [vmem:[#allocation28_spill] sm:$0xff] }
 0x1f5   : > { %v3874_v42 = vpop.f32.mrf.mxu0  ;;  %v2772_v63 = vpop.f32.mrf.mxu1  ;;  %v2272_v43 = vadd.f32 %v5205_v9, %v5204_v46  ;;  %v5224_v46 = vld [vmem:[#allocation16_spill] sm:$0xff] }
 0x1f6   : > { %3174 = vst.msk [vmem:[%s4983_s29 + $0x68] sm:$0xff] %vm393_vm1, %v3142_v54  ;;  %v3147_v22 = vadd.f32 %v3873_v33, %v2853_v56  ;;  %v2851_v37 = vadd.f32 %v2772_v63, %v2557_v3  ;;  %v2564_v33 = vadd.f32 %v5206_v23, %v2269_v20  ;;  %v2273_v54 = vadd.f32 %v5211_v10, %v5210_v44  ;;  %v5212_v3 = vld [vmem:[#allocation30_spill] sm:$0xff]  ;;  %v5220_v20 = vld [vmem:[#allocation43_spill] sm:$0xff] }
 0x1f7   : > { %v3069_v60 = vpop.f32.mrf.mxu0  ;;  %v3840_v18 = vpop.f32.mrf.mxu1  ;;  %v2275_v9 = vadd.f32 %v4972_v26, %v5224_v46 }
 0x1f8   : > { %3179 = vst.msk [vmem:[%s4983_s29 + $0x90] sm:$0xff] %vm393_vm1, %v3147_v22  ;;  %v3145_v1 = vadd.f32 %v3066_v58, %v2851_v37  ;;  %v2854_v51 = vadd.f32 %v3840_v18, %v2560_v4  ;;  %v2562_v58 = vadd.f32 %v5209_v40, %v2267_v7  ;;  %v2271_v22 = vadd.f32 %v5214_v31, %v5213_v62  ;;  %v5215_v4 = vld [vmem:[#allocation32_spill] sm:$0xff] }
 0x1f9   : > { %v3877_v39 = vpop.f32.mrf.mxu0  ;;  %v2775_v12 = vpop.f32.mrf.mxu1  ;;  %v2277_v7 = vadd.f32 %v4969_v38, %v5222_v34 }
 0x1fa   : > { %3177 = vst.msk [vmem:[%s4983_s29 + $0x80] sm:$0xff] %vm393_vm1, %v3145_v1  ;;  %v3148_v57 = vadd.f32 %v3874_v42, %v2854_v51  ;;  %v2852_v25 = vadd.f32 %v2775_v12, %v2558_v6  ;;  %v2567_v42 = vadd.f32 %v5212_v3, %v2272_v43  ;;  %v2276_v1 = vadd.f32 %v5217_v2, %v5216_v53  ;;  %v5218_v6 = vld [vmem:[#allocation34_spill] sm:$0xff] }
 0x1fb   : > { %v3082_v8 = vpop.f32.mrf.mxu0  ;;  %v3843_v41 = vpop.f32.mrf.mxu1 }
 0x1fc   : > { %3180 = vst.msk [vmem:[%s4983_s29 + $0x98] sm:$0xff] %vm393_vm1, %v3148_v57  ;;  %v3146_v59 = vadd.f32 %v3069_v60, %v2852_v25  ;;  %v2857_v47 = vadd.f32 %v3843_v41, %v2563_v19  ;;  %v2565_v60 = vadd.f32 %v5215_v4, %v2270_v55  ;;  %v2274_v57 = vadd.f32 %v5220_v20, %v5219_v29  ;;  %v5221_v19 = vld [vmem:[#allocation36_spill] sm:$0xff] }
 0x1fd   : > { %v3878_v21 = vpop.f32.mrf.mxu0  ;;  %v2788_v5 = vpop.f32.mrf.mxu1 }
 0x1fe   : > { %3178 = vst.msk [vmem:[%s4983_s29 + $0x88] sm:$0xff] %vm393_vm1, %v3146_v59  ;;  %v3151_v35 = vadd.f32 %v3877_v39, %v2857_v47  ;;  %v2855_v50 = vadd.f32 %v2788_v5, %v2561_v15  ;;  %v2568_v39 = vadd.f32 %v5218_v6, %v2273_v54  ;;  %v2571_v15 = vadd.f32 %v5223_v16, %v2276_v1 }
 0x1ff   : > { %v3085_v30 = vpop.f32.mrf.mxu0  ;;  %v3844_v36 = vpop.f32.mrf.mxu1 }
 0x200   : > { %3183 = vst.msk [vmem:[%s4983_s29 + $0xb0] sm:$0xff] %vm393_vm1, %v3151_v35  ;;  %v3149_v13 = vadd.f32 %v3082_v8, %v2855_v50  ;;  %v2858_v52 = vadd.f32 %v3844_v36, %v2564_v33  ;;  %v2566_v8 = vadd.f32 %v5221_v19, %v2271_v22  ;;  %v5225_v50 = vld [vmem:[#allocation40_spill] sm:$0xff]  ;;  %v5226_v36 = vld [vmem:[#allocation42_spill] sm:$0xff] }
 0x201   : > { %v3881_v27 = vpop.f32.mrf.mxu0  ;;  %v2791_v14 = vpop.f32.mrf.mxu1  ;;  %v2569_v23 = vadd.f32 %v5225_v50, %v2274_v57  ;;  %v2572_v49 = vadd.f32 %v5226_v36, %v2277_v7 }
 0x202   : > { %3181 = vst.msk [vmem:[%s4983_s29 + $0xa0] sm:$0xff] %vm393_vm1, %v3149_v13  ;;  %v3152_v56 = vadd.f32 %v3878_v21, %v2858_v52  ;;  %v2856_v48 = vadd.f32 %v2791_v14, %v2562_v58  ;;  %v5227_v52 = vld [vmem:[#allocation44_spill] sm:$0xff] }
 0x203   : > { %v3098_v63 = vpop.f32.mrf.mxu0  ;;  %v3847_v11 = vpop.f32.mrf.mxu1  ;;  %v2570_v40 = vadd.f32 %v5227_v52, %v2275_v9 }
 0x204   : > { %3184 = vst.msk [vmem:[%s4983_s29 + $0xb8] sm:$0xff] %vm393_vm1, %v3152_v56  ;;  %v3150_v37 = vadd.f32 %v3085_v30, %v2856_v48  ;;  %v2861_v32 = vadd.f32 %v3847_v11, %v2567_v42 }
 0x205   : > { %v3882_v18 = vpop.f32.mrf.mxu0  ;;  %v2804_v61 = vpop.f32.mrf.mxu1 }
 0x206   : > { %3182 = vst.msk [vmem:[%s4983_s29 + $0xa8] sm:$0xff] %vm393_vm1, %v3150_v37  ;;  %v3155_v51 = vadd.f32 %v3881_v27, %v2861_v32  ;;  %v2859_v24 = vadd.f32 %v2804_v61, %v2565_v60 }
 0x207   : > { %v3101_v12 = vpop.f32.mrf.mxu0  ;;  %v3848_v45 = vpop.f32.mrf.mxu1 }
 0x208   : > { %3187 = vst.msk [vmem:[%s4983_s29 + $0xd0] sm:$0xff] %vm393_vm1, %v3155_v51  ;;  %v3153_v25 = vadd.f32 %v3098_v63, %v2859_v24  ;;  %v2862_v0 = vadd.f32 %v3848_v45, %v2568_v39 }
 0x209   : > { %v3885_v41 = vpop.f32.mrf.mxu0  ;;  %v2807_v17 = vpop.f32.mrf.mxu1 }
 0x20a   : > { %3185 = vst.msk [vmem:[%s4983_s29 + $0xc0] sm:$0xff] %vm393_vm1, %v3153_v25  ;;  %v3156_v59 = vadd.f32 %v3882_v18, %v2862_v0  ;;  %v2860_v47 = vadd.f32 %v2807_v17, %v2566_v8 }
 0x20b   : > { %v3851_v21 = vpop.f32.mrf.mxu1  ;;  %v3114_v5 = vpop.f32.mrf.mxu0 }
 0x20c   : > { %3188 = vst.msk [vmem:[%s4983_s29 + $0xd8] sm:$0xff] %vm393_vm1, %v3156_v59  ;;  %v3154_v43 = vadd.f32 %v3101_v12, %v2860_v47  ;;  %v2865_v35 = vadd.f32 %v3851_v21, %v2571_v15 }
 0x20d   : > { %v2820_v38 = vpop.f32.mrf.mxu1  ;;  %v3886_v28 = vpop.f32.mrf.mxu0 }
 0x20e   : > { %3186 = vst.msk [vmem:[%s4983_s29 + $0xc8] sm:$0xff] %vm393_vm1, %v3154_v43  ;;  %v3159_v33 = vadd.f32 %v3885_v41, %v2865_v35  ;;  %v2863_v30 = vadd.f32 %v2820_v38, %v2569_v23 }
 0x20f   : > { %v3852_v55 = vpop.f32.mrf.mxu1  ;;  %v3117_v44 = vpop.f32.mrf.mxu0 }
 0x210   : > { %3191 = vst.msk [vmem:[%s4983_s29 + $0xf0] sm:$0xff] %vm393_vm1, %v3159_v33  ;;  %v3157_v26 = vadd.f32 %v3114_v5, %v2863_v30  ;;  %v2866_v13 = vadd.f32 %v3852_v55, %v2572_v49 }
 0x211   : > { %v2823_v58 = vpop.f32.mrf.mxu1 }
 0x212   : > { %3189 = vst.msk [vmem:[%s4983_s29 + $0xe0] sm:$0xff] %vm393_vm1, %v3157_v26  ;;  %v3160_v27 = vadd.f32 %v3886_v28, %v2866_v13  ;;  %v2864_v14 = vadd.f32 %v2823_v58, %v2570_v40 }
 0x214   : > { %3192 = vst.msk [vmem:[%s4983_s29 + $0xf8] sm:$0xff] %vm393_vm1, %v3160_v27  ;;  %v3158_v10 = vadd.f32 %v3117_v44, %v2864_v14 }
 0x216   : > { %3190 = vst.msk [vmem:[%s4983_s29 + $0xe8] sm:$0xff] %vm393_vm1, %v3158_v10 }
 0x217 PF: > { %s15_s18 = sadd.s32 1, %s3914_s18  }
 0x218   : > { %p12_p4 = scmp.ge.s32.totalorder %s15_s18, 4  }
 0x21a   :  { %14 = sbr.rel (!%p12_p4) target bundleno = 1 (0x1), region = 83 }

// kernel: preact_block_forward.4
= control target key start
LH: loop header
LB: loop body
LE: loop exit
PB: predicated region body
PF: predicated region fallthrough
CT: control target
= control target key end

     0   :  { %s4472_s24 = smov 0   ;;  %s5991_s0 = inlined_call_operand.vmem [shape: f32[512,4], index: 0, kind: input, shape index: {}]   ;;  %s5992_s1 = inlined_call_operand.vmem [shape: f32[1,4], index: 1, kind: input, shape index: {}]   ;;  %s5993_s2 = inlined_call_operand.vmem [shape: f32[1,4], index: 2, kind: input, shape index: {}]   ;;  %s5994_s3 = inlined_call_operand.vmem [shape: bf16[9,4,8], index: 3, kind: input, shape index: {}]   ;;  %s5995_s4 = inlined_call_operand.vmem [shape: bf16[4,8], index: 4, kind: input, shape index: {}]   ;;  %s5996_s5 = inlined_call_operand.vmem [shape: f32[512,8], index: 5, kind: output, shape index: {0}]   ;;  %s5997_s6 = inlined_call_operand.vmem [shape: f32[512,8], index: 6, kind: output, shape index: {1}]   ;;  %s5998_s7 = inlined_call_operand.vmem [shape: f32[2,2,8], index: 7, kind: output, shape index: {2}]  }
   0x1 LB: > { %s4478_s25 = sadd.s32 4294967295, %s4429_s24   ;;  %p3714_p0 = scmp.ge.s32.totalorder %s4429_s24, 1  ;;  %s4429_s24 = sphi %s4472_s24, %s18_s24  }
   0x2   : > { %p243_p1 = scmp.lt.s32.totalorder %s4429_s24, 3 }
   0x4   : > { %p244_p2 = pnand %p3714_p0, %p243_p1 }
   0x6   : > { %247 = sbr.rel (%p244_p2) target bundleno = 586 (0x24a), region = 40 }
   0xb   : > { %v465_v0 = vld [vmem:[%s5995_s4] sm:$0x3]  ;;  %vm515_vm0 = vcmask 1041408   ;;  %s3715_s28 = sshll.u32 %s4478_s25, 5  ;;  %vm466_vm1 = vcmask 31744   ;;  %vm715_vm2 = vcmask 25600  }
   0xc   : > { %4404 = vmatprep.subr.msk.bf16.mxu0 %vm515_vm0, %v465_v0  ;;  %v517_v1 = vsel %vm515_vm0, %v465_v0, 0  ;;  %p4490_p3 = scmp.lt.s32.totalorder %s3715_s28, 63  ;;  %v4431_v2 = vmov 0.0   ;;  %v3740_v3 = vld [vmem:[%s5994_s3 + $0x2] sm:$0x3]  ;;  %vm680_vm3 = vcmask 64512  }
   0xd   : > { %4065 = vmatpush3.bf16.msra.mxu0 %v517_v1  ;;  %717 = vst.msk [vmem:[#allocation2 + $0x18] sm:$0xff] %vm466_vm1, %v4431_v2  ;;  %718 = vst.msk [vmem:[#allocation2 + $0x20] sm:$0xff] %vm466_vm1, %v4431_v2  ;;  %v849_v4 = vld [vmem:[%s5994_s3] sm:$0x3]  ;;  %4405 = vmatprep.subr.msk.bf16.mxu1 %vm515_vm0, %v3740_v3  ;;  %v949_v5 = vsel %vm515_vm0, %v3740_v3, 0  ;;  %p302_p4 = scmp.lt.s32.totalorder %s4478_s25, 1 }
   0xe   : > { %713 = vst.msk [vmem:[#allocation2] sm:$0xff] %vm466_vm1, %v4431_v2  ;;  %714 = vst.msk [vmem:[#allocation2 + $0x8] sm:$0xff] %vm466_vm1, %v4431_v2  ;;  %s6081_s28 = smov (!%p4490_p3, %s3715_s28), 63  ;;  %4406 = vmatprep.subr.msk.bf16.mxu0 %vm515_vm0, %v849_v4  ;;  %v4564_v6 = vld [vmem:[%s5994_s3 + $0x4] sm:$0x3]  ;;  %4099 = vmatpush3.bf16.msra.mxu1 %v949_v5  ;;  %v1161_v19 = vsel %vm515_vm0, %v849_v4, 0 }
   0xf   : > { %720 = vst.msk [vmem:[#allocation2 + $0x30] sm:$0xff] %vm466_vm1, %v4431_v2  ;;  %721 = vst.msk [vmem:[#allocation2 + $0x38] sm:$0xff] %vm466_vm1, %v4431_v2  ;;  %s4566_s13 = sshll.u32 %s6081_s28, 3  ;;  %v4571_v7 = vld [vmem:[%s5992_s1] ss:$0 sm:$0xff]  ;;  %4407 = vmatprep.subr.msk.bf16.mxu1 %vm515_vm0, %v4564_v6  ;;  %v1423_v4 = vsel %vm515_vm0, %v4564_v6, 0 }
  0x10   : > { %723 = vst.msk [vmem:[#allocation2 + $0x48] sm:$0xff] %vm466_vm1, %v4431_v2  ;;  %724 = vst.msk [vmem:[#allocation2 + $0x50] sm:$0xff] %vm466_vm1, %v4431_v2  ;;  %s4579_s18 = scalar_lea.vmem %s5991_s0, %s4566_s13  ;;  %v4584_v8 = vld [vmem:[%s5993_s2] ss:$0 sm:$0xff]  ;;  %v4636_v62 = vld [vmem:[%s5994_s3 + $0x6] sm:$0x3]  ;;  %s5117_s15 = scalar_lea.vmem %s5997_s6, %s4566_s13 }
  0x11   : > { %726 = vst.msk [vmem:[#allocation2 + $0x60] sm:$0xff] %vm466_vm1, %v4431_v2  ;;  %727 = vst.msk [vmem:[#allocation2 + $0x68] sm:$0xff] %vm466_vm1, %v4431_v2  ;;  %v307_v9 = vld [vmem:[%s4579_s18] sm:$0xff]  ;;  %v308_v10 = vld [vmem:[%s4579_s18 + $0x8] sm:$0xff]  ;;  %s6083_s25 = smov (!%p302_p4, %s4478_s25), 1  ;;  %vm3585_vm4 = vcmask 1040384  }
  0x12   : > { %729 = vst.msk [vmem:[#allocation2 + $0x78] sm:$0xff] %vm466_vm1, %v4431_v2  ;;  %730 = vst.msk [vmem:[#allocation2 + $0x80] sm:$0xff] %vm466_vm1, %v4431_v2  ;;  %v309_v11 = vld [vmem:[%s4579_s18 + $0x10] sm:$0xff]  ;;  %v346_v12 = vmul.f32 %v4571_v7, %v307_v9  ;;  %v347_v13 = vmul.f32 %v4571_v7, %v308_v10  ;;  %v310_v14 = vld [vmem:[%s4579_s18 + $0x18] sm:$0xff]  ;;  %vm3587_vm5 = vcmask 58368  }
  0x13   : > { %732 = vst.msk [vmem:[#allocation2 + $0x90] sm:$0xff] %vm466_vm1, %v4431_v2  ;;  %733 = vst.msk [vmem:[#allocation2 + $0x98] sm:$0xff] %vm466_vm1, %v4431_v2  ;;  %v348_v15 = vmul.f32 %v4571_v7, %v309_v11  ;;  %v311_v16 = vld [vmem:[%s4579_s18 + $0x20] sm:$0xff]  ;;  %v312_v17 = vld [vmem:[%s4579_s18 + $0x28] sm:$0xff]  ;;  %v349_v18 = vmul.f32 %v4571_v7, %v310_v14 }
  0x14   : > { %735 = vst.msk [vmem:[#allocation2 + $0xa8] sm:$0xff] %vm466_vm1, %v4431_v2  ;;  %736 = vst.msk [vmem:[#allocation2 + $0xb0] sm:$0xff] %vm466_vm1, %v4431_v2  ;;  %v350_v21 = vmul.f32 %v4571_v7, %v311_v16  ;;  %v351_v22 = vmul.f32 %v4571_v7, %v312_v17  ;;  %v313_v23 = vld [vmem:[%s4579_s18 + $0x30] sm:$0xff]  ;;  %v314_v24 = vld [vmem:[%s4579_s18 + $0x38] sm:$0xff]  ;;  %v385_v25 = vadd.f32 %v4584_v8, %v346_v12 }
  0x15   : > { %738 = vst.msk [vmem:[#allocation2 + $0xc0] sm:$0xff] %vm466_vm1, %v4431_v2  ;;  %739 = vst.msk [vmem:[#allocation2 + $0xc8] sm:$0xff] %vm466_vm1, %v4431_v2  ;;  %v850_v20 = vld [vmem:[#allocation2 + $0x1] sm:$0xff]  ;;  %v386_v26 = vadd.f32 %v4584_v8, %v347_v13  ;;  %v387_v27 = vadd.f32 %v4584_v8, %v348_v15  ;;  %v352_v29 = vmul.f32 %v4571_v7, %v313_v23  ;;  %v317_v40 = vld [vmem:[%s4579_s18 + $0x50] sm:$0xff] }
  0x16   : > { %741 = vst.msk [vmem:[#allocation2 + $0xd8] sm:$0xff] %vm466_vm1, %v4431_v2  ;;  %742 = vst.msk [vmem:[#allocation2 + $0xe0] sm:$0xff] %vm466_vm1, %v4431_v2  ;;  %v388_v30 = vadd.f32 %v4584_v8, %v349_v18  ;;  %v389_v32 = vadd.f32 %v4584_v8, %v350_v21  ;;  %v390_v33 = vadd.f32 %v4584_v8, %v351_v22  ;;  %v315_v34 = vld [vmem:[%s4579_s18 + $0x40] sm:$0xff]  ;;  %v316_v35 = vld [vmem:[%s4579_s18 + $0x48] sm:$0xff]  ;;  %v417_v36 = vmax.f32 %v385_v25, 0.0 }
  0x17   : > { %744 = vst.msk [vmem:[#allocation2 + $0xf0] sm:$0xff] %vm466_vm1, %v4431_v2  ;;  %745 = vst.msk [vmem:[#allocation2 + $0xf8] sm:$0xff] %vm466_vm1, %v4431_v2  ;;  %v418_v37 = vmax.f32 %v386_v26, 0.0  ;;  %v419_v38 = vmax.f32 %v387_v27, 0.0  ;;  %v353_v39 = vmul.f32 %v4571_v7, %v314_v24  ;;  %v391_v44 = vadd.f32 %v4584_v8, %v352_v29  ;;  %v318_v45 = vld [vmem:[%s4579_s18 + $0x58] sm:$0xff]  ;;  %v319_v50 = vld [vmem:[%s4579_s18 + $0x60] sm:$0xff] }
  0x18   : > { %747 = vst.msk [vmem:[#allocation2 + $0x108] sm:$0xff] %vm466_vm1, %v4431_v2  ;;  %748 = vst.msk [vmem:[#allocation2 + $0x110] sm:$0xff] %vm466_vm1, %v4431_v2  ;;  %v420_v41 = vmax.f32 %v388_v30, 0.0  ;;  %v421_v42 = vmax.f32 %v389_v32, 0.0  ;;  %v422_v43 = vmax.f32 %v390_v33, 0.0  ;;  %v354_v48 = vmul.f32 %v4571_v7, %v315_v34  ;;  %v320_v51 = vld [vmem:[%s4579_s18 + $0x68] sm:$0xff] }
  0x19   : > { %750 = vst.msk [vmem:[#allocation2 + $0x120] sm:$0xff] %vm466_vm1, %v4431_v2  ;;  %751 = vst.msk [vmem:[#allocation2 + $0x128] sm:$0xff] %vm466_vm1, %v4431_v2  ;;  %v449_v46 = vpack.c.bf16 %v418_v37, %v417_v36  ;;  %v392_v47 = vadd.f32 %v4584_v8, %v353_v39  ;;  %v355_v49 = vmul.f32 %v4571_v7, %v316_v35  ;;  %v321_v52 = vld [vmem:[%s4579_s18 + $0x70] sm:$0xff]  ;;  %v423_v55 = vmax.f32 %v391_v44, 0.0  ;;  %v322_v61 = vld [vmem:[%s4579_s18 + $0x78] sm:$0xff] }
  0x1a   : > { %753 = vst.msk [vmem:[#allocation2 + $0x138] sm:$0xff] %vm466_vm1, %v4431_v2  ;;  %754 = vst.msk [vmem:[#allocation2 + $0x140] sm:$0xff] %vm466_vm1, %v4431_v2  ;;  %v450_v53 = vpack.c.bf16 %v420_v41, %v419_v38  ;;  %v451_v54 = vpack.c.bf16 %v422_v43, %v421_v42  ;;  %v356_v56 = vmul.f32 %v4571_v7, %v317_v40  ;;  %v323_v3 = vld [vmem:[%s4579_s18 + $0x80] sm:$0xff]  ;;  %v324_v11 = vld [vmem:[%s4579_s18 + $0x88] sm:$0xff] }
  0x1b   : > { %756 = vst.msk [vmem:[#allocation2 + $0x150] sm:$0xff] %vm466_vm1, %v4431_v2  ;;  %757 = vst.msk [vmem:[#allocation2 + $0x158] sm:$0xff] %vm466_vm1, %v4431_v2  ;;  %4066 = vmatprep.mubr.msk.bf16.mxu0 %vm466_vm1, %v449_v46  ;;  %v424_v57 = vmax.f32 %v392_v47, 0.0  ;;  %v393_v58 = vadd.f32 %v4584_v8, %v354_v48  ;;  %v394_v59 = vadd.f32 %v4584_v8, %v355_v49  ;;  %v327_v33 = vld [vmem:[%s4579_s18 + $0xa0] sm:$0xff]  ;;  %v328_v34 = vld [vmem:[%s4579_s18 + $0xa8] sm:$0xff] }
  0x1c   : > { %759 = vst.msk [vmem:[#allocation2 + $0x168] sm:$0xff] %vm466_vm1, %v4431_v2  ;;  %760 = vst.msk [vmem:[#allocation2 + $0x170] sm:$0xff] %vm466_vm1, %v4431_v2  ;;  %v357_v60 = vmul.f32 %v4571_v7, %v318_v45  ;;  %4067 = vmatmul.mubr.msk.bf16.vlgmr.msra.gmra.mxu0 %vm466_vm1, %v450_v53  ;;  %v4641_v63 = vadd.f32 %v4584_v8, %v356_v56  ;;  %v358_v0 = vmul.f32 %v4571_v7, %v319_v50  ;;  %v330_v44 = vld [vmem:[%s4579_s18 + $0xb8] sm:$0xff] }
  0x1d   : > { %762 = vst.msk [vmem:[#allocation2 + $0x180] sm:$0xff] %vm466_vm1, %v4431_v2  ;;  %763 = vst.msk [vmem:[#allocation2 + $0x188] sm:$0xff] %vm466_vm1, %v4431_v2  ;;  %v359_v1 = vmul.f32 %v4571_v7, %v320_v51  ;;  %4133 = vmatpush3.bf16.msra.mxu0 %v1161_v19  ;;  %4070 = vmatprep.mubr.msk.bf16.mxu0 %vm466_vm1, %v451_v54  ;;  %v425_v5 = vmax.f32 %v393_v58, 0.0  ;;  %v426_v9 = vmax.f32 %v394_v59, 0.0  ;;  %v325_v19 = vld [vmem:[%s4579_s18 + $0x90] sm:$0xff]  ;;  %v331_v58 = vld [vmem:[%s4579_s18 + $0xc0] sm:$0xff] }
  0x1e   : > { %765 = vst.msk [vmem:[#allocation2 + $0x198] sm:$0xff] %vm466_vm1, %v4431_v2  ;;  %766 = vst.msk [vmem:[#allocation2 + $0x1a0] sm:$0xff] %vm466_vm1, %v4431_v2  ;;  %v396_v10 = vadd.f32 %v4584_v8, %v357_v60  ;;  %v427_v12 = vmax.f32 %v4641_v63, 0.0  ;;  %v4655_v13 = vadd.f32 %v4584_v8, %v358_v0  ;;  %v361_v15 = vmul.f32 %v4571_v7, %v322_v61  ;;  %v332_v59 = vld [vmem:[%s4579_s18 + $0xc8] sm:$0xff] }
  0x1f   : > { %719 = vst.msk [vmem:[#allocation2 + $0x28] sm:$0x3] %vm715_vm2, %v4431_v2  ;;  %716 = vst.msk [vmem:[#allocation2 + $0x10] sm:$0x3] %vm715_vm2, %v4431_v2  ;;  %v4658_v14 = vadd.f32 %v4584_v8, %v359_v1  ;;  %4408 = vmatprep.subr.msk.bf16.mxu0 %vm515_vm0, %v4636_v62  ;;  %v452_v6 = vpack.c.bf16 %v424_v57, %v423_v55  ;;  %v362_v18 = vmul.f32 %v4571_v7, %v323_v3 }
  0x20   : > { %722 = vst.msk [vmem:[#allocation2 + $0x40] sm:$0x3] %vm715_vm2, %v4431_v2  ;;  %725 = vst.msk [vmem:[#allocation2 + $0x58] sm:$0x3] %vm715_vm2, %v4431_v2  ;;  %v428_v16 = vmax.f32 %v396_v10, 0.0  ;;  %v429_v24 = vmax.f32 %v4655_v13, 0.0  ;;  %v4675_v26 = vadd.f32 %v4584_v8, %v361_v15  ;;  %v363_v27 = vmul.f32 %v4571_v7, %v324_v11 }
  0x21   : > { %728 = vst.msk [vmem:[#allocation2 + $0x70] sm:$0x3] %vm715_vm2, %v4431_v2  ;;  %731 = vst.msk [vmem:[#allocation2 + $0x88] sm:$0x3] %vm715_vm2, %v4431_v2  ;;  %v430_v25 = vmax.f32 %v4658_v14, 0.0  ;;  %v453_v30 = vpack.c.bf16 %v426_v9, %v425_v5  ;;  %v4683_v32 = vadd.f32 %v4584_v8, %v362_v18  ;;  %v366_v48 = vmul.f32 %v4571_v7, %v327_v33  ;;  %v335_v13 = vld [vmem:[%s4579_s18 + $0xe0] sm:$0xff] }
  0x22   : > { %734 = vst.msk [vmem:[#allocation2 + $0xa0] sm:$0x3] %vm715_vm2, %v4431_v2  ;;  %737 = vst.msk [vmem:[#allocation2 + $0xb8] sm:$0x3] %vm715_vm2, %v4431_v2  ;;  %v4703_v39 = vadd.f32 %v4584_v8, %v363_v27  ;;  %v367_v49 = vmul.f32 %v4571_v7, %v328_v34  ;;  %v454_v50 = vpack.c.bf16 %v428_v16, %v427_v12 }
  0x23   : > { %740 = vst.msk [vmem:[#allocation2 + $0xd0] sm:$0x3] %vm715_vm2, %v4431_v2  ;;  %743 = vst.msk [vmem:[#allocation2 + $0xe8] sm:$0x3] %vm715_vm2, %v4431_v2  ;;  %v433_v40 = vmax.f32 %v4683_v32, 0.0  ;;  %v4730_v54 = vadd.f32 %v4584_v8, %v366_v48  ;;  %v455_v10 = vpack.c.bf16 %v430_v25, %v429_v24  ;;  %v370_v11 = vmul.f32 %v4571_v7, %v331_v58 }
  0x24   : > { %746 = vst.msk [vmem:[#allocation2 + $0x100] sm:$0x3] %vm715_vm2, %v4431_v2  ;;  %749 = vst.msk [vmem:[#allocation2 + $0x118] sm:$0x3] %vm715_vm2, %v4431_v2  ;;  %4071 = vmatmul.mubr.msk.bf16.gmra.mxu0 %vm466_vm1, %v452_v6  ;;  %v434_v51 = vmax.f32 %v4703_v39, 0.0  ;;  %v336_v6 = vld [vmem:[%s4579_s18 + $0xe8] sm:$0xff] }
  0x25   : > { %752 = vst.msk [vmem:[#allocation2 + $0x130] sm:$0x3] %vm715_vm2, %v4431_v2  ;;  %755 = vst.msk [vmem:[#allocation2 + $0x148] sm:$0x3] %vm715_vm2, %v4431_v2  ;;  %4074 = vmatprep.mubr.msk.bf16.mxu0 %vm466_vm1, %v453_v30  ;;  %v437_v1 = vmax.f32 %v4730_v54, 0.0  ;;  %v4781_v18 = vadd.f32 %v4584_v8, %v370_v11  ;;  %v374_v30 = vmul.f32 %v4571_v7, %v335_v13 }
  0x26   : > { %758 = vst.msk [vmem:[#allocation2 + $0x160] sm:$0x3] %vm715_vm2, %v4431_v2  ;;  %761 = vst.msk [vmem:[#allocation2 + $0x178] sm:$0x3] %vm715_vm2, %v4431_v2  ;;  %v851_v28 = vld [vmem:[#allocation2 + $0x9] sm:$0xff]  ;;  %v375_v34 = vmul.f32 %v4571_v7, %v336_v6 }
  0x27   : > { %764 = vst.msk [vmem:[#allocation2 + $0x190] sm:$0x3] %vm715_vm2, %v4431_v2  ;;  %767 = vst.msk [vmem:[#allocation2 + $0x1a8] sm:$0x3] %vm715_vm2, %v4431_v2  ;;  %v882_v31 = vpack.c.bf16 %v851_v28, %v850_v20  ;;  %v360_v2 = vmul.f32 %v4571_v7, %v321_v52  ;;  %v326_v20 = vld [vmem:[%s4579_s18 + $0x98] sm:$0xff]  ;;  %v441_v33 = vmax.f32 %v4781_v18, 0.0 }
  0x28   : > { %769 = vst.msk [vmem:[#allocation2 + $0x19] sm:$0xff] %vm466_vm1, %v417_v36  ;;  %770 = vst.msk [vmem:[#allocation2 + $0x21] sm:$0xff] %vm466_vm1, %v418_v37  ;;  %v432_v36 = vmax.f32 %v4675_v26, 0.0  ;;  %v4695_v37 = vld [vmem:[%s5994_s3 + $0x8] sm:$0x3] }
  0x29   : > { %4100 = vmatprep.mubr.msk.bf16.mxu1 %vm466_vm1, %v882_v31  ;;  %771 = vst.msk [vmem:[#allocation2 + $0x31] sm:$0xff] %vm466_vm1, %v419_v38  ;;  %772 = vst.msk [vmem:[#allocation2 + $0x39] sm:$0xff] %vm466_vm1, %v420_v41  ;;  %v4666_v17 = vadd.f32 %v4584_v8, %v360_v2  ;;  %v364_v41 = vmul.f32 %v4571_v7, %v325_v19 }
  0x2a   : > { %773 = vst.msk [vmem:[#allocation2 + $0x49] sm:$0xff] %vm466_vm1, %v421_v42  ;;  %774 = vst.msk [vmem:[#allocation2 + $0x51] sm:$0xff] %vm466_vm1, %v422_v43  ;;  %v365_v42 = vmul.f32 %v4571_v7, %v326_v20  ;;  %v329_v43 = vld [vmem:[%s4579_s18 + $0xb0] sm:$0xff] }
  0x2b   : > { %775 = vst.msk [vmem:[#allocation2 + $0x61] sm:$0xff] %vm466_vm1, %v423_v55  ;;  %776 = vst.msk [vmem:[#allocation2 + $0x69] sm:$0xff] %vm466_vm1, %v424_v57  ;;  %v431_v31 = vmax.f32 %v4666_v17, 0.0  ;;  %v4724_v52 = vadd.f32 %v4584_v8, %v364_v41  ;;  %v4733_v55 = vadd.f32 %v4584_v8, %v367_v49  ;;  %v368_v56 = vmul.f32 %v4571_v7, %v329_v43 }
  0x2c   : > { %777 = vst.msk [vmem:[#allocation2 + $0x79] sm:$0xff] %vm466_vm1, %v425_v5  ;;  %778 = vst.msk [vmem:[#allocation2 + $0x81] sm:$0xff] %vm466_vm1, %v426_v9  ;;  %v4727_v53 = vadd.f32 %v4584_v8, %v365_v42  ;;  %v369_v57 = vmul.f32 %v4571_v7, %v330_v44  ;;  %v333_v5 = vld [vmem:[%s4579_s18 + $0xd0] sm:$0xff]  ;;  %v334_v9 = vld [vmem:[%s4579_s18 + $0xd8] sm:$0xff]  ;;  %4075 = vmatmul.mubr.msk.bf16.gmra.mxu0 %vm466_vm1, %v454_v50 }
  0x2d   : > { %779 = vst.msk [vmem:[#allocation2 + $0x91] sm:$0xff] %vm466_vm1, %v427_v12  ;;  %780 = vst.msk [vmem:[#allocation2 + $0x99] sm:$0xff] %vm466_vm1, %v428_v16  ;;  %v435_v63 = vmax.f32 %v4724_v52, 0.0  ;;  %v438_v2 = vmax.f32 %v4733_v55, 0.0  ;;  %v4753_v3 = vadd.f32 %v4584_v8, %v368_v56  ;;  %v371_v12 = vmul.f32 %v4571_v7, %v332_v59  ;;  %4078 = vmatprep.mubr.msk.bf16.mxu0 %vm466_vm1, %v455_v10 }
  0x2e   : > { %781 = vst.msk [vmem:[#allocation2 + $0xa9] sm:$0xff] %vm466_vm1, %v429_v24  ;;  %782 = vst.msk [vmem:[#allocation2 + $0xb1] sm:$0xff] %vm466_vm1, %v430_v25  ;;  %v436_v0 = vmax.f32 %v4727_v53, 0.0  ;;  %v372_v20 = vmul.f32 %v4571_v7, %v333_v5  ;;  %v456_v25 = vpack.c.bf16 %v432_v36, %v431_v31 }
  0x2f   : > { %v852_v21 = vld [vmem:[#allocation2 + $0x19] sm:$0xff]  ;;  %v853_v22 = vld [vmem:[#allocation2 + $0x21] sm:$0xff]  ;;  %783 = vst.msk [vmem:[#allocation2 + $0xc1] sm:$0xff] %vm466_vm1, %v431_v31  ;;  %784 = vst.msk [vmem:[#allocation2 + $0xc9] sm:$0xff] %vm466_vm1, %v432_v36  ;;  %v439_v14 = vmax.f32 %v4753_v3, 0.0  ;;  %v4784_v19 = vadd.f32 %v4584_v8, %v371_v12  ;;  %v413_v36 = vadd.f32 %v4584_v8, %v374_v30  ;;  %v459_v5 = vpack.c.bf16 %v438_v2, %v437_v1 }
  0x30   : > { %v854_v23 = vld [vmem:[#allocation2 + $0x31] sm:$0xff]  ;;  %v4678_v28 = vpack.c.bf16 %v853_v22, %v852_v21  ;;  %v855_v29 = vld [vmem:[#allocation2 + $0x39] sm:$0xff]  ;;  %785 = vst.msk [vmem:[#allocation2 + $0xd9] sm:$0xff] %vm466_vm1, %v433_v40  ;;  %786 = vst.msk [vmem:[#allocation2 + $0xe1] sm:$0xff] %vm466_vm1, %v434_v51  ;;  %v373_v21 = vmul.f32 %v4571_v7, %v334_v9  ;;  %v411_v26 = vadd.f32 %v4584_v8, %v372_v20 }
  0x31   : > { %v4687_v35 = vpack.c.bf16 %v855_v29, %v854_v23  ;;  %v856_v38 = vld [vmem:[#allocation2 + $0x49] sm:$0xff]  ;;  %v857_v45 = vld [vmem:[#allocation2 + $0x51] sm:$0xff]  ;;  %787 = vst.msk [vmem:[#allocation2 + $0xf1] sm:$0xff] %vm466_vm1, %v435_v63  ;;  %788 = vst.msk [vmem:[#allocation2 + $0xf9] sm:$0xff] %vm466_vm1, %v436_v0  ;;  %v442_v17 = vmax.f32 %v4784_v19, 0.0  ;;  %v458_v58 = vpack.c.bf16 %v436_v0, %v435_v63 }
  0x32   : > { %4101 = vmatmul.mubr.msk.bf16.vlgmr.msra.gmra.mxu1 %vm466_vm1, %v4678_v28  ;;  %v858_v46 = vld [vmem:[#allocation2 + $0x61] sm:$0xff]  ;;  %v859_v47 = vld [vmem:[#allocation2 + $0x69] sm:$0xff]  ;;  %v4741_v60 = vpack.c.bf16 %v857_v45, %v856_v38  ;;  %789 = vst.msk [vmem:[#allocation2 + $0x109] sm:$0xff] %vm466_vm1, %v437_v1  ;;  %790 = vst.msk [vmem:[#allocation2 + $0x111] sm:$0xff] %vm466_vm1, %v438_v2  ;;  %v412_v31 = vadd.f32 %v4584_v8, %v373_v21  ;;  %v443_v44 = vmax.f32 %v411_v26, 0.0 }
  0x33   : > { %4167 = vmatpush3.bf16.msra.mxu1 %v1423_v4  ;;  %4104 = vmatprep.mubr.msk.bf16.mxu1 %vm466_vm1, %v4687_v35  ;;  %v4743_v61 = vpack.c.bf16 %v859_v47, %v858_v46  ;;  %v4756_v4 = vadd.f32 %v4584_v8, %v369_v57  ;;  %v860_v16 = vld [vmem:[#allocation2 + $0x79] sm:$0xff]  ;;  %v337_v22 = vld [vmem:[%s4579_s18 + $0xf0] sm:$0xff]  ;;  %v861_v24 = vld [vmem:[#allocation2 + $0x81] sm:$0xff]  ;;  %791 = vst.msk [vmem:[#allocation2 + $0x121] sm:$0xff] %vm466_vm1, %v439_v14  ;;  %v445_v47 = vmax.f32 %v413_v36, 0.0 }
  0x34   : > { %4409 = vmatprep.subr.msk.bf16.mxu1 %vm515_vm0, %v4695_v37  ;;  %v338_v23 = vld [vmem:[%s4579_s18 + $0xf8] sm:$0xff]  ;;  %v376_v38 = vmul.f32 %v4571_v7, %v337_v22  ;;  %v4813_v42 = vpack.c.bf16 %v861_v24, %v860_v16  ;;  %793 = vst.msk [vmem:[#allocation2 + $0x139] sm:$0xff] %vm466_vm1, %v441_v33  ;;  %794 = vst.msk [vmem:[#allocation2 + $0x141] sm:$0xff] %vm466_vm1, %v442_v17  ;;  %v444_v45 = vmax.f32 %v412_v31, 0.0  ;;  %4079 = vmatmul.mubr.msk.bf16.gmra.mxu0 %vm466_vm1, %v456_v25  ;;  %v801_v19 = vld [vmem:[#allocation2] sm:$0xff]  ;;  %s5705_s18 = scalar_lea.vmem %s5996_s5, %s4566_s13  ;;  %s3721_s13 = sshll.u32 %s6083_s25, 1 }
  0x35   : > { %v440_v15 = vmax.f32 %v4756_v4, 0.0  ;;  %v862_v27 = vld [vmem:[#allocation2 + $0x91] sm:$0xff]  ;;  %v863_v29 = vld [vmem:[#allocation2 + $0x99] sm:$0xff]  ;;  %v377_v41 = vmul.f32 %v4571_v7, %v338_v23  ;;  %v414_v46 = vadd.f32 %v4584_v8, %v375_v34  ;;  %v457_v7 = vpack.c.bf16 %v434_v51, %v433_v40  ;;  %795 = vst.msk [vmem:[#allocation2 + $0x151] sm:$0xff] %vm466_vm1, %v443_v44  ;;  %797 = vst.msk [vmem:[#allocation2 + $0x169] sm:$0xff] %vm466_vm1, %v445_v47  ;;  %s305_s21 = scalar_lea.vmem %s5998_s7, %s3721_s13 }
  0x36   : > { %v4815_v43 = vpack.c.bf16 %v863_v29, %v862_v27  ;;  %v415_v48 = vadd.f32 %v4584_v8, %v376_v38  ;;  %796 = vst.msk [vmem:[#allocation2 + $0x159] sm:$0xff] %vm466_vm1, %v444_v45  ;;  %v865_v32 = vld [vmem:[#allocation2 + $0xb1] sm:$0xff]  ;;  %v866_v39 = vld [vmem:[#allocation2 + $0xc1] sm:$0xff]  ;;  %v867_v40 = vld [vmem:[#allocation2 + $0xc9] sm:$0xff]  ;;  %v461_v1 = vpack.c.bf16 %v442_v17, %v441_v33  ;;  %v462_v4 = vpack.c.bf16 %v444_v45, %v443_v44 }
  0x37   : > { %792 = vst.msk [vmem:[#allocation2 + $0x129] sm:$0xff] %vm466_vm1, %v440_v15  ;;  %v416_v49 = vadd.f32 %v4584_v8, %v377_v41  ;;  %v446_v50 = vmax.f32 %v414_v46, 0.0  ;;  %v864_v8 = vld [vmem:[#allocation2 + $0xa9] sm:$0xff]  ;;  %4082 = vmatprep.mubr.msk.bf16.mxu0 %vm466_vm1, %v457_v7  ;;  %v4844_v59 = vpack.c.bf16 %v867_v40, %v866_v39  ;;  %v868_v9 = vld [vmem:[#allocation2 + $0xd9] sm:$0xff]  ;;  %v869_v52 = vld [vmem:[#allocation2 + $0xe1] sm:$0xff]  ;;  %v460_v54 = vpack.c.bf16 %v440_v15, %v439_v14 }
  0x38   : > { %v447_v56 = vmax.f32 %v415_v48, 0.0  ;;  %v4838_v51 = vpack.c.bf16 %v865_v32, %v864_v8  ;;  %v870_v53 = vld [vmem:[#allocation2 + $0xf1] sm:$0xff]  ;;  %v871_v63 = vld [vmem:[#allocation2 + $0xf9] sm:$0xff]  ;;  %v4856_v0 = vpack.c.bf16 %v869_v52, %v868_v9  ;;  %v802_v20 = vld [vmem:[#allocation2 + $0x8] sm:$0xff]  ;;  %v1717_v44 = vsel %vm515_vm0, %v4636_v62, 0 }
  0x39   : > { %v448_v57 = vmax.f32 %v416_v49, 0.0  ;;  %798 = vst.msk [vmem:[#allocation2 + $0x171] sm:$0xff] %vm466_vm1, %v446_v50  ;;  %v4862_v55 = vpack.c.bf16 %v871_v63, %v870_v53  ;;  %v872_v2 = vld [vmem:[#allocation2 + $0x109] sm:$0xff]  ;;  %v873_v10 = vld [vmem:[#allocation2 + $0x111] sm:$0xff]  ;;  %v463_v14 = vpack.c.bf16 %v446_v50, %v445_v47  ;;  %v833_v24 = vpack.c.bf16 %v802_v20, %v801_v19  ;;  %v804_v33 = vld [vmem:[#allocation2 + $0x20] sm:$0xff] }
  0x3a   : > { %4105 = vmatmul.mubr.msk.bf16.gmra.mxu1 %vm466_vm1, %v4741_v60  ;;  %799 = vst.msk [vmem:[#allocation2 + $0x181] sm:$0xff] %vm466_vm1, %v447_v56  ;;  %v874_v11 = vld [vmem:[#allocation2 + $0x121] sm:$0xff]  ;;  %v4870_v12 = vpack.c.bf16 %v873_v10, %v872_v2  ;;  %v803_v30 = vld [vmem:[#allocation2 + $0x18] sm:$0xff]  ;;  %v1325_v17 = vld [vmem:[#allocation2 + $0xa] sm:$0xff]  ;;  %v2011_v32 = vsel %vm515_vm0, %v4695_v37, 0 }
  0x3b   : > { %4108 = vmatprep.mubr.msk.bf16.mxu1 %vm466_vm1, %v4743_v61  ;;  %800 = vst.msk [vmem:[#allocation2 + $0x189] sm:$0xff] %vm466_vm1, %v448_v57  ;;  %v876_v15 = vld [vmem:[#allocation2 + $0x139] sm:$0xff]  ;;  %v877_v6 = vld [vmem:[#allocation2 + $0x141] sm:$0xff]  ;;  %v464_v22 = vpack.c.bf16 %v448_v57, %v447_v56  ;;  %v805_v26 = vld [vmem:[#allocation2 + $0x30] sm:$0xff]  ;;  %v4892_v36 = vpack.c.bf16 %v804_v33, %v803_v30 }
  0x3c   : > { %4083 = vmatmul.mubr.msk.bf16.gmra.mxu0 %vm466_vm1, %v458_v58  ;;  %v878_v16 = vld [vmem:[#allocation2 + $0x151] sm:$0xff]  ;;  %v4880_v21 = vpack.c.bf16 %v877_v6, %v876_v15  ;;  %v880_v25 = vld [vmem:[#allocation2 + $0x169] sm:$0xff]  ;;  %v1326_v46 = vld [vmem:[#allocation2 + $0x1a] sm:$0xff] }
  0x3d   : > { %4086 = vmatprep.mubr.msk.bf16.mxu0 %vm466_vm1, %v459_v5  ;;  %v879_v18 = vld [vmem:[#allocation2 + $0x159] sm:$0xff]  ;;  %v1324_v29 = vld [vmem:[#allocation2 + $0x2] sm:$0xff]  ;;  %v4903_v45 = vld [vmem:[%s5994_s3 + $0xa] sm:$0x3] }
  0x3e   : > { %v875_v3 = vld [vmem:[#allocation2 + $0x129] sm:$0xff]  ;;  %v4882_v23 = vpack.c.bf16 %v879_v18, %v878_v16  ;;  %v806_v31 = vld [vmem:[#allocation2 + $0x38] sm:$0xff]  ;;  %v1356_v38 = vpack.c.bf16 %v1325_v17, %v1324_v29  ;;  %v809_v50 = vld [vmem:[#allocation2 + $0x60] sm:$0xff] }
  0x3f   : > { %v4872_v13 = vpack.c.bf16 %v875_v3, %v874_v11  ;;  %v4894_v41 = vpack.c.bf16 %v806_v31, %v805_v26  ;;  %v1327_v47 = vld [vmem:[#allocation2 + $0x22] sm:$0xff]  ;;  %v808_v48 = vld [vmem:[#allocation2 + $0x50] sm:$0xff]  ;;  %v1329_v7 = vld [vmem:[#allocation2 + $0x3a] sm:$0xff] }
  0x40   : > { %v881_v27 = vld [vmem:[#allocation2 + $0x171] sm:$0xff]  ;;  %v807_v62 = vld [vmem:[#allocation2 + $0x48] sm:$0xff]  ;;  %v4912_v57 = vpack.c.bf16 %v1327_v47, %v1326_v46  ;;  %v812_v37 = vld [vmem:[#allocation2 + $0x80] sm:$0xff] }
  0x41   : > { %v4890_v34 = vpack.c.bf16 %v881_v27, %v880_v25  ;;  %v1328_v49 = vld [vmem:[#allocation2 + $0x32] sm:$0xff]  ;;  %v810_v56 = vld [vmem:[#allocation2 + $0x68] sm:$0xff]  ;;  %v4914_v8 = vpack.c.bf16 %v808_v48, %v807_v62  ;;  %v1337_v18 = vld [vmem:[#allocation2 + $0x9a] sm:$0xff] }
  0x42   : > { %4109 = vmatmul.mubr.msk.bf16.gmra.mxu1 %vm466_vm1, %v4813_v42  ;;  %v4918_v39 = vpack.c.bf16 %v1329_v7, %v1328_v49  ;;  %v4920_v40 = vpack.c.bf16 %v810_v56, %v809_v50  ;;  %v4927_v58 = vld [vmem:[%s5994_s3 + $0xc] sm:$0x3]  ;;  %v1331_v9 = vld [vmem:[#allocation2 + $0x52] sm:$0xff]  ;;  %v1332_v53 = vld [vmem:[#allocation2 + $0x62] sm:$0xff] }
  0x43   : > { %4112 = vmatprep.mubr.msk.bf16.mxu1 %vm466_vm1, %v4815_v43  ;;  %v1330_v5 = vld [vmem:[#allocation2 + $0x4a] sm:$0xff]  ;;  %v811_v52 = vld [vmem:[#allocation2 + $0x78] sm:$0xff]  ;;  %v817_v19 = vld [vmem:[#allocation2 + $0xc0] sm:$0xff] }
  0x44   : > { %4087 = vmatmul.mubr.msk.bf16.gmra.mxu0 %vm466_vm1, %v460_v54  ;;  %v1333_v63 = vld [vmem:[#allocation2 + $0x6a] sm:$0xff]  ;;  %v4937_v2 = vpack.c.bf16 %v1331_v9, %v1330_v5  ;;  %v4939_v10 = vpack.c.bf16 %v812_v37, %v811_v52  ;;  %v1336_v16 = vld [vmem:[#allocation2 + $0x92] sm:$0xff]  ;;  %v820_v17 = vld [vmem:[#allocation2 + $0xe0] sm:$0xff] }
  0x45   : > { %4090 = vmatprep.mubr.msk.bf16.mxu0 %vm466_vm1, %v461_v1  ;;  %v813_v54 = vld [vmem:[#allocation2 + $0x90] sm:$0xff]  ;;  %v814_v1 = vld [vmem:[#allocation2 + $0x98] sm:$0xff]  ;;  %v4941_v11 = vpack.c.bf16 %v1333_v63, %v1332_v53  ;;  %v815_v15 = vld [vmem:[#allocation2 + $0xa8] sm:$0xff]  ;;  %v4957_v25 = vpack.c.bf16 %v1337_v18, %v1336_v16 }
  0x46   : > { %v4943_v3 = vpack.c.bf16 %v814_v1, %v813_v54  ;;  %v816_v6 = vld [vmem:[#allocation2 + $0xb0] sm:$0xff]  ;;  %v818_v20 = vld [vmem:[#allocation2 + $0xc8] sm:$0xff]  ;;  %v819_v33 = vld [vmem:[#allocation2 + $0xd8] sm:$0xff] }
  0x47   : > { %v4959_v27 = vpack.c.bf16 %v818_v20, %v817_v19  ;;  %v1338_v29 = vld [vmem:[#allocation2 + $0xaa] sm:$0xff]  ;;  %v1339_v30 = vld [vmem:[#allocation2 + $0xb2] sm:$0xff]  ;;  %v1340_v26 = vld [vmem:[#allocation2 + $0xc2] sm:$0xff]  ;;  %v4971_v47 = vpack.c.bf16 %v820_v17, %v819_v33 }
  0x48   : > { %v1341_v31 = vld [vmem:[#allocation2 + $0xca] sm:$0xff]  ;;  %v4969_v46 = vpack.c.bf16 %v1339_v30, %v1338_v29  ;;  %v1342_v49 = vld [vmem:[#allocation2 + $0xda] sm:$0xff]  ;;  %v1343_v7 = vld [vmem:[#allocation2 + $0xe2] sm:$0xff] }
  0x49   : > { %v4973_v62 = vpack.c.bf16 %v1341_v31, %v1340_v26  ;;  %v823_v50 = vld [vmem:[#allocation2 + $0x108] sm:$0xff]  ;;  %v824_v56 = vld [vmem:[#allocation2 + $0x110] sm:$0xff]  ;;  %v1345_v5 = vld [vmem:[#allocation2 + $0xfa] sm:$0xff]  ;;  %v4985_v37 = vpack.c.bf16 %v1343_v7, %v1342_v49 }
  0x4a   : > { %4113 = vmatmul.mubr.msk.bf16.gmra.mxu1 %vm466_vm1, %v4838_v51  ;;  %v825_v9 = vld [vmem:[#allocation2 + $0x120] sm:$0xff]  ;;  %v826_v52 = vld [vmem:[#allocation2 + $0x128] sm:$0xff]  ;;  %v4987_v53 = vpack.c.bf16 %v824_v56, %v823_v50  ;;  %v829_v18 = vld [vmem:[#allocation2 + $0x150] sm:$0xff] }
  0x4b   : > { %4116 = vmatprep.mubr.msk.bf16.mxu1 %vm466_vm1, %v4844_v59  ;;  %v4991_v54 = vpack.c.bf16 %v826_v52, %v825_v9  ;;  %v1346_v1 = vld [vmem:[#allocation2 + $0x10a] sm:$0xff]  ;;  %v830_v19 = vld [vmem:[#allocation2 + $0x158] sm:$0xff]  ;;  %v1351_v26 = vld [vmem:[#allocation2 + $0x142] sm:$0xff]  ;;  %v2305_v52 = vsel %vm515_vm0, %v4903_v45, 0 }
  0x4c   : > { %4091 = vmatmul.mubr.msk.bf16.gmra.mxu0 %vm466_vm1, %v462_v4  ;;  %v1334_v4 = vld [vmem:[#allocation2 + $0x7a] sm:$0xff]  ;;  %v1349_v16 = vld [vmem:[#allocation2 + $0x12a] sm:$0xff]  ;;  %v5007_v33 = vpack.c.bf16 %v830_v19, %v829_v18 }
  0x4d   : > { %4094 = vmatprep.mubr.msk.bf16.mxu0 %vm466_vm1, %v463_v14  ;;  %v1335_v14 = vld [vmem:[#allocation2 + $0x82] sm:$0xff]  ;;  %v1350_v17 = vld [vmem:[#allocation2 + $0x13a] sm:$0xff] }
  0x4e   : > { %v831_v31 = vld [vmem:[#allocation2 + $0x168] sm:$0xff]  ;;  %v1353_v49 = vld [vmem:[#allocation2 + $0x15a] sm:$0xff]  ;;  %v5017_v7 = vpack.c.bf16 %v1351_v26, %v1350_v17 }
  0x52   : > { %4117 = vmatmul.mubr.msk.bf16.gmra.mxu1 %vm466_vm1, %v4856_v0 }
  0x53   : > { %4120 = vmatprep.mubr.msk.bf16.mxu1 %vm466_vm1, %v4862_v55 }
  0x54   : > { %4095 = vmatmul.mubr.msk.bf16.gmra.mxu0 %vm466_vm1, %v464_v22  ;;  %v4953_v22 = vpack.c.bf16 %v1335_v14, %v1334_v4  ;;  %v1347_v4 = vld [vmem:[#allocation2 + $0x112] sm:$0xff] }
  0x55   : > { %4134 = vmatprep.mubr.msk.bf16.mxu0 %vm466_vm1, %v833_v24  ;;  %v4955_v24 = vpack.c.bf16 %v816_v6, %v815_v15  ;;  %v827_v14 = vld [vmem:[#allocation2 + $0x138] sm:$0xff]  ;;  %v828_v15 = vld [vmem:[#allocation2 + $0x140] sm:$0xff]  ;;  %v5001_v20 = vpack.c.bf16 %v1347_v4, %v1346_v1  ;;  %v3858_v1 = vld [vmem:[%s5994_s3 + $0xe] sm:$0x3] }
  0x56   : > { %v1348_v6 = vld [vmem:[#allocation2 + $0x122] sm:$0xff]  ;;  %v5003_v29 = vpack.c.bf16 %v828_v15, %v827_v14 }
  0x57   : > { %v5005_v30 = vpack.c.bf16 %v1349_v16, %v1348_v6 }
  0x5a   : > { %4121 = vmatmul.mubr.msk.bf16.gmra.mxu1 %vm466_vm1, %v4870_v12 }
  0x5b   : > { %4124 = vmatprep.mubr.msk.bf16.mxu1 %vm466_vm1, %v4872_v13 }
  0x5c   : > { %4135 = vmatmul.mubr.msk.bf16.vlgmr.msra.gmra.mxu0 %vm466_vm1, %v4892_v36 }
  0x5d   : > { %4201 = vmatpush3.bf16.msra.mxu0 %v1717_v44  ;;  %4138 = vmatprep.mubr.msk.bf16.mxu0 %vm466_vm1, %v4894_v41  ;;  %v822_v44 = vld [vmem:[#allocation2 + $0xf8] sm:$0xff] }
  0x5e   : > { %4410 = vmatprep.subr.msk.bf16.mxu0 %vm515_vm0, %v4903_v45  ;;  %v3875_v45 = vld [vmem:[%s5994_s3 + $0x10] sm:$0x3] }
  0x62   : > { %4125 = vmatmul.mubr.msk.bf16.gmra.mxu1 %vm466_vm1, %v4880_v21 }
  0x63   : > { %4128 = vmatprep.mubr.msk.bf16.mxu1 %vm466_vm1, %v4882_v23 }
  0x64   : > { %4139 = vmatmul.mubr.msk.bf16.gmra.mxu0 %vm466_vm1, %v4914_v8 }
  0x65   : > { %4142 = vmatprep.mubr.msk.bf16.mxu0 %vm466_vm1, %v4920_v40 }
  0x6a   : > { %4129 = vmatmul.mubr.msk.bf16.gmra.mxu1 %vm466_vm1, %v4890_v34 }
  0x6b   : > { %4168 = vmatprep.mubr.msk.bf16.mxu1 %vm466_vm1, %v1356_v38  ;;  %v821_v38 = vld [vmem:[#allocation2 + $0xf0] sm:$0xff] }
  0x6c   : > { %4143 = vmatmul.mubr.msk.bf16.gmra.mxu0 %vm466_vm1, %v4939_v10  ;;  %v4975_v48 = vpack.c.bf16 %v822_v44, %v821_v38  ;;  %v832_v38 = vld [vmem:[#allocation2 + $0x170] sm:$0xff] }
  0x6d   : > { %4146 = vmatprep.mubr.msk.bf16.mxu0 %vm466_vm1, %v4943_v3  ;;  %v1352_v44 = vld [vmem:[#allocation2 + $0x152] sm:$0xff]  ;;  %v5019_v50 = vpack.c.bf16 %v832_v38, %v831_v31 }
  0x6e   : > { %v5021_v56 = vpack.c.bf16 %v1353_v49, %v1352_v44 }
  0x72   : > { %4169 = vmatmul.mubr.msk.bf16.vlgmr.msra.gmra.mxu1 %vm466_vm1, %v4912_v57 }
  0x73   : > { %4235 = vmatpush3.bf16.msra.mxu1 %v2011_v32  ;;  %4172 = vmatprep.mubr.msk.bf16.mxu1 %vm466_vm1, %v4918_v39  ;;  %v1344_v32 = vld [vmem:[#allocation2 + $0xf2] sm:$0xff] }
  0x74   : > { %4411 = vmatprep.subr.msk.bf16.mxu1 %vm515_vm0, %v4927_v58  ;;  %4147 = vmatmul.mubr.msk.bf16.gmra.mxu0 %vm466_vm1, %v4955_v24  ;;  %v4989_v63 = vpack.c.bf16 %v1345_v5, %v1344_v32  ;;  %v1354_v32 = vld [vmem:[#allocation2 + $0x16a] sm:$0xff]  ;;  %v1355_v5 = vld [vmem:[#allocation2 + $0x172] sm:$0xff] }
  0x75   : > { %4150 = vmatprep.mubr.msk.bf16.mxu0 %vm466_vm1, %v4959_v27  ;;  %v5031_v9 = vpack.c.bf16 %v1355_v5, %v1354_v32 }
  0x7a   : > { %4173 = vmatmul.mubr.msk.bf16.gmra.mxu1 %vm466_vm1, %v4937_v2 }
  0x7b   : > { %4176 = vmatprep.mubr.msk.bf16.mxu1 %vm466_vm1, %v4941_v11 }
  0x7c   : > { %4151 = vmatmul.mubr.msk.bf16.gmra.mxu0 %vm466_vm1, %v4971_v47 }
  0x7d   : > { %4154 = vmatprep.mubr.msk.bf16.mxu0 %vm466_vm1, %v4975_v48 }
  0x82   : > { %4177 = vmatmul.mubr.msk.bf16.gmra.mxu1 %vm466_vm1, %v4953_v22 }
  0x83   : > { %4180 = vmatprep.mubr.msk.bf16.mxu1 %vm466_vm1, %v4957_v25 }
  0x84   : > { %4155 = vmatmul.mubr.msk.bf16.gmra.mxu0 %vm466_vm1, %v4987_v53 }
  0x85   : > { %4158 = vmatprep.mubr.msk.bf16.mxu0 %vm466_vm1, %v4991_v54 }
  0x8a   : > { %4181 = vmatmul.mubr.msk.bf16.gmra.mxu1 %vm466_vm1, %v4969_v46 }
  0x8b   : > { %4184 = vmatprep.mubr.msk.bf16.mxu1 %vm466_vm1, %v4973_v62 }
  0x8c   : > { %4159 = vmatmul.mubr.msk.bf16.gmra.mxu0 %vm466_vm1, %v5003_v29 }
  0x8d   : > { %4162 = vmatprep.mubr.msk.bf16.mxu0 %vm466_vm1, %v5007_v33 }
  0x92   : > { %4185 = vmatmul.mubr.msk.bf16.gmra.mxu1 %vm466_vm1, %v4985_v37 }
  0x93   : > { %4188 = vmatprep.mubr.msk.bf16.mxu1 %vm466_vm1, %v4989_v63 }
  0x94   : > { %4163 = vmatmul.mubr.msk.bf16.gmra.mxu0 %vm466_vm1, %v5019_v50 }
  0x95   : > { %4202 = vmatprep.mubr.msk.bf16.mxu0 %vm466_vm1, %v4892_v36  ;;  %v2600_v36 = vsel %vm515_vm0, %v4927_v58, 0 }
  0x9a   : > { %4189 = vmatmul.mubr.msk.bf16.gmra.mxu1 %vm466_vm1, %v5001_v20 }
  0x9b   : > { %4192 = vmatprep.mubr.msk.bf16.mxu1 %vm466_vm1, %v5005_v30 }
  0x9c   : > { %4203 = vmatmul.mubr.msk.bf16.vlgmr.msra.gmra.mxu0 %vm466_vm1, %v4894_v41 }
  0x9d   : > { %4269 = vmatpush3.bf16.msra.mxu0 %v2305_v52  ;;  %4206 = vmatprep.mubr.msk.bf16.mxu0 %vm466_vm1, %v4914_v8 }
  0x9e   : > { %4412 = vmatprep.subr.msk.bf16.mxu0 %vm515_vm0, %v3858_v1 }
  0xa2   : > { %4193 = vmatmul.mubr.msk.bf16.gmra.mxu1 %vm466_vm1, %v5017_v7 }
  0xa3   : > { %4196 = vmatprep.mubr.msk.bf16.mxu1 %vm466_vm1, %v5021_v56 }
  0xa4   : > { %4207 = vmatmul.mubr.msk.bf16.gmra.mxu0 %vm466_vm1, %v4920_v40 }
  0xa5   : > { %4210 = vmatprep.mubr.msk.bf16.mxu0 %vm466_vm1, %v4939_v10 }
  0xaa   : > { %4197 = vmatmul.mubr.msk.bf16.gmra.mxu1 %vm466_vm1, %v5031_v9 }
  0xab   : > { %4236 = vmatprep.mubr.msk.bf16.mxu1 %vm466_vm1, %v4678_v28  ;;  %v1648_v28 = vld [vmem:[#allocation2 + $0x180] sm:$0xff] }
  0xac   : > { %4211 = vmatmul.mubr.msk.bf16.gmra.mxu0 %vm466_vm1, %v4943_v3 }
  0xad   : > { %4214 = vmatprep.mubr.msk.bf16.mxu0 %vm466_vm1, %v4955_v24 }
  0xb2   : > { %4237 = vmatmul.mubr.msk.bf16.vlgmr.msra.gmra.mxu1 %vm466_vm1, %v4687_v35  ;;  %v1649_v35 = vld [vmem:[#allocation2 + $0x188] sm:$0xff] }
  0xb3   : > { %4303 = vmatpush3.bf16.msra.mxu1 %v2600_v36  ;;  %4240 = vmatprep.mubr.msk.bf16.mxu1 %vm466_vm1, %v4741_v60  ;;  %v5101_v60 = vpack.c.bf16 %v1649_v35, %v1648_v28  ;;  %v2236_v28 = vld [vmem:[#allocation2 + $0x182] sm:$0xff]  ;;  %v2237_v35 = vld [vmem:[#allocation2 + $0x18a] sm:$0xff] }
  0xb4   : > { %4413 = vmatprep.subr.msk.bf16.mxu1 %vm515_vm0, %v3875_v45  ;;  %4215 = vmatmul.mubr.msk.bf16.gmra.mxu0 %vm466_vm1, %v4959_v27 }
  0xb5   : > { %4218 = vmatprep.mubr.msk.bf16.mxu0 %vm466_vm1, %v4971_v47 }
  0xba   : > { %4241 = vmatmul.mubr.msk.bf16.gmra.mxu1 %vm466_vm1, %v4743_v61  ;;  %v1942_v61 = vld [vmem:[#allocation2 + $0x181] sm:$0xff] }
  0xbb   : > { %4244 = vmatprep.mubr.msk.bf16.mxu1 %vm466_vm1, %v4813_v42  ;;  %v1943_v42 = vld [vmem:[#allocation2 + $0x189] sm:$0xff] }
  0xbc   : > { %4219 = vmatmul.mubr.msk.bf16.gmra.mxu0 %vm466_vm1, %v4975_v48 }
  0xbd   : > { %4222 = vmatprep.mubr.msk.bf16.mxu0 %vm466_vm1, %v4987_v53 }
  0xc2   : > { %4245 = vmatmul.mubr.msk.bf16.gmra.mxu1 %vm466_vm1, %v4815_v43  ;;  %v5111_v43 = vpack.c.bf16 %v1943_v42, %v1942_v61  ;;  %v2796_v42 = vld [vmem:[#allocation2 + $0x39] sm:$0xff] }
  0xc3   : > { %4248 = vmatprep.mubr.msk.bf16.mxu1 %vm466_vm1, %v4838_v51  ;;  %v2894_v51 = vsel %vm515_vm0, %v3858_v1, 0 }
  0xc4   : > { %4223 = vmatmul.mubr.msk.bf16.gmra.mxu0 %vm466_vm1, %v4991_v54 }
  0xc5   : > { %4226 = vmatprep.mubr.msk.bf16.mxu0 %vm466_vm1, %v5003_v29 }
  0xca   : > { %4249 = vmatmul.mubr.msk.bf16.gmra.mxu1 %vm466_vm1, %v4844_v59 }
  0xcb   : > { %4252 = vmatprep.mubr.msk.bf16.mxu1 %vm466_vm1, %v4856_v0 }
  0xcc   : > { %4227 = vmatmul.mubr.msk.bf16.gmra.mxu0 %vm466_vm1, %v5007_v33 }
  0xcd   : > { %4230 = vmatprep.mubr.msk.bf16.mxu0 %vm466_vm1, %v5019_v50 }
  0xd2   : > { %4253 = vmatmul.mubr.msk.bf16.gmra.mxu1 %vm466_vm1, %v4862_v55 }
  0xd3   : > { %4256 = vmatprep.mubr.msk.bf16.mxu1 %vm466_vm1, %v4870_v12  ;;  %v3188_v12 = vsel %vm515_vm0, %v3875_v45, 0 }
  0xd4   : > { %4231 = vmatmul.mubr.msk.bf16.gmra.mxu0 %vm466_vm1, %v5101_v60 }
  0xd5   : > { %4270 = vmatprep.mubr.msk.bf16.mxu0 %vm466_vm1, %v4912_v57 }
  0xda   : > { %4257 = vmatmul.mubr.msk.bf16.gmra.mxu1 %vm466_vm1, %v4872_v13 }
  0xdb   : > { %4260 = vmatprep.mubr.msk.bf16.mxu1 %vm466_vm1, %v4880_v21 }
  0xdc   : > { %v4068_v59 = vpop.f32.mrf.mxu0  ;;  %4271 = vmatmul.mubr.msk.bf16.vlgmr.msra.gmra.mxu0 %vm466_vm1, %v4918_v39 }
  0xdd   : > { %683 = vst.msk [vmem:[%s5117_s15 + $0x10] sm:$0xff] %vm680_vm3, %v4068_v59  ;;  %4337 = vmatpush3.bf16.msra.mxu0 %v2894_v51  ;;  %4274 = vmatprep.mubr.msk.bf16.mxu0 %vm466_vm1, %v4937_v2 }
  0xde   : > { %v553_v0 = vpop.f32.mrf.mxu0 }
  0xdf   : > { %681 = vst.msk [vmem:[%s5117_s15] sm:$0xff] %vm680_vm3, %v553_v0 }
  0xe0   : > { %v4069_v55 = vpop.f32.mrf.mxu0 }
  0xe1   : > { %684 = vst.msk [vmem:[%s5117_s15 + $0x18] sm:$0xff] %vm680_vm3, %v4069_v55 }
  0xe2   : > { %4261 = vmatmul.mubr.msk.bf16.gmra.mxu1 %vm466_vm1, %v4882_v23  ;;  %v556_v13 = vpop.f32.mrf.mxu0 }
  0xe3   : > { %4264 = vmatprep.mubr.msk.bf16.mxu1 %vm466_vm1, %v4890_v34  ;;  %682 = vst.msk [vmem:[%s5117_s15 + $0x8] sm:$0xff] %vm680_vm3, %v556_v13  ;;  %v2531_v13 = vld [vmem:[#allocation2 + $0x198] sm:$0xff] }
  0xe4   : > { %v4072_v23 = vpop.f32.mrf.mxu0  ;;  %4275 = vmatmul.mubr.msk.bf16.gmra.mxu0 %vm466_vm1, %v4941_v11 }
  0xe5   : > { %687 = vst.msk [vmem:[%s5117_s15 + $0x30] sm:$0xff] %vm680_vm3, %v4072_v23  ;;  %4278 = vmatprep.mubr.msk.bf16.mxu0 %vm466_vm1, %v4953_v22  ;;  %v2532_v23 = vld [vmem:[#allocation2 + $0x1a0] sm:$0xff] }
  0xea   : > { %4265 = vmatmul.mubr.msk.bf16.gmra.mxu1 %vm466_vm1, %v5111_v43 }
  0xeb   : > { %4304 = vmatprep.mubr.msk.bf16.mxu1 %vm466_vm1, %v4894_v41  ;;  %v569_v41 = vpop.f32.mrf.mxu0 }
  0xec   : > { %685 = vst.msk [vmem:[%s5117_s15 + $0x20] sm:$0xff] %vm680_vm3, %v569_v41  ;;  %4279 = vmatmul.mubr.msk.bf16.gmra.mxu0 %vm466_vm1, %v4957_v25 }
  0xed   : > { %4282 = vmatprep.mubr.msk.bf16.mxu0 %vm466_vm1, %v4969_v46 }
  0xf2   : > { %v5137_v21 = vpop.f32.mrf.mxu1  ;;  %4305 = vmatmul.mubr.msk.bf16.vlgmr.msra.gmra.mxu1 %vm466_vm1, %v4914_v8  ;;  %v4073_v8 = vpop.f32.mrf.mxu0 }
  0xf3   : > { %4371 = vmatpush3.bf16.msra.mxu1 %v3188_v12  ;;  %4308 = vmatprep.mubr.msk.bf16.mxu1 %vm466_vm1, %v4920_v40  ;;  %688 = vst.msk [vmem:[%s5117_s15 + $0x38] sm:$0xff] %vm680_vm3, %v4073_v8  ;;  %v2797_v8 = vld [vmem:[#allocation2 + $0x49] sm:$0xff] }
  0xf4   : > { %v5145_v34 = vpop.f32.mrf.mxu1  ;;  %v572_v4 = vpop.f32.mrf.mxu0  ;;  %4283 = vmatmul.mubr.msk.bf16.gmra.mxu0 %vm466_vm1, %v4973_v62 }
  0xf5   : > { %686 = vst.msk [vmem:[%s5117_s15 + $0x28] sm:$0xff] %vm680_vm3, %v572_v4  ;;  %4286 = vmatprep.mubr.msk.bf16.mxu0 %vm466_vm1, %v4985_v37  ;;  %v2798_v4 = vld [vmem:[#allocation2 + $0x51] sm:$0xff] }
  0xf6   : > { %v5153_v57 = vpop.f32.mrf.mxu1  ;;  %v4076_v14 = vpop.f32.mrf.mxu0 }
  0xf7   : > { %691 = vst.msk [vmem:[%s5117_s15 + $0x50] sm:$0xff] %vm680_vm3, %v4076_v14  ;;  %v2799_v14 = vld [vmem:[#allocation2 + $0x61] sm:$0xff] }
  0xf8   : > { %v5157_v58 = vpop.f32.mrf.mxu1  ;;  %v585_v6 = vpop.f32.mrf.mxu0 }
  0xf9   : > { %689 = vst.msk [vmem:[%s5117_s15 + $0x40] sm:$0xff] %vm680_vm3, %v585_v6  ;;  %v2800_v6 = vld [vmem:[#allocation2 + $0x69] sm:$0xff] }
  0xfa   : > { %v5161_v40 = vpop.f32.mrf.mxu1  ;;  %4309 = vmatmul.mubr.msk.bf16.gmra.mxu1 %vm466_vm1, %v4939_v10  ;;  %v4077_v16 = vpop.f32.mrf.mxu0 }
  0xfb   : > { %4312 = vmatprep.mubr.msk.bf16.mxu1 %vm466_vm1, %v4943_v3  ;;  %692 = vst.msk [vmem:[%s5117_s15 + $0x58] sm:$0xff] %vm680_vm3, %v4077_v16 }
  0xfc   : > { %v5171_v15 = vpop.f32.mrf.mxu1  ;;  %v588_v3 = vpop.f32.mrf.mxu0  ;;  %4287 = vmatmul.mubr.msk.bf16.gmra.mxu0 %vm466_vm1, %v4989_v63 }
  0xfd   : > { %690 = vst.msk [vmem:[%s5117_s15 + $0x48] sm:$0xff] %vm680_vm3, %v588_v3  ;;  %4290 = vmatprep.mubr.msk.bf16.mxu0 %vm466_vm1, %v5001_v20 }
  0xfe   : > { %v5177_v10 = vpop.f32.mrf.mxu1  ;;  %v4080_v46 = vpop.f32.mrf.mxu0 }
  0xff   : > { %695 = vst.msk [vmem:[%s5117_s15 + $0x70] sm:$0xff] %vm680_vm3, %v4080_v46  ;;  %v2828_v46 = vpack.c.bf16 %v2798_v4, %v2797_v8  ;;  %v2806_v8 = vld [vmem:[#allocation2 + $0xb1] sm:$0xff]  ;;  %v3098_v4 = vld [vmem:[#allocation2 + $0x9a] sm:$0xff] }
 0x100   : > { %v5181_v25 = vpop.f32.mrf.mxu1  ;;  %v601_v17 = vpop.f32.mrf.mxu0 }
 0x101   : > { %693 = vst.msk [vmem:[%s5117_s15 + $0x60] sm:$0xff] %vm680_vm3, %v601_v17 }
 0x102   : > { %v5185_v18 = vpop.f32.mrf.mxu1  ;;  %4313 = vmatmul.mubr.msk.bf16.gmra.mxu1 %vm466_vm1, %v4955_v24  ;;  %v4081_v26 = vpop.f32.mrf.mxu0 }
 0x103   : > { %4316 = vmatprep.mubr.msk.bf16.mxu1 %vm466_vm1, %v4959_v27  ;;  %696 = vst.msk [vmem:[%s5117_s15 + $0x78] sm:$0xff] %vm680_vm3, %v4081_v26  ;;  %v2829_v26 = vpack.c.bf16 %v2800_v6, %v2799_v14  ;;  %v2807_v14 = vld [vmem:[#allocation2 + $0xc1] sm:$0xff]  ;;  %v2808_v6 = vld [vmem:[#allocation2 + $0xc9] sm:$0xff] }
 0x104   : > { %v5195_v19 = vpop.f32.mrf.mxu1  ;;  %v604_v27 = vpop.f32.mrf.mxu0  ;;  %4291 = vmatmul.mubr.msk.bf16.gmra.mxu0 %vm466_vm1, %v5005_v30 }
 0x105   : > { %694 = vst.msk [vmem:[%s5117_s15 + $0x68] sm:$0xff] %vm680_vm3, %v604_v27  ;;  %4294 = vmatprep.mubr.msk.bf16.mxu0 %vm466_vm1, %v5017_v7 }
 0x106   : > { %v5201_v24 = vpop.f32.mrf.mxu1  ;;  %v4084_v37 = vpop.f32.mrf.mxu0 }
 0x107   : > { %699 = vst.msk [vmem:[%s5117_s15 + $0x90] sm:$0xff] %vm680_vm3, %v4084_v37 }
 0x108   : > { %v5205_v62 = vpop.f32.mrf.mxu1  ;;  %v617_v44 = vpop.f32.mrf.mxu0 }
 0x109   : > { %697 = vst.msk [vmem:[%s5117_s15 + $0x80] sm:$0xff] %vm680_vm3, %v617_v44 }
 0x10a   : > { %v5209_v31 = vpop.f32.mrf.mxu1  ;;  %4317 = vmatmul.mubr.msk.bf16.gmra.mxu1 %vm466_vm1, %v4971_v47  ;;  %v4085_v49 = vpop.f32.mrf.mxu0 }
 0x10b   : > { %4320 = vmatprep.mubr.msk.bf16.mxu1 %vm466_vm1, %v4975_v48  ;;  %700 = vst.msk [vmem:[%s5117_s15 + $0x98] sm:$0xff] %vm680_vm3, %v4085_v49 }
 0x10c   : > { %v5219_v38 = vpop.f32.mrf.mxu1  ;;  %v620_v48 = vpop.f32.mrf.mxu0  ;;  %4295 = vmatmul.mubr.msk.bf16.gmra.mxu0 %vm466_vm1, %v5021_v56 }
 0x10d   : > { %698 = vst.msk [vmem:[%s5117_s15 + $0x88] sm:$0xff] %vm680_vm3, %v620_v48  ;;  %4298 = vmatprep.mubr.msk.bf16.mxu0 %vm466_vm1, %v5031_v9 }
 0x10e   : > { %v5225_v47 = vpop.f32.mrf.mxu1  ;;  %v4088_v20 = vpop.f32.mrf.mxu0 }
 0x10f   : > { %703 = vst.msk [vmem:[%s5117_s15 + $0xb0] sm:$0xff] %vm680_vm3, %v4088_v20  ;;  %v2801_v20 = vld [vmem:[#allocation2 + $0x79] sm:$0xff] }
 0x110   : > { %v5229_v63 = vpop.f32.mrf.mxu1  ;;  %v633_v52 = vpop.f32.mrf.mxu0 }
 0x111   : > { %701 = vst.msk [vmem:[%s5117_s15 + $0xa0] sm:$0xff] %vm680_vm3, %v633_v52  ;;  %v2802_v52 = vld [vmem:[#allocation2 + $0x81] sm:$0xff] }
 0x112   : > { %v5233_v32 = vpop.f32.mrf.mxu1  ;;  %4321 = vmatmul.mubr.msk.bf16.gmra.mxu1 %vm466_vm1, %v4987_v53  ;;  %v4089_v53 = vpop.f32.mrf.mxu0 }
 0x113   : > { %4324 = vmatprep.mubr.msk.bf16.mxu1 %vm466_vm1, %v4991_v54  ;;  %704 = vst.msk [vmem:[%s5117_s15 + $0xb8] sm:$0xff] %vm680_vm3, %v4089_v53 }
 0x114   : > { %v5243_v5 = vpop.f32.mrf.mxu1  ;;  %v636_v54 = vpop.f32.mrf.mxu0 }
 0x115   : > { %702 = vst.msk [vmem:[%s5117_s15 + $0xa8] sm:$0xff] %vm680_vm3, %v636_v54  ;;  %v2803_v54 = vld [vmem:[#allocation2 + $0x91] sm:$0xff] }
 0x116   : > { %v5249_v1 = vpop.f32.mrf.mxu1  ;;  %v4092_v7 = vpop.f32.mrf.mxu0 }
 0x117   : > { %707 = vst.msk [vmem:[%s5117_s15 + $0xd0] sm:$0xff] %vm680_vm3, %v4092_v7  ;;  %v2804_v7 = vld [vmem:[#allocation2 + $0x99] sm:$0xff] }
 0x118   : > { %v5253_v30 = vpop.f32.mrf.mxu1  ;;  %v649_v61 = vpop.f32.mrf.mxu0 }
 0x119   : > { %705 = vst.msk [vmem:[%s5117_s15 + $0xc0] sm:$0xff] %vm680_vm3, %v649_v61 }
 0x11a   : > { %v5257_v36 = vpop.f32.mrf.mxu1  ;;  %4325 = vmatmul.mubr.msk.bf16.gmra.mxu1 %vm466_vm1, %v5003_v29  ;;  %v2795_v29 = vld [vmem:[#allocation2 + $0x31] sm:$0xff]  ;;  %v4093_v51 = vpop.f32.mrf.mxu0 }
 0x11b   : > { %4328 = vmatprep.mubr.msk.bf16.mxu1 %vm466_vm1, %v5007_v33  ;;  %v5275_v33 = vpack.c.bf16 %v2237_v35, %v2236_v28  ;;  %708 = vst.msk [vmem:[%s5117_s15 + $0xd8] sm:$0xff] %vm680_vm3, %v4093_v51  ;;  %v2827_v0 = vpack.c.bf16 %v2796_v42, %v2795_v29  ;;  %v2830_v29 = vpack.c.bf16 %v2802_v52, %v2801_v20 }
 0x11c   : > { %v5267_v45 = vpop.f32.mrf.mxu1  ;;  %v652_v55 = vpop.f32.mrf.mxu0 }
 0x11d   : > { %706 = vst.msk [vmem:[%s5117_s15 + $0xc8] sm:$0xff] %vm680_vm3, %v652_v55  ;;  %4299 = vmatmul.mubr.msk.bf16.gmra.mxu0 %vm466_vm1, %v5275_v33 }
 0x11e   : > { %v5273_v56 = vpop.f32.mrf.mxu1  ;;  %v4096_v12 = vpop.f32.mrf.mxu0  ;;  %4338 = vmatprep.mubr.msk.bf16.mxu0 %vm466_vm1, %v2827_v0 }
 0x11f   : > { %711 = vst.msk [vmem:[%s5117_s15 + $0xf0] sm:$0xff] %vm680_vm3, %v4096_v12 }
 0x120   : > { %v5279_v59 = vpop.f32.mrf.mxu1 }
 0x122   : > { %v5283_v9 = vpop.f32.mrf.mxu1  ;;  %4329 = vmatmul.mubr.msk.bf16.gmra.mxu1 %vm466_vm1, %v5019_v50  ;;  %v665_v50 = vpop.f32.mrf.mxu0 }
 0x123   : > { %4332 = vmatprep.mubr.msk.bf16.mxu1 %vm466_vm1, %v5101_v60  ;;  %709 = vst.msk [vmem:[%s5117_s15 + $0xe0] sm:$0xff] %vm680_vm3, %v665_v50  ;;  %v2548_v60 = vpack.c.bf16 %v2532_v23, %v2531_v13 }
 0x124   : > { %v5293_v41 = vpop.f32.mrf.mxu1  ;;  %v4097_v3 = vpop.f32.mrf.mxu0 }
 0x125   : > { %712 = vst.msk [vmem:[%s5117_s15 + $0xf8] sm:$0xff] %vm680_vm3, %v4097_v3  ;;  %4339 = vmatmul.mubr.msk.bf16.vlgmr.msra.gmra.mxu0 %vm466_vm1, %v2828_v46 }
 0x126   : > { %v5298_v16 = vpop.f32.mrf.mxu1  ;;  %v668_v27 = vpop.f32.mrf.mxu0  ;;  %4342 = vmatprep.mubr.msk.bf16.mxu0 %vm466_vm1, %v2829_v26 }
 0x127   : > { %710 = vst.msk [vmem:[%s5117_s15 + $0xe8] sm:$0xff] %vm680_vm3, %v668_v27 }
 0x128   : > { %v5302_v17 = vpop.f32.mrf.mxu1  ;;  %v4136_v44 = vpop.f32.mrf.mxu0 }
 0x129   : > { %v1206_v49 = vadd.f32 %v4136_v44, %v5137_v21  ;;  %v2831_v21 = vpack.c.bf16 %v2804_v7, %v2803_v54 }
 0x12a   : > { %v5306_v37 = vpop.f32.mrf.mxu1  ;;  %4333 = vmatmul.mubr.msk.bf16.gmra.mxu1 %vm466_vm1, %v2548_v60  ;;  %v1197_v53 = vpop.f32.mrf.mxu0 }
 0x12b   : > { %4372 = vmatprep.mubr.msk.bf16.mxu1 %vm466_vm1, %v4918_v39  ;;  %v1198_v28 = vadd.f32 %v1197_v53, %v5145_v34  ;;  %v2805_v34 = vld [vmem:[#allocation2 + $0xa9] sm:$0xff] }
 0x12c   : > { %v5313_v48 = vpop.f32.mrf.mxu1  ;;  %v4137_v61 = vpop.f32.mrf.mxu0  ;;  %v2832_v26 = vpack.c.bf16 %v2806_v8, %v2805_v34 }
 0x12d   : > { %v1209_v42 = vadd.f32 %v4137_v61, %v5153_v57  ;;  %4343 = vmatmul.mubr.msk.bf16.gmra.mxu0 %vm466_vm1, %v2830_v29  ;;  %v2809_v61 = vld [vmem:[#allocation2 + $0xd9] sm:$0xff] }
 0x12e   : > { %v5317_v35 = vpop.f32.mrf.mxu1  ;;  %v1200_v51 = vpop.f32.mrf.mxu0  ;;  %4346 = vmatprep.mubr.msk.bf16.mxu0 %vm466_vm1, %v2831_v21  ;;  %v3101_v21 = vld [vmem:[#allocation2 + $0xc2] sm:$0xff] }
 0x12f   : > { %v1201_v0 = vadd.f32 %v1200_v51, %v5157_v58  ;;  %v3097_v58 = vld [vmem:[#allocation2 + $0x92] sm:$0xff]  ;;  %v3102_v51 = vld [vmem:[#allocation2 + $0xca] sm:$0xff] }
 0x130   : > { %v5320_v39 = vpop.f32.mrf.mxu1  ;;  %v4140_v13 = vpop.f32.mrf.mxu0  ;;  %v3125_v27 = vpack.c.bf16 %v3098_v4, %v3097_v58 }
 0x131   : > { %v1222_v57 = vadd.f32 %v4140_v13, %v5161_v40  ;;  %v2812_v13 = vld [vmem:[#allocation2 + $0xf9] sm:$0xff] }
 0x132   : > { %v4170_v55 = vpop.f32.mrf.mxu1  ;;  %4373 = vmatmul.mubr.msk.bf16.vlgmr.msra.gmra.mxu1 %vm466_vm1, %v4937_v2  ;;  %v1213_v2 = vpop.f32.mrf.mxu0 }
 0x133   : > { %v5325_v12 = vadd.f32 %v4170_v55, %v1206_v49  ;;  %4376 = vmatprep.mubr.msk.bf16.mxu1 %vm466_vm1, %v4941_v11  ;;  %v1214_v60 = vadd.f32 %v1213_v2, %v5171_v15  ;;  %v2833_v49 = vpack.c.bf16 %v2808_v6, %v2807_v14  ;;  %v2811_v55 = vld [vmem:[#allocation2 + $0xf1] sm:$0xff] }
 0x134   : > { %v1459_v23 = vpop.f32.mrf.mxu1  ;;  %v4141_v11 = vpop.f32.mrf.mxu0  ;;  %v2835_v6 = vpack.c.bf16 %v2812_v13, %v2811_v55 }
 0x135   : > { %v5332_v50 = vadd.f32 %v1459_v23, %v1198_v28  ;;  %v1225_v40 = vadd.f32 %v4141_v11, %v5177_v10  ;;  %4347 = vmatmul.mubr.msk.bf16.gmra.mxu0 %vm466_vm1, %v2832_v26  ;;  %v3099_v28 = vld [vmem:[#allocation2 + $0xaa] sm:$0xff]  ;;  %v3100_v10 = vld [vmem:[#allocation2 + $0xb2] sm:$0xff] }
 0x136   : > { %v4171_v3 = vpop.f32.mrf.mxu1  ;;  %v1216_v52 = vpop.f32.mrf.mxu0  ;;  %4350 = vmatprep.mubr.msk.bf16.mxu0 %vm466_vm1, %v2833_v49  ;;  %v3126_v23 = vpack.c.bf16 %v3100_v10, %v3099_v28  ;;  %v2815_v10 = vld [vmem:[#allocation2 + $0x121] sm:$0xff] }
 0x137   : > { %v5335_v46 = vadd.f32 %v4171_v3, %v1209_v42  ;;  %v1217_v53 = vadd.f32 %v1216_v52, %v5181_v25  ;;  %v2810_v25 = vld [vmem:[#allocation2 + $0xe1] sm:$0xff] }
 0x138   : > { %v1462_v44 = vpop.f32.mrf.mxu1  ;;  %v4144_v7 = vpop.f32.mrf.mxu0  ;;  %v2834_v4 = vpack.c.bf16 %v2810_v25, %v2809_v61  ;;  %v2816_v61 = vld [vmem:[#allocation2 + $0x129] sm:$0xff] }
 0x139   : > { %v5338_v20 = vadd.f32 %v1462_v44, %v1201_v0  ;;  %v1238_v29 = vadd.f32 %v4144_v7, %v5185_v18  ;;  %v3127_v18 = vpack.c.bf16 %v3102_v51, %v3101_v21  ;;  %v3104_v44 = vld [vmem:[#allocation2 + $0xe2] sm:$0xff] }
 0x13a   : > { %v4174_v54 = vpop.f32.mrf.mxu1  ;;  %4377 = vmatmul.mubr.msk.bf16.gmra.mxu1 %vm466_vm1, %v4953_v22  ;;  %v1229_v22 = vpop.f32.mrf.mxu0 }
 0x13b   : > { %v5343_v15 = vadd.f32 %v4174_v54, %v1222_v57  ;;  %4380 = vmatprep.mubr.msk.bf16.mxu1 %vm466_vm1, %v3125_v27  ;;  %v1230_v34 = vadd.f32 %v1229_v22, %v5195_v19  ;;  %v3106_v54 = vld [vmem:[#allocation2 + $0xfa] sm:$0xff] }
 0x13c   : > { %v1475_v42 = vpop.f32.mrf.mxu1  ;;  %v4145_v58 = vpop.f32.mrf.mxu0 }
 0x13d   : > { %v5349_v0 = vadd.f32 %v1475_v42, %v1214_v60  ;;  %v1241_v2 = vadd.f32 %v4145_v58, %v5201_v24  ;;  %4351 = vmatmul.mubr.msk.bf16.gmra.mxu0 %vm466_vm1, %v2834_v4  ;;  %v2813_v24 = vld [vmem:[#allocation2 + $0x109] sm:$0xff] }
 0x13e   : > { %v4175_v57 = vpop.f32.mrf.mxu1  ;;  %v1232_v60 = vpop.f32.mrf.mxu0  ;;  %4354 = vmatprep.mubr.msk.bf16.mxu0 %vm466_vm1, %v2835_v6 }
 0x13f   : > { %v5352_v8 = vadd.f32 %v4175_v57, %v1225_v40  ;;  %v1233_v11 = vadd.f32 %v1232_v60, %v5205_v62  ;;  %v3103_v40 = vld [vmem:[#allocation2 + $0xda] sm:$0xff]  ;;  %v3105_v62 = vld [vmem:[#allocation2 + $0xf2] sm:$0xff]  ;;  %v2837_v57 = vpack.c.bf16 %v2816_v61, %v2815_v10 }
 0x140   : > { %v1478_v14 = vpop.f32.mrf.mxu1  ;;  %v4148_v27 = vpop.f32.mrf.mxu0  ;;  %v3128_v25 = vpack.c.bf16 %v3104_v44, %v3103_v40  ;;  %v2819_v44 = vld [vmem:[#allocation2 + $0x151] sm:$0xff] }
 0x141   : > { %v5355_v3 = vadd.f32 %v1478_v14, %v1217_v53  ;;  %v1254_v49 = vadd.f32 %v4148_v27, %v5209_v31  ;;  %v2814_v53 = vld [vmem:[#allocation2 + $0x111] sm:$0xff]  ;;  %v3129_v31 = vpack.c.bf16 %v3106_v54, %v3105_v62 }
 0x142   : > { %v4178_v26 = vpop.f32.mrf.mxu1  ;;  %4381 = vmatmul.mubr.msk.bf16.gmra.mxu1 %vm466_vm1, %v3126_v23  ;;  %v1245_v28 = vpop.f32.mrf.mxu0  ;;  %v2836_v22 = vpack.c.bf16 %v2814_v53, %v2813_v24  ;;  %v3108_v14 = vld [vmem:[#allocation2 + $0x112] sm:$0xff] }
 0x143   : > { %v5359_v19 = vadd.f32 %v4178_v26, %v1238_v29  ;;  %4384 = vmatprep.mubr.msk.bf16.mxu1 %vm466_vm1, %v3127_v18  ;;  %v1246_v29 = vadd.f32 %v1245_v28, %v5219_v38  ;;  %v3110_v26 = vld [vmem:[#allocation2 + $0x12a] sm:$0xff]  ;;  %v2820_v24 = vld [vmem:[#allocation2 + $0x159] sm:$0xff] }
 0x144   : > { %v1491_v52 = vpop.f32.mrf.mxu1  ;;  %v4149_v51 = vpop.f32.mrf.mxu0 }
 0x145   : > { %v5365_v7 = vadd.f32 %v1491_v52, %v1230_v34  ;;  %v1257_v55 = vadd.f32 %v4149_v51, %v5225_v47  ;;  %4355 = vmatmul.mubr.msk.bf16.gmra.mxu0 %vm466_vm1, %v2836_v22  ;;  %v2817_v47 = vld [vmem:[#allocation2 + $0x139] sm:$0xff] }
 0x146   : > { %v4179_v42 = vpop.f32.mrf.mxu1  ;;  %v1248_v34 = vpop.f32.mrf.mxu0  ;;  %4358 = vmatprep.mubr.msk.bf16.mxu0 %vm466_vm1, %v2837_v57 }
 0x147   : > { %v5368_v21 = vadd.f32 %v4179_v42, %v1241_v2  ;;  %v1249_v58 = vadd.f32 %v1248_v34, %v5229_v63  ;;  %v3107_v2 = vld [vmem:[#allocation2 + $0x10a] sm:$0xff]  ;;  %v3109_v63 = vld [vmem:[#allocation2 + $0x122] sm:$0xff]  ;;  %v2839_v42 = vpack.c.bf16 %v2820_v24, %v2819_v44 }
 0x148   : > { %v1494_v13 = vpop.f32.mrf.mxu1  ;;  %v4152_v18 = vpop.f32.mrf.mxu0  ;;  %v3130_v53 = vpack.c.bf16 %v3108_v14, %v3107_v2 }
 0x149   : > { %v5371_v23 = vadd.f32 %v1494_v13, %v1233_v11  ;;  %v1270_v6 = vadd.f32 %v4152_v18, %v5233_v32  ;;  %v2818_v11 = vld [vmem:[#allocation2 + $0x141] sm:$0xff]  ;;  %v3131_v32 = vpack.c.bf16 %v3110_v26, %v3109_v63 }
 0x14a   : > { %v4182_v4 = vpop.f32.mrf.mxu1  ;;  %4385 = vmatmul.mubr.msk.bf16.gmra.mxu1 %vm466_vm1, %v3128_v25  ;;  %v1261_v40 = vpop.f32.mrf.mxu0  ;;  %v2838_v28 = vpack.c.bf16 %v2818_v11, %v2817_v47  ;;  %v3112_v13 = vld [vmem:[#allocation2 + $0x142] sm:$0xff] }
 0x14b   : > { %v5375_v38 = vadd.f32 %v4182_v4, %v1254_v49  ;;  %4388 = vmatprep.mubr.msk.bf16.mxu1 %vm466_vm1, %v3129_v31  ;;  %v1262_v49 = vadd.f32 %v1261_v40, %v5243_v5  ;;  %v3114_v4 = vld [vmem:[#allocation2 + $0x15a] sm:$0xff] }
 0x14c   : > { %v1507_v60 = vpop.f32.mrf.mxu1  ;;  %v4153_v54 = vpop.f32.mrf.mxu0 }
 0x14d   : > { %v5381_v27 = vadd.f32 %v1507_v60, %v1246_v29  ;;  %v1273_v10 = vadd.f32 %v4153_v54, %v5249_v1  ;;  %4359 = vmatmul.mubr.msk.bf16.gmra.mxu0 %vm466_vm1, %v2838_v28  ;;  %v2821_v1 = vld [vmem:[#allocation2 + $0x169] sm:$0xff]  ;;  %v3116_v28 = vld [vmem:[#allocation2 + $0x172] sm:$0xff] }
 0x14e   : > { %v4183_v52 = vpop.f32.mrf.mxu1  ;;  %v1264_v29 = vpop.f32.mrf.mxu0  ;;  %4362 = vmatprep.mubr.msk.bf16.mxu0 %vm466_vm1, %v2839_v42  ;;  %v3115_v54 = vld [vmem:[#allocation2 + $0x16a] sm:$0xff] }
 0x14f   : > { %v5384_v62 = vadd.f32 %v4183_v52, %v1257_v55  ;;  %v1265_v51 = vadd.f32 %v1264_v29, %v5253_v30  ;;  %v3111_v55 = vld [vmem:[#allocation2 + $0x13a] sm:$0xff]  ;;  %v3113_v30 = vld [vmem:[#allocation2 + $0x152] sm:$0xff] }
 0x150   : > { %v1510_v61 = vpop.f32.mrf.mxu1  ;;  %v4156_v31 = vpop.f32.mrf.mxu0  ;;  %v3133_v26 = vpack.c.bf16 %v3114_v4, %v3113_v30  ;;  %v3119_v4 = vld [vmem:[#allocation2 + $0x19a] sm:$0xff] }
 0x151   : > { %v5387_v25 = vadd.f32 %v1510_v61, %v1249_v58  ;;  %v1286_v57 = vadd.f32 %v4156_v31, %v5257_v36  ;;  %v2822_v58 = vld [vmem:[#allocation2 + $0x171] sm:$0xff] }
 0x152   : > { %v4186_v22 = vpop.f32.mrf.mxu1  ;;  %4389 = vmatmul.mubr.msk.bf16.gmra.mxu1 %vm466_vm1, %v3130_v53  ;;  %v1277_v2 = vpop.f32.mrf.mxu0  ;;  %v2840_v63 = vpack.c.bf16 %v2822_v58, %v2821_v1 }
 0x153   : > { %v5391_v5 = vadd.f32 %v4186_v22, %v1270_v6  ;;  %4392 = vmatprep.mubr.msk.bf16.mxu1 %vm466_vm1, %v3131_v32  ;;  %v1278_v14 = vadd.f32 %v1277_v2, %v5267_v45  ;;  %v3132_v6 = vpack.c.bf16 %v3112_v13, %v3111_v55  ;;  %v3134_v22 = vpack.c.bf16 %v3116_v28, %v3115_v54  ;;  %v3120_v2 = vld [vmem:[#allocation2 + $0x1a2] sm:$0xff] }
 0x154   : > { %v1523_v34 = vpop.f32.mrf.mxu1  ;;  %v4157_v11 = vpop.f32.mrf.mxu0 }
 0x155   : > { %v5397_v18 = vadd.f32 %v1523_v34, %v1262_v49  ;;  %v1289_v36 = vadd.f32 %v4157_v11, %v5273_v56  ;;  %4363 = vmatmul.mubr.msk.bf16.gmra.mxu0 %vm466_vm1, %v2840_v63  ;;  %v3136_v63 = vpack.c.bf16 %v3120_v2, %v3119_v4 }
 0x156   : > { %v4187_v47 = vpop.f32.mrf.mxu1  ;;  %v1280_v24 = vpop.f32.mrf.mxu0  ;;  %4366 = vmatprep.mubr.msk.bf16.mxu0 %vm466_vm1, %v5111_v43 }
 0x157   : > { %v5400_v60 = vadd.f32 %v4187_v47, %v1273_v10  ;;  %v1281_v52 = vadd.f32 %v1280_v24, %v5279_v59  ;;  %v2825_v10 = vld [vmem:[#allocation2 + $0x199] sm:$0xff]  ;;  %v2826_v59 = vld [vmem:[#allocation2 + $0x1a1] sm:$0xff] }
 0x158   : > { %v1526_v40 = vpop.f32.mrf.mxu1  ;;  %v4160_v45 = vpop.f32.mrf.mxu0  ;;  %v2842_v13 = vpack.c.bf16 %v2826_v59, %v2825_v10 }
 0x159   : > { %v5403_v44 = vadd.f32 %v1526_v40, %v1265_v51  ;;  %v1302_v56 = vadd.f32 %v4160_v45, %v5283_v9 }
 0x15a   : > { %v4190_v49 = vpop.f32.mrf.mxu1  ;;  %4393 = vmatmul.mubr.msk.bf16.gmra.mxu1 %vm466_vm1, %v3132_v6  ;;  %v1293_v42 = vpop.f32.mrf.mxu0 }
 0x15b   : > { %v5407_v53 = vadd.f32 %v4190_v49, %v1286_v57  ;;  %4396 = vmatprep.mubr.msk.bf16.mxu1 %vm466_vm1, %v3133_v26  ;;  %v1294_v29 = vadd.f32 %v1293_v42, %v5293_v41 }
 0x15c   : > { %v1539_v32 = vpop.f32.mrf.mxu1  ;;  %v4161_v55 = vpop.f32.mrf.mxu0 }
 0x15d   : > { %v5414_v61 = vadd.f32 %v1539_v32, %v1278_v14  ;;  %v1305_v1 = vadd.f32 %v4161_v55, %v5298_v16  ;;  %4367 = vmatmul.mubr.msk.bf16.gmra.mxu0 %vm466_vm1, %v2842_v13 }
 0x15e   : > { %v4191_v51 = vpop.f32.mrf.mxu1  ;;  %v1296_v34 = vpop.f32.mrf.mxu0 }
 0x15f   : > { %v5417_v31 = vadd.f32 %v4191_v51, %v1289_v36  ;;  %v1297_v43 = vadd.f32 %v1296_v34, %v5302_v17 }
 0x160   : > { %v1542_v9 = vpop.f32.mrf.mxu1  ;;  %v4164_v41 = vpop.f32.mrf.mxu0 }
 0x161   : > { %v5420_v57 = vadd.f32 %v1542_v9, %v1281_v52  ;;  %v1318_v16 = vadd.f32 %v4164_v41, %v5306_v37 }
 0x162   : > { %v4194_v58 = vpop.f32.mrf.mxu1  ;;  %4397 = vmatmul.mubr.msk.bf16.gmra.mxu1 %vm466_vm1, %v3134_v22  ;;  %v1309_v6 = vpop.f32.mrf.mxu0 }
 0x163   : > { %v5424_v30 = vadd.f32 %v4194_v58, %v1302_v56  ;;  %4400 = vmatprep.mubr.msk.bf16.mxu1 %vm466_vm1, %v5275_v33  ;;  %v1310_v17 = vadd.f32 %v1309_v6, %v5313_v48 }
 0x164   : > { %v1555_v14 = vpop.f32.mrf.mxu1  ;;  %v4165_v36 = vpop.f32.mrf.mxu0 }
 0x165   : > { %v5430_v47 = vadd.f32 %v1555_v14, %v1294_v29  ;;  %v1321_v40 = vadd.f32 %v4165_v36, %v5317_v35 }
 0x166   : > { %v4195_v11 = vpop.f32.mrf.mxu1  ;;  %v1312_v33 = vpop.f32.mrf.mxu0 }
 0x167   : > { %v5433_v26 = vadd.f32 %v4195_v11, %v1305_v1  ;;  %v1313_v49 = vadd.f32 %v1312_v33, %v5320_v39 }
 0x168   : > { %v1558_v24 = vpop.f32.mrf.mxu1  ;;  %v4204_v54 = vpop.f32.mrf.mxu0 }
 0x169   : > { %v5436_v52 = vadd.f32 %v1558_v24, %v1297_v43  ;;  %v1882_v48 = vadd.f32 %v4204_v54, %v5325_v12 }
 0x16a   : > { %v4198_v37 = vpop.f32.mrf.mxu1  ;;  %4401 = vmatmul.mubr.msk.bf16.gmra.mxu1 %vm466_vm1, %v3136_v63  ;;  %v1753_v32 = vpop.f32.mrf.mxu0 }
 0x16b   : > { %v5440_v45 = vadd.f32 %v4198_v37, %v1318_v16  ;;  %v1880_v35 = vadd.f32 %v1753_v32, %v5332_v50 }
 0x16c   : > { %v1571_v28 = vpop.f32.mrf.mxu1  ;;  %v4205_v42 = vpop.f32.mrf.mxu0 }
 0x16d   : > { %v5443_v56 = vadd.f32 %v1571_v28, %v1310_v17  ;;  %v1883_v39 = vadd.f32 %v4205_v42, %v5335_v46 }
 0x16e   : > { %v4199_v10 = vpop.f32.mrf.mxu1  ;;  %v1756_v22 = vpop.f32.mrf.mxu0 }
 0x16f   : > { %v5446_v59 = vadd.f32 %v4199_v10, %v1321_v40  ;;  %v1881_v55 = vadd.f32 %v1756_v22, %v5338_v20 }
 0x170   : > { %v1574_v29 = vpop.f32.mrf.mxu1  ;;  %v4208_v1 = vpop.f32.mrf.mxu0 }
 0x171   : > { %v5449_v51 = vadd.f32 %v1574_v29, %v1313_v49  ;;  %v1886_v9 = vadd.f32 %v4208_v1, %v5343_v15 }
 0x172   : > { %v4238_v13 = vpop.f32.mrf.mxu1  ;;  %v1769_v43 = vpop.f32.mrf.mxu0 }
 0x173   : > { %v5452_v12 = vadd.f32 %v4238_v13, %v1882_v48  ;;  %v1884_v58 = vadd.f32 %v1769_v43, %v5349_v0 }
 0x174   : > { %v2047_v34 = vpop.f32.mrf.mxu1  ;;  %v4209_v4 = vpop.f32.mrf.mxu0 }
 0x175   : > { %v5455_v50 = vadd.f32 %v2047_v34, %v1880_v35  ;;  %v1887_v2 = vadd.f32 %v4209_v4, %v5352_v8 }
 0x176   : > { %v4239_v41 = vpop.f32.mrf.mxu1  ;;  %v1772_v14 = vpop.f32.mrf.mxu0 }
 0x177   : > { %v5458_v46 = vadd.f32 %v4239_v41, %v1883_v39  ;;  %v1885_v6 = vadd.f32 %v1772_v14, %v5355_v3 }
 0x178   : > { %v2050_v16 = vpop.f32.mrf.mxu1  ;;  %v4212_v11 = vpop.f32.mrf.mxu0 }
 0x179   : > { %v5461_v20 = vadd.f32 %v2050_v16, %v1881_v55  ;;  %v1890_v63 = vadd.f32 %v4212_v11, %v5359_v19 }
 0x17a   : > { %v4242_v17 = vpop.f32.mrf.mxu1  ;;  %v1785_v40 = vpop.f32.mrf.mxu0 }
 0x17b   : > { %v5464_v15 = vadd.f32 %v4242_v17, %v1886_v9  ;;  %v1888_v24 = vadd.f32 %v1785_v40, %v5365_v7 }
 0x17c   : > { %v2063_v36 = vpop.f32.mrf.mxu1  ;;  %v4213_v49 = vpop.f32.mrf.mxu0 }
 0x17d   : > { %v5467_v0 = vadd.f32 %v2063_v36, %v1884_v58  ;;  %v1891_v37 = vadd.f32 %v4213_v49, %v5368_v21 }
 0x17e   : > { %v4243_v33 = vpop.f32.mrf.mxu1  ;;  %v1788_v48 = vpop.f32.mrf.mxu0 }
 0x17f   : > { %v5470_v8 = vadd.f32 %v4243_v33, %v1887_v2  ;;  %v1889_v28 = vadd.f32 %v1788_v48, %v5371_v23 }
 0x180   : > { %v2066_v54 = vpop.f32.mrf.mxu1  ;;  %v4216_v35 = vpop.f32.mrf.mxu0 }
 0x181   : > { %v5473_v3 = vadd.f32 %v2066_v54, %v1885_v6  ;;  %v1894_v10 = vadd.f32 %v4216_v35, %v5375_v38 }
 0x182   : > { %v4246_v32 = vpop.f32.mrf.mxu1  ;;  %v1801_v39 = vpop.f32.mrf.mxu0 }
 0x183   : > { %v5476_v19 = vadd.f32 %v4246_v32, %v1890_v63  ;;  %v1892_v29 = vadd.f32 %v1801_v39, %v5381_v27 }
 0x184   : > { %v2079_v42 = vpop.f32.mrf.mxu1  ;;  %v4217_v55 = vpop.f32.mrf.mxu0 }
 0x185   : > { %v5479_v7 = vadd.f32 %v2079_v42, %v1888_v24  ;;  %v1895_v13 = vadd.f32 %v4217_v55, %v5384_v62 }
 0x186   : > { %v4247_v22 = vpop.f32.mrf.mxu1  ;;  %v1804_v9 = vpop.f32.mrf.mxu0 }
 0x187   : > { %v5482_v21 = vadd.f32 %v4247_v22, %v1891_v37  ;;  %v1893_v34 = vadd.f32 %v1804_v9, %v5387_v25 }
 0x188   : > { %v2082_v1 = vpop.f32.mrf.mxu1  ;;  %v4220_v58 = vpop.f32.mrf.mxu0 }
 0x189   : > { %v5485_v23 = vadd.f32 %v2082_v1, %v1889_v28  ;;  %v1898_v41 = vadd.f32 %v4220_v58, %v5391_v5 }
 0x18a   : > { %v4250_v43 = vpop.f32.mrf.mxu1  ;;  %v1817_v2 = vpop.f32.mrf.mxu0 }
 0x18b   : > { %v5488_v38 = vadd.f32 %v4250_v43, %v1894_v10  ;;  %v1896_v16 = vadd.f32 %v1817_v2, %v5397_v18 }
 0x18c   : > { %v2095_v4 = vpop.f32.mrf.mxu1  ;;  %v4221_v6 = vpop.f32.mrf.mxu0 }
 0x18d   : > { %v5491_v27 = vadd.f32 %v2095_v4, %v1892_v29  ;;  %v1899_v17 = vadd.f32 %v4221_v6, %v5400_v60 }
 0x18e   : > { %v4251_v14 = vpop.f32.mrf.mxu1  ;;  %v1820_v63 = vpop.f32.mrf.mxu0 }
 0x18f   : > { %v5494_v62 = vadd.f32 %v4251_v14, %v1895_v13  ;;  %v1897_v36 = vadd.f32 %v1820_v63, %v5403_v44 }
 0x190   : > { %v2098_v11 = vpop.f32.mrf.mxu1  ;;  %v4224_v24 = vpop.f32.mrf.mxu0 }
 0x191   : > { %v5497_v25 = vadd.f32 %v2098_v11, %v1893_v34  ;;  %v1902_v33 = vadd.f32 %v4224_v24, %v5407_v53 }
 0x192   : > { %v4254_v40 = vpop.f32.mrf.mxu1  ;;  %v1833_v37 = vpop.f32.mrf.mxu0 }
 0x193   : > { %v5500_v5 = vadd.f32 %v4254_v40, %v1898_v41  ;;  %v1900_v54 = vadd.f32 %v1833_v37, %v5414_v61 }
 0x194   : > { %v2111_v49 = vpop.f32.mrf.mxu1  ;;  %v4225_v28 = vpop.f32.mrf.mxu0 }
 0x195   : > { %v5503_v18 = vadd.f32 %v2111_v49, %v1896_v16  ;;  %v1903_v32 = vadd.f32 %v4225_v28, %v5417_v31 }
 0x196   : > { %v4255_v48 = vpop.f32.mrf.mxu1  ;;  %v1836_v10 = vpop.f32.mrf.mxu0 }
 0x197   : > { %v5506_v60 = vadd.f32 %v4255_v48, %v1899_v17  ;;  %v1901_v42 = vadd.f32 %v1836_v10, %v5420_v57 }
 0x198   : > { %v2114_v35 = vpop.f32.mrf.mxu1  ;;  %v4228_v29 = vpop.f32.mrf.mxu0 }
 0x199   : > { %v5509_v44 = vadd.f32 %v2114_v35, %v1897_v36  ;;  %v1906_v22 = vadd.f32 %v4228_v29, %v5424_v30 }
 0x19a   : > { %v4258_v39 = vpop.f32.mrf.mxu1  ;;  %v1849_v13 = vpop.f32.mrf.mxu0 }
 0x19b   : > { %6000 = vst [vmem:[#allocation3_spill] sm:$0xff] %v5509_v44  ;;  %v5512_v53 = vadd.f32 %v4258_v39, %v1902_v33  ;;  %v1904_v1 = vadd.f32 %v1849_v13, %v5430_v47 }
 0x19c   : > { %v2127_v55 = vpop.f32.mrf.mxu1  ;;  %v4229_v34 = vpop.f32.mrf.mxu0 }
 0x19d   : > { %6001 = vst [vmem:[#allocation4_spill] sm:$0xff] %v5512_v53  ;;  %v5515_v61 = vadd.f32 %v2127_v55, %v1900_v54  ;;  %v1907_v43 = vadd.f32 %v4229_v34, %v5433_v26 }
 0x19e   : > { %v4259_v9 = vpop.f32.mrf.mxu1  ;;  %v1852_v41 = vpop.f32.mrf.mxu0 }
 0x19f   : > { %6002 = vst [vmem:[#allocation5_spill] sm:$0xff] %v5515_v61  ;;  %v5518_v31 = vadd.f32 %v4259_v9, %v1903_v32  ;;  %v1905_v4 = vadd.f32 %v1852_v41, %v5436_v52 }
 0x1a0   : > { %v2130_v58 = vpop.f32.mrf.mxu1  ;;  %v4232_v16 = vpop.f32.mrf.mxu0 }
 0x1a1   : > { %6003 = vst [vmem:[#allocation6_spill] sm:$0xff] %v5518_v31  ;;  %v5521_v57 = vadd.f32 %v2130_v58, %v1901_v42  ;;  %v1910_v14 = vadd.f32 %v4232_v16, %v5440_v45 }
 0x1a2   : > { %v4262_v2 = vpop.f32.mrf.mxu1  ;;  %v1865_v17 = vpop.f32.mrf.mxu0 }
 0x1a3   : > { %6004 = vst [vmem:[#allocation7_spill] sm:$0xff] %v5521_v57  ;;  %v5524_v30 = vadd.f32 %v4262_v2, %v1906_v22  ;;  %v1908_v11 = vadd.f32 %v1865_v17, %v5443_v56 }
 0x1a4   : > { %v2143_v6 = vpop.f32.mrf.mxu1  ;;  %v4233_v36 = vpop.f32.mrf.mxu0 }
 0x1a5   : > { %6005 = vst [vmem:[#allocation8_spill] sm:$0xff] %v5524_v30  ;;  %v5527_v47 = vadd.f32 %v2143_v6, %v1904_v1  ;;  %v1911_v40 = vadd.f32 %v4233_v36, %v5446_v59 }
 0x1a6   : > { %v4263_v63 = vpop.f32.mrf.mxu1  ;;  %v1868_v33 = vpop.f32.mrf.mxu0 }
 0x1a7   : > { %6006 = vst [vmem:[#allocation9_spill] sm:$0xff] %v5527_v47  ;;  %v5530_v26 = vadd.f32 %v4263_v63, %v1907_v43  ;;  %v1909_v49 = vadd.f32 %v1868_v33, %v5449_v51 }
 0x1a8   : > { %v2146_v24 = vpop.f32.mrf.mxu1  ;;  %v5538_v54 = vpop.f32.mrf.mxu0 }
 0x1a9   : > { %6007 = vst [vmem:[#allocation10_spill] sm:$0xff] %v5530_v26  ;;  %v5533_v52 = vadd.f32 %v2146_v24, %v1905_v4 }
 0x1aa   : > { %v4266_v37 = vpop.f32.mrf.mxu1  ;;  %v5542_v56 = vpop.f32.mrf.mxu0 }
 0x1ab   : > { %6008 = vst [vmem:[#allocation11_spill] sm:$0xff] %v5533_v52  ;;  %v5536_v45 = vadd.f32 %v4266_v37, %v1910_v14 }
 0x1ac   : > { %v2159_v48 = vpop.f32.mrf.mxu1  ;;  %v5546_v59 = vpop.f32.mrf.mxu0 }
 0x1ad   : > { %6009 = vst [vmem:[#allocation12_spill] sm:$0xff] %v5536_v45  ;;  %v5540_v28 = vadd.f32 %v2159_v48, %v1908_v11 }
 0x1ae   : > { %v4267_v32 = vpop.f32.mrf.mxu1  ;;  %v5550_v39 = vpop.f32.mrf.mxu0 }
 0x1af   : > { %6010 = vst [vmem:[#allocation13_spill] sm:$0xff] %v5540_v28  ;;  %v5544_v35 = vadd.f32 %v4267_v32, %v1911_v40 }
 0x1b0   : > { %v2162_v10 = vpop.f32.mrf.mxu1  ;;  %v5554_v29 = vpop.f32.mrf.mxu0 }
 0x1b1   : > { %6011 = vst [vmem:[#allocation14_spill] sm:$0xff] %v5544_v35  ;;  %v5548_v42 = vadd.f32 %v2162_v10, %v1909_v49 }
 0x1b2   : > { %v5552_v51 = vpop.f32.mrf.mxu1  ;;  %v5558_v55 = vpop.f32.mrf.mxu0 }
 0x1b3   : > { %6012 = vst [vmem:[#allocation15_spill] sm:$0xff] %v5548_v42 }
 0x1b4   : > { %v5556_v22 = vpop.f32.mrf.mxu1  ;;  %v5562_v1 = vpop.f32.mrf.mxu0 }
 0x1b6   : > { %v5560_v13 = vpop.f32.mrf.mxu1  ;;  %v5566_v34 = vpop.f32.mrf.mxu0 }
 0x1b8   : > { %v5564_v9 = vpop.f32.mrf.mxu1  ;;  %v5570_v58 = vpop.f32.mrf.mxu0 }
 0x1ba   : > { %v5568_v43 = vpop.f32.mrf.mxu1  ;;  %v5574_v4 = vpop.f32.mrf.mxu0 }
 0x1bc   : > { %v5572_v41 = vpop.f32.mrf.mxu1  ;;  %v5578_v16 = vpop.f32.mrf.mxu0 }
 0x1be   : > { %v5576_v2 = vpop.f32.mrf.mxu1  ;;  %v5582_v6 = vpop.f32.mrf.mxu0 }
 0x1c0   : > { %v5580_v14 = vpop.f32.mrf.mxu1  ;;  %v5586_v11 = vpop.f32.mrf.mxu0 }
 0x1c2   : > { %v5584_v17 = vpop.f32.mrf.mxu1  ;;  %v5590_v36 = vpop.f32.mrf.mxu0 }
 0x1c4   : > { %v5588_v63 = vpop.f32.mrf.mxu1  ;;  %v5594_v24 = vpop.f32.mrf.mxu0 }
 0x1c6   : > { %v5592_v40 = vpop.f32.mrf.mxu1  ;;  %v5598_v49 = vpop.f32.mrf.mxu0 }
 0x1c8   : > { %v5596_v33 = vpop.f32.mrf.mxu1  ;;  %v5602_v48 = vpop.f32.mrf.mxu0 }
 0x1ca   : > { %v5600_v37 = vpop.f32.mrf.mxu1  ;;  %v5606_v10 = vpop.f32.mrf.mxu0 }
 0x1cc   : > { %v5604_v32 = vpop.f32.mrf.mxu1  ;;  %v5610_v35 = vpop.f32.mrf.mxu0 }
 0x1ce   : > { %v5608_v42 = vpop.f32.mrf.mxu1  ;;  %v5614_v45 = vpop.f32.mrf.mxu0 }
 0x1cf   : > { %6014 = vst [vmem:[#allocation17_spill] sm:$0xff] %v5614_v45 }
 0x1d0   : > { %v5612_v28 = vpop.f32.mrf.mxu1  ;;  %v5618_v26 = vpop.f32.mrf.mxu0 }
 0x1d1   : > { %6013 = vst [vmem:[#allocation16_spill] sm:$0xff] %v5612_v28  ;;  %6016 = vst [vmem:[#allocation19_spill] sm:$0xff] %v5618_v26 }
 0x1d2   : > { %v5616_v52 = vpop.f32.mrf.mxu1  ;;  %v5622_v30 = vpop.f32.mrf.mxu0 }
 0x1d3   : > { %6015 = vst [vmem:[#allocation18_spill] sm:$0xff] %v5616_v52  ;;  %6018 = vst [vmem:[#allocation21_spill] sm:$0xff] %v5622_v30 }
 0x1d4   : > { %v5620_v47 = vpop.f32.mrf.mxu1  ;;  %v5626_v31 = vpop.f32.mrf.mxu0 }
 0x1d5   : > { %6017 = vst [vmem:[#allocation20_spill] sm:$0xff] %v5620_v47  ;;  %6020 = vst [vmem:[#allocation23_spill] sm:$0xff] %v5626_v31 }
 0x1d6   : > { %v5624_v57 = vpop.f32.mrf.mxu1  ;;  %v5630_v53 = vpop.f32.mrf.mxu0 }
 0x1d7   : > { %6019 = vst [vmem:[#allocation22_spill] sm:$0xff] %v5624_v57  ;;  %6022 = vst [vmem:[#allocation25_spill] sm:$0xff] %v5630_v53 }
 0x1d8   : > { %v5628_v61 = vpop.f32.mrf.mxu1  ;;  %v5634_v28 = vpop.f32.mrf.mxu0 }
 0x1d9   : > { %6021 = vst [vmem:[#allocation24_spill] sm:$0xff] %v5628_v61  ;;  %6024 = vst [vmem:[#allocation27_spill] sm:$0xff] %v5634_v28 }
 0x1da   : > { %v5632_v44 = vpop.f32.mrf.mxu1  ;;  %v5638_v52 = vpop.f32.mrf.mxu0 }
 0x1db   : > { %6023 = vst [vmem:[#allocation26_spill] sm:$0xff] %v5632_v44  ;;  %6026 = vst [vmem:[#allocation29_spill] sm:$0xff] %v5638_v52 }
 0x1dc   : > { %v5636_v45 = vpop.f32.mrf.mxu1  ;;  %v5642_v47 = vpop.f32.mrf.mxu0 }
 0x1dd   : > { %6025 = vst [vmem:[#allocation28_spill] sm:$0xff] %v5636_v45  ;;  %6028 = vst [vmem:[#allocation31_spill] sm:$0xff] %v5642_v47 }
 0x1de   : > { %v5640_v26 = vpop.f32.mrf.mxu1  ;;  %v5646_v57 = vpop.f32.mrf.mxu0 }
 0x1df   : > { %6027 = vst [vmem:[#allocation30_spill] sm:$0xff] %v5640_v26  ;;  %6030 = vst [vmem:[#allocation33_spill] sm:$0xff] %v5646_v57 }
 0x1e0   : > { %v5644_v30 = vpop.f32.mrf.mxu1  ;;  %v5650_v61 = vpop.f32.mrf.mxu0 }
 0x1e1   : > { %6029 = vst [vmem:[#allocation32_spill] sm:$0xff] %v5644_v30  ;;  %6031 = vst [vmem:[#allocation34_spill] sm:$0xff] %v5650_v61  ;;  %v2470_v61 = vadd.f32 %v5538_v54, %v5452_v12 }
 0x1e2   : > { %v5648_v31 = vpop.f32.mrf.mxu1  ;;  %v5654_v44 = vpop.f32.mrf.mxu0 }
 0x1e3   : > { %6033 = vst [vmem:[#allocation36_spill] sm:$0xff] %v5654_v44 }
 0x1e4   : > { %v5652_v53 = vpop.f32.mrf.mxu1  ;;  %v5658_v45 = vpop.f32.mrf.mxu0 }
 0x1e5   : > { %6032 = vst [vmem:[#allocation35_spill] sm:$0xff] %v5652_v53  ;;  %6035 = vst [vmem:[#allocation38_spill] sm:$0xff] %v5658_v45  ;;  %v2468_v53 = vadd.f32 %v5542_v56, %v5455_v50  ;;  %v2472_v50 = vadd.f32 %v5558_v55, %v5467_v0 }
 0x1e6   : > { %v5656_v28 = vpop.f32.mrf.mxu1  ;;  %v5662_v26 = vpop.f32.mrf.mxu0 }
 0x1e7   : > { %6034 = vst [vmem:[#allocation37_spill] sm:$0xff] %v5656_v28  ;;  %6037 = vst [vmem:[#allocation40_spill] sm:$0xff] %v5662_v26  ;;  %v2471_v28 = vadd.f32 %v5546_v59, %v5458_v46  ;;  %v2763_v26 = vadd.f32 %v5556_v22, %v2468_v53  ;;  %v2475_v46 = vadd.f32 %v5562_v1, %v5470_v8 }
 0x1e8   : > { %v5660_v52 = vpop.f32.mrf.mxu1  ;;  %v4340_v30 = vpop.f32.mrf.mxu0  ;;  %v2478_v53 = vadd.f32 %v5570_v58, %v5476_v19  ;;  %v2767_v0 = vadd.f32 %v5572_v41, %v2472_v50  ;;  %v2480_v22 = vadd.f32 %v5590_v36, %v5491_v27  ;;  %v2484_v58 = vadd.f32 %v5606_v10, %v5503_v18  ;;  %v6043_v18 = vld [vmem:[#allocation18_spill] sm:$0xff] }
 0x1e9   : > { %6036 = vst [vmem:[#allocation39_spill] sm:$0xff] %v5660_v52  ;;  %v2469_v52 = vadd.f32 %v5550_v39, %v5461_v20  ;;  %v2766_v54 = vadd.f32 %v5560_v13, %v2471_v28  ;;  %v2476_v28 = vadd.f32 %v5574_v4, %v5479_v7  ;;  %v2770_v8 = vadd.f32 %v5576_v2, %v2475_v46 }
 0x1ea   : > { %v5664_v47 = vpop.f32.mrf.mxu1  ;;  %v2930_v44 = vpop.f32.mrf.mxu0 }
 0x1eb   : > { %6038 = vst [vmem:[#allocation41_spill] sm:$0xff] %v5664_v47  ;;  %v2765_v47 = vadd.f32 %v5552_v51, %v2470_v61  ;;  %v2764_v20 = vadd.f32 %v5564_v9, %v2469_v52  ;;  %v2473_v61 = vadd.f32 %v5566_v34, %v5473_v3  ;;  %v2479_v52 = vadd.f32 %v5578_v16, %v5482_v21 }
 0x1ec   : > { %v5666_v57 = vpop.f32.mrf.mxu1  ;;  %v4341_v12 = vpop.f32.mrf.mxu0  ;;  %v5713_v51 = vadd.f32 %v5584_v17, %v2478_v53  ;;  %v2482_v21 = vadd.f32 %v5586_v11, %v5488_v38  ;;  %v2481_v9 = vadd.f32 %v5598_v49, %v5497_v25  ;;  %v2486_v34 = vadd.f32 %v5602_v48, %v5500_v5  ;;  %v6040_v5 = vld [vmem:[#allocation16_spill] sm:$0xff]  ;;  %v6042_v17 = vld [vmem:[#allocation17_spill] sm:$0xff] }
 0x1ed   : > { %6039 = vst [vmem:[#allocation42_spill] sm:$0xff] %v5666_v57  ;;  %v2474_v57 = vadd.f32 %v5554_v29, %v5464_v15  ;;  %v3059_v59 = vadd.f32 %v4340_v30, %v2765_v47  ;;  %v5708_v19 = vadd.f32 %v5580_v14, %v2473_v61  ;;  %v3057_v30 = vadd.f32 %v2930_v44, %v2763_v26  ;;  %v6044_v49 = vld [vmem:[#allocation4_spill] sm:$0xff]  ;;  %v6048_v53 = vld [vmem:[#allocation21_spill] sm:$0xff] }
 0x1ee   : > { %v5676_v45 = vpop.f32.mrf.mxu1  ;;  %v2933_v39 = vpop.f32.mrf.mxu0  ;;  %v5718_v29 = vadd.f32 %v5588_v63, %v2476_v28  ;;  %v5723_v13 = vadd.f32 %v5592_v40, %v2479_v52  ;;  %v3060_v44 = vadd.f32 %v4341_v12, %v2766_v54  ;;  %v5735_v27 = vadd.f32 %v5600_v37, %v2482_v21  ;;  %v6045_v37 = vld [vmem:[#allocation19_spill] sm:$0xff] }
 0x1ef   : > { %v2769_v15 = vadd.f32 %v5568_v43, %v2474_v57  ;;  %v2477_v57 = vadd.f32 %v5582_v6, %v5485_v23  ;;  %v2483_v23 = vadd.f32 %v5594_v24, %v5494_v62  ;;  %v5740_v62 = vadd.f32 %v5604_v32, %v2480_v22  ;;  %v6041_v6 = vld [vmem:[#allocation3_spill] sm:$0xff]  ;;  %v6049_v22 = vld [vmem:[#allocation22_spill] sm:$0xff] }
 0x1f0   : > { %v5688_v56 = vpop.f32.mrf.mxu1  ;;  %v4344_v47 = vpop.f32.mrf.mxu0  ;;  %v3058_v41 = vadd.f32 %v2933_v39, %v2764_v20  ;;  %v2487_v16 = vadd.f32 %v5610_v35, %v5506_v60  ;;  %v5752_v14 = vadd.f32 %v6040_v5, %v2481_v9  ;;  %v2485_v11 = vadd.f32 %v6042_v17, %v6041_v6  ;;  %v6046_v35 = vld [vmem:[#allocation20_spill] sm:$0xff] }
 0x1f1   : > { %v5730_v38 = vadd.f32 %v5596_v33, %v2477_v57  ;;  %v5747_v25 = vadd.f32 %v5608_v42, %v2483_v23  ;;  %v5757_v36 = vadd.f32 %v6043_v18, %v2486_v34  ;;  %v3063_v40 = vadd.f32 %v4344_v47, %v2769_v15  ;;  %v6047_v15 = vld [vmem:[#allocation5_spill] sm:$0xff] }
 0x1f2   : > { %v4374_v3 = vpop.f32.mrf.mxu1  ;;  %v2946_v1 = vpop.f32.mrf.mxu0  ;;  %v5763_v60 = vadd.f32 %v6045_v37, %v6044_v49  ;;  %v5766_v48 = vadd.f32 %v6046_v35, %v2484_v58  ;;  %v6050_v58 = vld [vmem:[#allocation6_spill] sm:$0xff] }
 0x1f3   : > { %v3353_v7 = vadd.f32 %v4374_v3, %v3059_v59  ;;  %v3061_v10 = vadd.f32 %v2946_v1, %v2767_v0  ;;  %v5774_v59 = vadd.f32 %v6048_v53, %v6047_v15 }
 0x1f4   : > { %v3224_v55 = vpop.f32.mrf.mxu1  ;;  %v4345_v2 = vpop.f32.mrf.mxu0 }
 0x1f5   : > { %3385 = vst.msk [vmem:[%s5705_s18 + $0x10] sm:$0xff] %vm680_vm3, %v3353_v7  ;;  %v3351_v26 = vadd.f32 %v3224_v55, %v3057_v30  ;;  %v3486_v32 = vmul.f32 %v3353_v7, %v3353_v7  ;;  %v3418_v39 = vsel %vm680_vm3, %v3353_v7, 0.0  ;;  %v3064_v28 = vadd.f32 %v4345_v2, %v2770_v8 }
 0x1f6   : > { %v4375_v43 = vpop.f32.mrf.mxu1  ;;  %v2949_v33 = vpop.f32.mrf.mxu0  ;;  %v5782_v55 = vadd.f32 %v6049_v22, %v2487_v16  ;;  %v6052_v16 = vld [vmem:[#allocation24_spill] sm:$0xff] }
 0x1f7   : > { %3383 = vst.msk [vmem:[%s5705_s18] sm:$0xff] %vm680_vm3, %v3351_v26  ;;  %v3354_v4 = vadd.f32 %v4375_v43, %v3060_v44  ;;  %v3484_v24 = vmul.f32 %v3351_v26, %v3351_v26  ;;  %v3415_v50 = vsel %vm680_vm3, %v3351_v26, 0.0  ;;  %v3519_v23 = vsel %vm680_vm3, %v3486_v32, 0.0 }
 0x1f8   : > { %v3227_v63 = vpop.f32.mrf.mxu1  ;;  %v4348_v61 = vpop.f32.mrf.mxu0  ;;  %v3062_v1 = vadd.f32 %v2949_v33, %v5708_v19  ;;  %v5794_v5 = vadd.f32 %v6052_v16, %v2485_v11 }
 0x1f9   : > { %3386 = vst.msk [vmem:[%s5705_s18 + $0x18] sm:$0xff] %vm680_vm3, %v3354_v4  ;;  %v3352_v42 = vadd.f32 %v3227_v63, %v3058_v41  ;;  %v3516_v3 = vsel %vm680_vm3, %v3484_v24, 0.0  ;;  %v3487_v57 = vmul.f32 %v3354_v4, %v3354_v4  ;;  %v3420_v26 = vsel %vm680_vm3, %v3354_v4, 0.0  ;;  %v6051_v41 = vld [vmem:[#allocation23_spill] sm:$0xff] }
 0x1fa   : > { %v4378_v12 = vpop.f32.mrf.mxu1  ;;  %v2962_v21 = vpop.f32.mrf.mxu0  ;;  %v5791_v2 = vadd.f32 %v6051_v41, %v6050_v58  ;;  %v3067_v19 = vadd.f32 %v4348_v61, %v5713_v51 }
 0x1fb   : > { %3384 = vst.msk [vmem:[%s5705_s18 + $0x8] sm:$0xff] %vm680_vm3, %v3352_v42  ;;  %v3416_v54 = vsel %vm680_vm3, %v3352_v42, 0.0  ;;  %v3485_v46 = vmul.f32 %v3352_v42, %v3352_v42  ;;  %v3357_v20 = vadd.f32 %v4378_v12, %v3063_v40  ;;  %v3521_v4 = vsel %vm680_vm3, %v3487_v57, 0.0  ;;  %v6055_v57 = vld [vmem:[#allocation26_spill] sm:$0xff] }
 0x1fc   : > { %v3417_v0 = vadd.f32 %v3416_v54, %v3415_v50  ;;  %v3240_v52 = vpop.f32.mrf.mxu1  ;;  %v4349_v43 = vpop.f32.mrf.mxu0  ;;  %v3065_v11 = vadd.f32 %v2962_v21, %v5718_v29  ;;  %v6053_v50 = vld [vmem:[#allocation7_spill] sm:$0xff]  ;;  %v6054_v54 = vld [vmem:[#allocation25_spill] sm:$0xff] }
 0x1fd   : > { %v3517_v30 = vsel %vm680_vm3, %v3485_v46, 0.0  ;;  %3389 = vst.msk [vmem:[%s5705_s18 + $0x30] sm:$0xff] %vm680_vm3, %v3357_v20  ;;  %v3355_v47 = vadd.f32 %v3240_v52, %v3061_v10  ;;  %v3490_v42 = vmul.f32 %v3357_v20, %v3357_v20  ;;  %v5808_v46 = vadd.f32 %v6054_v54, %v6053_v50 }
 0x1fe   : > { %v3419_v44 = vadd.f32 %v3418_v39, %v3417_v0  ;;  %v3518_v7 = vadd.f32 %v3517_v30, %v3516_v3  ;;  %v4379_v8 = vpop.f32.mrf.mxu1  ;;  %v2965_v24 = vpop.f32.mrf.mxu0  ;;  %v3426_v61 = vsel %vm680_vm3, %v3357_v20, 0.0  ;;  %v5817_v30 = vadd.f32 %v6055_v57, %v5763_v60  ;;  %v6058_v60 = vld [vmem:[#allocation28_spill] sm:$0xff] }
 0x1ff   : > { %3387 = vst.msk [vmem:[%s5705_s18 + $0x20] sm:$0xff] %vm680_vm3, %v3355_v47  ;;  %v3488_v9 = vmul.f32 %v3355_v47, %v3355_v47  ;;  %v3358_v34 = vadd.f32 %v4379_v8, %v3064_v28  ;;  %v3422_v18 = vsel %vm680_vm3, %v3355_v47, 0.0  ;;  %v3068_v28 = vadd.f32 %v4349_v43, %v5723_v13 }
 0x200   : > { %v3520_v6 = vadd.f32 %v3519_v23, %v3518_v7  ;;  %v3421_v17 = vadd.f32 %v3420_v26, %v3419_v44  ;;  %v3243_v63 = vpop.f32.mrf.mxu1  ;;  %v4352_v12 = vpop.f32.mrf.mxu0  ;;  %v3527_v47 = vsel %vm680_vm3, %v3490_v42, 0.0  ;;  %v3066_v13 = vadd.f32 %v2965_v24, %v5730_v38  ;;  %v6056_v26 = vld [vmem:[#allocation8_spill] sm:$0xff] }
 0x201   : > { %3390 = vst.msk [vmem:[%s5705_s18 + $0x38] sm:$0xff] %vm680_vm3, %v3358_v34  ;;  %v3356_v40 = vadd.f32 %v3243_v63, %v3062_v1  ;;  %v3523_v35 = vsel %vm680_vm3, %v3488_v9, 0.0  ;;  %v3491_v39 = vmul.f32 %v3358_v34, %v3358_v34  ;;  %v3428_v23 = vsel %vm680_vm3, %v3358_v34, 0.0  ;;  %v6057_v1 = vld [vmem:[#allocation27_spill] sm:$0xff] }
 0x202   : > { %v3423_v33 = vadd.f32 %v3422_v18, %v3421_v17  ;;  %v3522_v49 = vadd.f32 %v3521_v4, %v3520_v6  ;;  %v4382_v37 = vpop.f32.mrf.mxu1  ;;  %v2978_v3 = vpop.f32.mrf.mxu0  ;;  %v5826_v9 = vadd.f32 %v6057_v1, %v6056_v26  ;;  %v5830_v43 = vadd.f32 %v6058_v60, %v5774_v59 }
 0x203   : > { %3388 = vst.msk [vmem:[%s5705_s18 + $0x28] sm:$0xff] %vm680_vm3, %v3356_v40  ;;  %v3424_v32 = vsel %vm680_vm3, %v3356_v40, 0.0  ;;  %v3489_v51 = vmul.f32 %v3356_v40, %v3356_v40  ;;  %v3361_v10 = vadd.f32 %v4382_v37, %v3067_v19  ;;  %v3529_v34 = vsel %vm680_vm3, %v3491_v39, 0.0  ;;  %v6060_v37 = vld [vmem:[#allocation29_spill] sm:$0xff] }
 0x204   : > { %v3524_v15 = vadd.f32 %v3523_v35, %v3522_v49  ;;  %v3425_v29 = vadd.f32 %v3424_v32, %v3423_v33  ;;  %v3256_v53 = vpop.f32.mrf.mxu1  ;;  %v4353_v8 = vpop.f32.mrf.mxu0  ;;  %v3071_v38 = vadd.f32 %v4352_v12, %v5735_v27  ;;  %v3069_v59 = vadd.f32 %v2978_v3, %v5740_v62 }
 0x205   : > { %v3525_v0 = vsel %vm680_vm3, %v3489_v51, 0.0  ;;  %3393 = vst.msk [vmem:[%s5705_s18 + $0x50] sm:$0xff] %vm680_vm3, %v3361_v10  ;;  %v3359_v52 = vadd.f32 %v3256_v53, %v3065_v11  ;;  %v3494_v4 = vmul.f32 %v3361_v10, %v3361_v10  ;;  %v6059_v11 = vld [vmem:[#allocation9_spill] sm:$0xff]  ;;  %v3434_v32 = vsel %vm680_vm3, %v3361_v10, 0.0  ;;  %v6061_v53 = vld [vmem:[#allocation30_spill] sm:$0xff] }
 0x206   : > { %v3427_v20 = vadd.f32 %v3426_v61, %v3425_v29  ;;  %v3526_v21 = vadd.f32 %v3525_v0, %v3524_v15  ;;  %v4383_v22 = vpop.f32.mrf.mxu1  ;;  %v2981_v63 = vpop.f32.mrf.mxu0  ;;  %v5844_v35 = vadd.f32 %v6060_v37, %v6059_v11  ;;  %v3072_v54 = vadd.f32 %v4353_v8, %v5747_v25 }
 0x207   : > { %3391 = vst.msk [vmem:[%s5705_s18 + $0x40] sm:$0xff] %vm680_vm3, %v3359_v52  ;;  %v3492_v44 = vmul.f32 %v3359_v52, %v3359_v52  ;;  %v3362_v7 = vadd.f32 %v4383_v22, %v3068_v28  ;;  %v3430_v6 = vsel %vm680_vm3, %v3359_v52, 0.0  ;;  %v5853_v39 = vadd.f32 %v6061_v53, %v5791_v2  ;;  %v6063_v22 = vld [vmem:[#allocation31_spill] sm:$0xff]  ;;  %v6064_v2 = vld [vmem:[#allocation32_spill] sm:$0xff] }
 0x208   : > { %v3528_v58 = vadd.f32 %v3527_v47, %v3526_v21  ;;  %v3429_v41 = vadd.f32 %v3428_v23, %v3427_v20  ;;  %v3259_v16 = vpop.f32.mrf.mxu1  ;;  %v4356_v49 = vpop.f32.mrf.mxu0  ;;  %v3535_v28 = vsel %vm680_vm3, %v3494_v4, 0.0  ;;  %v3070_v25 = vadd.f32 %v2981_v63, %v5752_v14  ;;  %v6062_v21 = vld [vmem:[#allocation10_spill] sm:$0xff]  ;;  %v6067_v53 = vld [vmem:[#allocation12_spill] sm:$0xff] }
 0x209   : > { %3394 = vst.msk [vmem:[%s5705_s18 + $0x58] sm:$0xff] %vm680_vm3, %v3362_v7  ;;  %v3360_v17 = vadd.f32 %v3259_v16, %v3066_v13  ;;  %v3531_v24 = vsel %vm680_vm3, %v3492_v44, 0.0  ;;  %v3495_v50 = vmul.f32 %v3362_v7, %v3362_v7  ;;  %v3436_v3 = vsel %vm680_vm3, %v3362_v7, 0.0 }
 0x20a   : > { %v3431_v19 = vadd.f32 %v3430_v6, %v3429_v41  ;;  %v3530_v18 = vadd.f32 %v3529_v34, %v3528_v58  ;;  %v4386_v40 = vpop.f32.mrf.mxu1  ;;  %v2994_v29 = vpop.f32.mrf.mxu0  ;;  %v5862_v23 = vadd.f32 %v6063_v22, %v6062_v21  ;;  %v5866_v13 = vadd.f32 %v6064_v2, %v5808_v46 }
 0x20b   : > { %3392 = vst.msk [vmem:[%s5705_s18 + $0x48] sm:$0xff] %vm680_vm3, %v3360_v17  ;;  %v3432_v42 = vsel %vm680_vm3, %v3360_v17, 0.0  ;;  %v3493_v27 = vmul.f32 %v3360_v17, %v3360_v17  ;;  %v3365_v33 = vadd.f32 %v4386_v40, %v3071_v38  ;;  %v3537_v7 = vsel %vm680_vm3, %v3495_v50, 0.0 }
 0x20c   : > { %v3532_v51 = vadd.f32 %v3531_v24, %v3530_v18  ;;  %v3433_v62 = vadd.f32 %v3432_v42, %v3431_v19  ;;  %v3272_v12 = vpop.f32.mrf.mxu1  ;;  %v4357_v20 = vpop.f32.mrf.mxu0  ;;  %v3075_v14 = vadd.f32 %v4356_v49, %v5757_v36  ;;  %v3073_v46 = vadd.f32 %v2994_v29, %v5766_v48  ;;  %v6065_v19 = vld [vmem:[#allocation11_spill] sm:$0xff]  ;;  %v6066_v18 = vld [vmem:[#allocation33_spill] sm:$0xff] }
 0x20d   : > { %v3533_v61 = vsel %vm680_vm3, %v3493_v27, 0.0  ;;  %3397 = vst.msk [vmem:[%s5705_s18 + $0x70] sm:$0xff] %vm680_vm3, %v3365_v33  ;;  %v3363_v15 = vadd.f32 %v3272_v12, %v3069_v59  ;;  %v3498_v41 = vmul.f32 %v3365_v33, %v3365_v33  ;;  %v5880_v59 = vadd.f32 %v6066_v18, %v6065_v19 }
 0x20e   : > { %v3435_v10 = vadd.f32 %v3434_v32, %v3433_v62  ;;  %v3534_v0 = vadd.f32 %v3533_v61, %v3532_v51  ;;  %v4387_v52 = vpop.f32.mrf.mxu1  ;;  %v2997_v58 = vpop.f32.mrf.mxu0  ;;  %v3442_v40 = vsel %vm680_vm3, %v3365_v33, 0.0  ;;  %v3076_v49 = vadd.f32 %v4357_v20, %v5782_v55 }
 0x20f   : > { %3395 = vst.msk [vmem:[%s5705_s18 + $0x60] sm:$0xff] %vm680_vm3, %v3363_v15  ;;  %v3496_v57 = vmul.f32 %v3363_v15, %v3363_v15  ;;  %v3366_v47 = vadd.f32 %v4387_v52, %v3072_v54  ;;  %v3438_v1 = vsel %vm680_vm3, %v3363_v15, 0.0  ;;  %v2789_v51 = vadd.f32 %v5648_v31, %v5826_v9  ;;  %v6069_v31 = vld [vmem:[#allocation35_spill] sm:$0xff] }
 0x210   : > { %v3536_v44 = vadd.f32 %v3535_v28, %v3534_v0  ;;  %v3437_v8 = vadd.f32 %v3436_v3, %v3435_v10  ;;  %v3275_v26 = vpop.f32.mrf.mxu1  ;;  %v4360_v4 = vpop.f32.mrf.mxu0  ;;  %v3543_v62 = vsel %vm680_vm3, %v3498_v41, 0.0  ;;  %v3074_v61 = vadd.f32 %v2997_v58, %v5794_v5  ;;  %v6068_v28 = vld [vmem:[#allocation34_spill] sm:$0xff] }
 0x211   : > { %3398 = vst.msk [vmem:[%s5705_s18 + $0x78] sm:$0xff] %vm680_vm3, %v3366_v47  ;;  %v3364_v60 = vadd.f32 %v3275_v26, %v3070_v25  ;;  %v3539_v6 = vsel %vm680_vm3, %v3496_v57, 0.0  ;;  %v3499_v27 = vmul.f32 %v3366_v47, %v3366_v47  ;;  %v3444_v54 = vsel %vm680_vm3, %v3366_v47, 0.0 }
 0x212   : > { %v3439_v16 = vadd.f32 %v3438_v1, %v3437_v8  ;;  %v3538_v34 = vadd.f32 %v3537_v7, %v3536_v44  ;;  %v4390_v38 = vpop.f32.mrf.mxu1  ;;  %v3010_v32 = vpop.f32.mrf.mxu0  ;;  %v5896_v10 = vadd.f32 %v6068_v28, %v6067_v53  ;;  %v2787_v9 = vadd.f32 %v6069_v31, %v5844_v35  ;;  %v6070_v1 = vld [vmem:[#allocation13_spill] sm:$0xff] }
 0x213   : > { %3396 = vst.msk [vmem:[%s5705_s18 + $0x68] sm:$0xff] %vm680_vm3, %v3364_v60  ;;  %v3440_v17 = vsel %vm680_vm3, %v3364_v60, 0.0  ;;  %v3497_v36 = vmul.f32 %v3364_v60, %v3364_v60  ;;  %v3369_v63 = vadd.f32 %v4390_v38, %v3075_v14  ;;  %v3545_v25 = vsel %vm680_vm3, %v3499_v27, 0.0  ;;  %v6071_v60 = vld [vmem:[#allocation36_spill] sm:$0xff] }
 0x214   : > { %v3540_v24 = vadd.f32 %v3539_v6, %v3538_v34  ;;  %v3441_v48 = vadd.f32 %v3440_v17, %v3439_v16  ;;  %v3288_v42 = vpop.f32.mrf.mxu1  ;;  %v4361_v29 = vpop.f32.mrf.mxu0  ;;  %v3079_v5 = vadd.f32 %v4360_v4, %v5817_v30  ;;  %v3077_v44 = vadd.f32 %v3010_v32, %v5830_v43  ;;  %v6072_v4 = vld [vmem:[#allocation37_spill] sm:$0xff] }
 0x215   : > { %v3541_v11 = vsel %vm680_vm3, %v3497_v36, 0.0  ;;  %3401 = vst.msk [vmem:[%s5705_s18 + $0x90] sm:$0xff] %vm680_vm3, %v3369_v63  ;;  %v3367_v37 = vadd.f32 %v3288_v42, %v3073_v46  ;;  %v3502_v21 = vmul.f32 %v3369_v63, %v3369_v63  ;;  %v5912_v58 = vadd.f32 %v6071_v60, %v6070_v1 }
 0x216   : > { %v3443_v12 = vadd.f32 %v3442_v40, %v3441_v48  ;;  %v3542_v33 = vadd.f32 %v3541_v11, %v3540_v24  ;;  %v4391_v50 = vpop.f32.mrf.mxu1  ;;  %v3013_v20 = vpop.f32.mrf.mxu0  ;;  %v3450_v41 = vsel %vm680_vm3, %v3369_v63, 0.0  ;;  %v3080_v38 = vadd.f32 %v4361_v29, %v5853_v39  ;;  %v6073_v11 = vld [vmem:[#allocation14_spill] sm:$0xff] }
 0x217   : > { %3399 = vst.msk [vmem:[%s5705_s18 + $0x80] sm:$0xff] %vm680_vm3, %v3367_v37  ;;  %v3500_v55 = vmul.f32 %v3367_v37, %v3367_v37  ;;  %v3370_v15 = vadd.f32 %v4391_v50, %v3076_v49  ;;  %v3446_v57 = vsel %vm680_vm3, %v3367_v37, 0.0  ;;  %v2790_v19 = vadd.f32 %v6072_v4, %v5862_v23  ;;  %v6074_v37 = vld [vmem:[#allocation38_spill] sm:$0xff]  ;;  %v6075_v23 = vld [vmem:[#allocation39_spill] sm:$0xff] }
 0x218   : > { %v3544_v0 = vadd.f32 %v3543_v62, %v3542_v33  ;;  %v3445_v52 = vadd.f32 %v3444_v54, %v3443_v12  ;;  %v3291_v3 = vpop.f32.mrf.mxu1  ;;  %v4364_v14 = vpop.f32.mrf.mxu0  ;;  %v3551_v18 = vsel %vm680_vm3, %v3502_v21, 0.0  ;;  %v3078_v42 = vadd.f32 %v3013_v20, %v5866_v13 }
 0x219   : > { %3402 = vst.msk [vmem:[%s5705_s18 + $0x98] sm:$0xff] %vm680_vm3, %v3370_v15  ;;  %v3368_v47 = vadd.f32 %v3291_v3, %v3074_v61  ;;  %v3547_v8 = vsel %vm680_vm3, %v3500_v55, 0.0  ;;  %v3503_v46 = vmul.f32 %v3370_v15, %v3370_v15  ;;  %v3452_v48 = vsel %vm680_vm3, %v3370_v15, 0.0 }
 0x21a   : > { %v3447_v22 = vadd.f32 %v3446_v57, %v3445_v52  ;;  %v3546_v2 = vadd.f32 %v3545_v25, %v3544_v0  ;;  %v4394_v35 = vpop.f32.mrf.mxu1  ;;  %v3026_v36 = vpop.f32.mrf.mxu0  ;;  %v2499_v32 = vadd.f32 %v6074_v37, %v6073_v11  ;;  %v2788_v62 = vadd.f32 %v6075_v23, %v5880_v59  ;;  %v6077_v57 = vld [vmem:[#allocation40_spill] sm:$0xff] }
 0x21b   : > { %3400 = vst.msk [vmem:[%s5705_s18 + $0x88] sm:$0xff] %vm680_vm3, %v3368_v47  ;;  %v3448_v26 = vsel %vm680_vm3, %v3368_v47, 0.0  ;;  %v3501_v30 = vmul.f32 %v3368_v47, %v3368_v47  ;;  %v3373_v7 = vadd.f32 %v4394_v35, %v3079_v5  ;;  %v3553_v54 = vsel %vm680_vm3, %v3503_v46, 0.0  ;;  %v6076_v5 = vld [vmem:[#allocation15_spill] sm:$0xff] }
 0x21c   : > { %v3548_v16 = vadd.f32 %v3547_v8, %v3546_v2  ;;  %v3449_v43 = vadd.f32 %v3448_v26, %v3447_v22  ;;  %v3304_v34 = vpop.f32.mrf.mxu1  ;;  %v4365_v49 = vpop.f32.mrf.mxu0  ;;  %v3083_v61 = vadd.f32 %v4364_v14, %v2789_v51  ;;  %v3081_v31 = vadd.f32 %v3026_v36, %v2787_v9 }
 0x21d   : > { %v3549_v6 = vsel %vm680_vm3, %v3501_v30, 0.0  ;;  %3405 = vst.msk [vmem:[%s5705_s18 + $0xb0] sm:$0xff] %vm680_vm3, %v3373_v7  ;;  %v3371_v17 = vadd.f32 %v3304_v34, %v3077_v44  ;;  %v3506_v29 = vmul.f32 %v3373_v7, %v3373_v7  ;;  %v2497_v47 = vadd.f32 %v6077_v57, %v6076_v5  ;;  %v6078_v30 = vld [vmem:[#allocation41_spill] sm:$0xff] }
 0x21e   : > { %v3451_v40 = vadd.f32 %v3450_v41, %v3449_v43  ;;  %v3550_v63 = vadd.f32 %v3549_v6, %v3548_v16  ;;  %v4395_v24 = vpop.f32.mrf.mxu1  ;;  %v3029_v15 = vpop.f32.mrf.mxu0  ;;  %v3458_v20 = vsel %vm680_vm3, %v3373_v7, 0.0  ;;  %v3084_v44 = vadd.f32 %v4365_v49, %v2790_v19 }
 0x21f   : > { %3403 = vst.msk [vmem:[%s5705_s18 + $0xa0] sm:$0xff] %vm680_vm3, %v3371_v17  ;;  %v3504_v39 = vmul.f32 %v3371_v17, %v3371_v17  ;;  %v3374_v27 = vadd.f32 %v4395_v24, %v3080_v38  ;;  %v3454_v13 = vsel %vm680_vm3, %v3371_v17, 0.0  ;;  %v2793_v14 = vadd.f32 %v6078_v30, %v5896_v10  ;;  %v6079_v38 = vld [vmem:[#allocation42_spill] sm:$0xff] }
 0x220   : > { %v3552_v12 = vadd.f32 %v3551_v18, %v3550_v63  ;;  %v3453_v33 = vadd.f32 %v3452_v48, %v3451_v40  ;;  %v3307_v50 = vpop.f32.mrf.mxu1  ;;  %v4368_v25 = vpop.f32.mrf.mxu0  ;;  %v3559_v1 = vsel %vm680_vm3, %v3506_v29, 0.0  ;;  %v3082_v43 = vadd.f32 %v3029_v15, %v2788_v62 }
 0x221   : > { %3406 = vst.msk [vmem:[%s5705_s18 + $0xb8] sm:$0xff] %vm680_vm3, %v3374_v27  ;;  %v3372_v55 = vadd.f32 %v3307_v50, %v3078_v42  ;;  %v3555_v59 = vsel %vm680_vm3, %v3504_v39, 0.0  ;;  %v3507_v2 = vmul.f32 %v3374_v27, %v3374_v27  ;;  %v3460_v16 = vsel %vm680_vm3, %v3374_v27, 0.0 }
 0x222   : > { %v3455_v53 = vadd.f32 %v3454_v13, %v3453_v33  ;;  %v3554_v28 = vadd.f32 %v3553_v54, %v3552_v12  ;;  %v4398_v0 = vpop.f32.mrf.mxu1  ;;  %v3042_v26 = vpop.f32.mrf.mxu0  ;;  %v2791_v6 = vadd.f32 %v6079_v38, %v5912_v58  ;;  %v2794_v17 = vadd.f32 %v5676_v45, %v2499_v32 }
 0x223   : > { %3404 = vst.msk [vmem:[%s5705_s18 + $0xa8] sm:$0xff] %vm680_vm3, %v3372_v55  ;;  %v3456_v52 = vsel %vm680_vm3, %v3372_v55, 0.0  ;;  %v3505_v3 = vmul.f32 %v3372_v55, %v3372_v55  ;;  %v3377_v51 = vadd.f32 %v4398_v0, %v3083_v61  ;;  %v3561_v18 = vsel %vm680_vm3, %v3507_v2, 0.0 }
 0x224   : > { %v3556_v21 = vadd.f32 %v3555_v59, %v3554_v28  ;;  %v3457_v22 = vadd.f32 %v3456_v52, %v3455_v53  ;;  %v3320_v9 = vpop.f32.mrf.mxu1  ;;  %v4369_v4 = vpop.f32.mrf.mxu0  ;;  %v3087_v40 = vadd.f32 %v4368_v25, %v2793_v14  ;;  %v3085_v27 = vadd.f32 %v3042_v26, %v2791_v6 }
 0x225   : > { %v3557_v35 = vsel %vm680_vm3, %v3505_v3, 0.0  ;;  %3409 = vst.msk [vmem:[%s5705_s18 + $0xd0] sm:$0xff] %vm680_vm3, %v3377_v51  ;;  %v3375_v8 = vadd.f32 %v3320_v9, %v3081_v31  ;;  %v3510_v48 = vmul.f32 %v3377_v51, %v3377_v51  ;;  %v2792_v32 = vadd.f32 %v5688_v56, %v2497_v47 }
 0x226   : > { %v3459_v60 = vadd.f32 %v3458_v20, %v3457_v22  ;;  %v3558_v41 = vadd.f32 %v3557_v35, %v3556_v21  ;;  %v4399_v7 = vpop.f32.mrf.mxu1  ;;  %v3466_v23 = vsel %vm680_vm3, %v3377_v51, 0.0  ;;  %v3045_v33 = vpop.f32.mrf.mxu0  ;;  %v3088_v61 = vadd.f32 %v4369_v4, %v2794_v17 }
 0x227   : > { %3407 = vst.msk [vmem:[%s5705_s18 + $0xc0] sm:$0xff] %vm680_vm3, %v3375_v8  ;;  %v3508_v34 = vmul.f32 %v3375_v8, %v3375_v8  ;;  %v3378_v46 = vadd.f32 %v4399_v7, %v3084_v44  ;;  %v3462_v63 = vsel %vm680_vm3, %v3375_v8, 0.0  ;;  %v3567_v15 = vsel %vm680_vm3, %v3510_v48, 0.0 }
 0x228   : > { %v3560_v10 = vadd.f32 %v3559_v1, %v3558_v41  ;;  %v3461_v36 = vadd.f32 %v3460_v16, %v3459_v60  ;;  %v3323_v19 = vpop.f32.mrf.mxu1  ;;  %v3086_v31 = vadd.f32 %v3045_v33, %v2792_v32 }
 0x229   : > { %3410 = vst.msk [vmem:[%s5705_s18 + $0xd8] sm:$0xff] %vm680_vm3, %v3378_v46  ;;  %v3376_v24 = vadd.f32 %v3323_v19, %v3082_v43  ;;  %v3563_v45 = vsel %vm680_vm3, %v3508_v34, 0.0  ;;  %v3511_v54 = vmul.f32 %v3378_v46, %v3378_v46  ;;  %v3468_v28 = vsel %vm680_vm3, %v3378_v46, 0.0 }
 0x22a   : > { %v3463_v42 = vadd.f32 %v3462_v63, %v3461_v36  ;;  %v3562_v39 = vadd.f32 %v3561_v18, %v3560_v10  ;;  %v4402_v58 = vpop.f32.mrf.mxu1 }
 0x22b   : > { %3408 = vst.msk [vmem:[%s5705_s18 + $0xc8] sm:$0xff] %vm680_vm3, %v3376_v24  ;;  %v3464_v49 = vsel %vm680_vm3, %v3376_v24, 0.0  ;;  %v3509_v11 = vmul.f32 %v3376_v24, %v3376_v24  ;;  %v3381_v37 = vadd.f32 %v4402_v58, %v3087_v40  ;;  %v3569_v25 = vsel %vm680_vm3, %v3511_v54, 0.0 }
 0x22c   : > { %v3564_v62 = vadd.f32 %v3563_v45, %v3562_v39  ;;  %v3465_v12 = vadd.f32 %v3464_v49, %v3463_v42  ;;  %v3336_v50 = vpop.f32.mrf.mxu1 }
 0x22d   : > { %v3565_v13 = vsel %vm680_vm3, %v3509_v11, 0.0  ;;  %3413 = vst.msk [vmem:[%s5705_s18 + $0xf0] sm:$0xff] %vm680_vm3, %v3381_v37  ;;  %v3379_v55 = vadd.f32 %v3336_v50, %v3085_v27  ;;  %v3514_v21 = vmul.f32 %v3381_v37, %v3381_v37  ;;  %v3474_v8 = vsel %vm680_vm3, %v3381_v37, 0.0 }
 0x22e   : > { %v3467_v29 = vadd.f32 %v3466_v23, %v3465_v12  ;;  %v3566_v53 = vadd.f32 %v3565_v13, %v3564_v62  ;;  %v4403_v56 = vpop.f32.mrf.mxu1 }
 0x22f   : > { %3411 = vst.msk [vmem:[%s5705_s18 + $0xe0] sm:$0xff] %vm680_vm3, %v3379_v55  ;;  %v3512_v0 = vmul.f32 %v3379_v55, %v3379_v55  ;;  %v3382_v59 = vadd.f32 %v4403_v56, %v3088_v61  ;;  %v3470_v5 = vsel %vm680_vm3, %v3379_v55, 0.0  ;;  %v3575_v60 = vsel %vm680_vm3, %v3514_v21, 0.0 }
 0x230   : > { %v3568_v52 = vadd.f32 %v3567_v15, %v3566_v53  ;;  %v3469_v3 = vadd.f32 %v3468_v28, %v3467_v29  ;;  %v3339_v51 = vpop.f32.mrf.mxu1 }
 0x231   : > { %3414 = vst.msk [vmem:[%s5705_s18 + $0xf8] sm:$0xff] %vm680_vm3, %v3382_v59  ;;  %v3380_v57 = vadd.f32 %v3339_v51, %v3086_v31  ;;  %v3571_v22 = vsel %vm680_vm3, %v3512_v0, 0.0  ;;  %v3515_v26 = vmul.f32 %v3382_v59, %v3382_v59  ;;  %v3476_v41 = vsel %vm680_vm3, %v3382_v59, 0.0 }
 0x232   : > { %v3471_v47 = vadd.f32 %v3470_v5, %v3469_v3  ;;  %v3570_v20 = vadd.f32 %v3569_v25, %v3568_v52 }
 0x233   : > { %3412 = vst.msk [vmem:[%s5705_s18 + $0xe8] sm:$0xff] %vm680_vm3, %v3380_v57  ;;  %v3472_v9 = vsel %vm680_vm3, %v3380_v57, 0.0  ;;  %v3513_v2 = vmul.f32 %v3380_v57, %v3380_v57  ;;  %v3577_v43 = vsel %vm680_vm3, %v3515_v26, 0.0 }
 0x234   : > { %v3572_v44 = vadd.f32 %v3571_v22, %v3570_v20  ;;  %v3473_v35 = vadd.f32 %v3472_v9, %v3471_v47 }
 0x235   : > { %v3573_v30 = vsel %vm680_vm3, %v3513_v2, 0.0 }
 0x236   : > { %v3475_v14 = vadd.f32 %v3474_v8, %v3473_v35  ;;  %v3574_v1 = vadd.f32 %v3573_v30, %v3572_v44 }
 0x238   : > { %v3477_v7 = vadd.f32 %v3476_v41, %v3475_v14  ;;  %v3576_v16 = vadd.f32 %v3575_v60, %v3574_v1 }
 0x23a   : > { %v3478_v34 = vrot.slane %v3477_v7, 4  ;;  %v3578_v46 = vadd.f32 %v3577_v43, %v3576_v16 }
 0x23c   : > { %v3479_v38 = vadd.f32 %v3478_v34, %v3477_v7  ;;  %v3579_v6 = vrot.slane %v3578_v46, 4 }
 0x23e   : > { %v3480_v17 = vrot.slane %v3479_v38, 2  ;;  %v3580_v10 = vadd.f32 %v3579_v6, %v3578_v46 }
 0x240   : > { %v3481_v36 = vadd.f32 %v3480_v17, %v3479_v38  ;;  %v3581_v4 = vrot.slane %v3580_v10, 2 }
 0x242   : > { %v3482_v19 = vrot.slane %v3481_v36, 1  ;;  %v3582_v18 = vadd.f32 %v3581_v4, %v3580_v10 }
 0x244   : > { %v3583_v40 = vrot.slane %v3582_v18, 1  ;;  %v3483_v63 = vadd.f32 %v3482_v19, %v3481_v36 }
 0x246   : > { %v3584_v24 = vadd.f32 %v3583_v40, %v3582_v18 }
 0x248   : > { %v3586_v48 = vsel %vm3585_vm4, %v3483_v63, %v3584_v24 }
 0x249   : > { %3588 = vst.msk [vmem:[%s305_s21] sm:$0x3] %vm3587_vm5, %v3586_v48 }
 0x24a PF: > { %s18_s24 = sadd.s32 1, %s4429_s24  }
 0x24b   : > { %p15_p5 = scmp.ge.s32.totalorder %s18_s24, 4  }
 0x24d   :  { %17 = sbr.rel (!%p15_p5) target bundleno = 1 (0x1), region = 104 }

</bundles_post_ra>
